<compile_context>
chip_gen: v5e
topology: v5e:2x2
jax: 0.10.0
libtpu: 0.0.40
codegen_flags: <defaults>
</compile_context>

<pallas_src>
import math
import functools

import jax
import jax.numpy as jnp
from jax import lax
from jax.experimental import pallas as pl
from jax.experimental.pallas import tpu as pltpu

EPS = 1e-5


def _layernorm(h, gamma, beta):
    mu = jnp.mean(h, axis=-1, keepdims=True)
    var = jnp.mean((h - mu) ** 2, axis=-1, keepdims=True)
    return (h - mu) * lax.rsqrt(var + EPS) * gamma + beta


# ------------------------------ Pallas kernel --------------------------------

def anchor_rnn_kernel(z_ref, av_ref, avx_ref, ak_ref,
                      wz_ref, bz_ref,            # fused [Wq_reader | Wk_gate]  (D, 2D), (1, 2D)
                      wkrp_ref, bkrp_ref,        # reader-key padded [Wk_r | 0] (D, 2D), (1, 2D)
                      wqap_ref, bqap_ref,        # gate-query padded [0 | Wq_a] (D, 2D), (1, 2D)
                      g2_ref, b2_ref, g3_ref, b3_ref,
                      wv_ref, bv_ref,
                      z_out_ref, avx_out_ref, y_ref, *, T, A):
    """One batch-tile of the recurrent decoder.

    z_ref   : (BT, D)      current z rows
    av_ref  : (BT*A, D)    anchor_value, batch-major flattened (row r -> batch r//A, anchor r%A)
    avx_ref : (BT*A, D)    anchor_value_ximg, same layout
    ak_ref  : (A, D)       decoder_anchor_key.weight (NOT batch-broadcast)
    outputs : z_out (BT, D), avx_out (BT*A, D), y (BT, V)
    """
    BT, D = z_ref.shape
    R = av_ref.shape[0]                    # BT * A
    scale = 1.0 / math.sqrt(D)

    z = z_ref[...]                         # (BT, D)
    av = av_ref[...]                       # (R, D)
    avx = avx_ref[...]                     # (R, D)

    # Hoist all weight loads out of the loop.
    wz = wz_ref[...]; bz = bz_ref[...]
    g2 = g2_ref[...]; b2 = b2_ref[...]
    g3 = g3_ref[...]; b3 = b3_ref[...]

    # Loop-invariant projections with 1/sqrt(D) folded in.  The zero-padded halves align the
    # operands with the fused per-step projection zz = [q_r | k_a], so no lane slicing is needed.
    k_r_pad = (jnp.dot(av, wkrp_ref[...], preferred_element_type=jnp.float32)
               + bkrp_ref[...]) * scale                               # (R, 2D)  lanes [0:D) live
    q_a_base = (jnp.dot(ak_ref[...], wqap_ref[...], preferred_element_type=jnp.float32)
                + bqap_ref[...]) * scale                              # (A, 2D)  lanes [D:2D) live

    # Expand q_a_base (A, 2D) -> (R, 2D): row r takes anchor r % A.  The 0/1 expansion matrix is
    # built with float floor (guaranteed-supported vector ops), used once, loop-invariant.
    r_f = lax.broadcasted_iota(jnp.int32, (R, A), 0).astype(jnp.float32)
    a_f = lax.broadcasted_iota(jnp.int32, (R, A), 1).astype(jnp.float32)
    r_mod = r_f - A * jnp.floor((r_f + 0.5) * (1.0 / A))
    tile_mat = (jnp.abs(r_mod - a_f) < 0.5).astype(jnp.float32)       # (R, A)
    q_a_pad = jnp.dot(tile_mat, q_a_base, preferred_element_type=jnp.float32)   # (R, 2D)

    # Block-diagonal ownership masks: row r (anchor) belongs to batch element r // A.
    r_idx = lax.broadcasted_iota(jnp.int32, (R, BT), 0)
    b_idx = lax.broadcasted_iota(jnp.int32, (R, BT), 1)
    sel = ((r_idx >= b_idx * A) & (r_idx < (b_idx + 1) * A)).astype(jnp.float32)  # (R, BT)
    q_idx = lax.broadcasted_iota(jnp.int32, (BT, R), 0)
    k_idx = lax.broadcasted_iota(jnp.int32, (BT, R), 1)
    qk_ok = (k_idx >= q_idx * A) & (k_idx < (q_idx + 1) * A)                      # (BT, R)
    # f32 additive mask; if the score matmul is ever cast to bf16, switch to a
    # multiplicative 0/1 mask applied after exp (noted in review).
    qk_bias = jnp.where(qk_ok, jnp.float32(0.0), jnp.float32(-1e30))

    contract_last = (((1,), (1,)), ((), ()))    # contract last dims of both operands (no k.T)

    def body(_, carry):
        z, avx = carry

        # One fused projection of z per step: zz = [z@Wq_reader + bq | z@Wk_gate + bk]  (BT, 2D)
        zz = jnp.dot(z, wz, preferred_element_type=jnp.float32) + bz

        # dg2 = decoder_anchor_reader(z, anchor_value, anchor_value)
        s = lax.dot_general(zz, k_r_pad, contract_last,
                            preferred_element_type=jnp.float32) + qk_bias        # (BT, R)
        s = s - jnp.max(s, axis=-1, keepdims=True)
        p = jnp.exp(s)
        p = p * pl.reciprocal(jnp.sum(p, axis=-1, keepdims=True), approx=True)
        dg2 = jnp.dot(p, av, preferred_element_type=jnp.float32)                 # (BT, D)

        # gate = decoder_anchor_attention(anchor_key, z, z) -> sigmoid transfer gate per anchor
        glog = lax.dot_general(q_a_pad, zz, contract_last,
                               preferred_element_type=jnp.float32)               # (R, BT)
        glog = jnp.sum(glog * sel, axis=-1, keepdims=True)                       # (R, 1)
        gate = pl.reciprocal(1.0 + jnp.exp(-glog), approx=True)                  # sigmoid

        z_rep = jnp.dot(sel, z, preferred_element_type=jnp.float32)              # (R, D)
        avx_new = _layernorm((1.0 - gate) * avx + gate * z_rep, g3, b3)

        z_new = _layernorm(z + dg2, g2, b2)
        return z_new, avx_new

    unroll = True if T <= 16 else 4     # partial unroll for long sequences (review note)
    z, avx = lax.fori_loop(0, T, body, (z, avx), unroll=unroll)

    z_out_ref[...] = z
    avx_out_ref[...] = avx
    y_ref[...] = jnp.dot(z, wv_ref[...], preferred_element_type=jnp.float32) + bv_ref[...]


# --------------------------------- wrapper -----------------------------------

def _tensorcores_per_chip():
    """Generation-aware: v7x has 2 TensorCores per chip; v5e/v6e have 1."""
    try:
        kind = jax.devices()[0].device_kind.lower()
    except Exception:
        return 1
    return 2 if ("v7" in kind or "7x" in kind) else 1


def anchor_rnn_forward(params, hidden_state, output_sequence, *, num_tiles=None):
    z0, anchor_value, anchor_value_ximg = hidden_state
    B, _, D = z0.shape
    A = params["anchor_key_w"].shape[0]
    T = output_sequence.shape[1]
    V = params["vocab_w"].shape[1]

    # Note: embedding_out(output_sequence) is never used numerically in forward();
    # only T = output_sequence.shape[1] matters, so the lookup is skipped.

    if num_tiles is None:
        n_tc = _tensorcores_per_chip()
        num_tiles = n_tc if (n_tc > 1 and B % n_tc == 0) else 1
    assert B % num_tiles == 0
    NT, BT = num_tiles, B // num_tiles

    f32 = lambda a: jnp.asarray(a, jnp.float32)
    row = lambda v: f32(v).reshape(1, -1)

    avx0 = jnp.broadcast_to(f32(anchor_value_ximg), (B, A, D))          # encode() passes 0.0

    z_in = f32(z0).reshape(NT, BT, D)
    av_in = f32(anchor_value).reshape(NT, BT * A, D)
    avx_in = avx0.reshape(NT, BT * A, D)

    # Weight pre-packing (pure weight transforms, done once outside the kernel):
    #   wz_fused  : [Wq_reader | Wk_gate]   -> one fused per-step z projection
    #   wkr_pad   : [Wk_reader | 0      ]   -> reader keys aligned to the fused 2D lanes
    #   wqa_pad   : [0         | Wq_gate]   -> gate queries aligned to the fused 2D lanes
    zeros_DD = jnp.zeros((D, D), jnp.float32)
    zeros_1D = jnp.zeros((1, D), jnp.float32)
    wz_fused = jnp.concatenate([f32(params["wq_r"]), f32(params["wk_a"])], axis=1)   # (D, 2D)
    bz_fused = jnp.concatenate([row(params["bq_r"]), row(params["bk_a"])], axis=1)   # (1, 2D)
    wkr_pad = jnp.concatenate([f32(params["wk_r"]), zeros_DD], axis=1)               # (D, 2D)
    bkr_pad = jnp.concatenate([row(params["bk_r"]), zeros_1D], axis=1)               # (1, 2D)
    wqa_pad = jnp.concatenate([zeros_DD, f32(params["wq_a"])], axis=1)               # (D, 2D)
    bqa_pad = jnp.concatenate([zeros_1D, row(params["bq_a"])], axis=1)               # (1, 2D)

    kernel = functools.partial(anchor_rnn_kernel, T=T, A=A)

    batch3 = lambda r: pl.BlockSpec((None, r, D), lambda t: (t, 0, 0))
    const2 = lambda shape: pl.BlockSpec(shape, lambda t: (0, 0))

    z_out, avx_out, y = pl.pallas_call(
        kernel,
        out_shape=(
            jax.ShapeDtypeStruct((NT, BT, D), jnp.float32),
            jax.ShapeDtypeStruct((NT, BT * A, D), jnp.float32),
            jax.ShapeDtypeStruct((NT, BT, V), jnp.float32),
        ),
        grid_spec=pltpu.PrefetchScalarGridSpec(
            num_scalar_prefetch=0,
            grid=(NT,),
            in_specs=[
                batch3(BT),                                  # z
                batch3(BT * A),                              # anchor_value
                batch3(BT * A),                              # anchor_value_ximg
                const2((A, D)),                              # anchor_key (single copy)
                const2((D, 2 * D)), const2((1, 2 * D)),      # fused z projection W, b
                const2((D, 2 * D)), const2((1, 2 * D)),      # reader key W, b (padded)
                const2((D, 2 * D)), const2((1, 2 * D)),      # gate query W, b (padded)
                const2((1, D)), const2((1, D)),              # norm2 gamma, beta
                const2((1, D)), const2((1, D)),              # norm3 gamma, beta
                const2((D, V)), const2((1, V)),              # vocab W, b
            ],
            out_specs=[
                pl.BlockSpec((None, BT, D), lambda t: (t, 0, 0)),
                pl.BlockSpec((None, BT * A, D), lambda t: (t, 0, 0)),
                pl.BlockSpec((None, BT, V), lambda t: (t, 0, 0)),
            ],
        ),
        compiler_params=pltpu.CompilerParams(
            dimension_semantics=("parallel",) if NT > 1 else ("arbitrary",),
            vmem_limit_bytes=32 * 1024 * 1024),
    )(z_in, av_in, avx_in, f32(params["anchor_key_w"]),
      wz_fused, bz_fused, wkr_pad, bkr_pad, wqa_pad, bqa_pad,
      row(params["gamma2"]), row(params["beta2"]),
      row(params["gamma3"]), row(params["beta3"]),
      f32(params["vocab_w"]), row(params["vocab_b"]))

    z_out = z_out.reshape(B, 1, D)
    avx_out = avx_out.reshape(B, A, D)
    y = y.reshape(B, 1, V)
    return (z_out, anchor_value, avx_out), y


# ------------------------- pure-JAX reference (check) -------------------------

def anchor_rnn_forward_ref(params, hidden_state, output_sequence):
    z, av, avx0 = hidden_state
    B, _, D = z.shape
    A = params["anchor_key_w"].shape[0]
    T = output_sequence.shape[1]
    scale = 1.0 / math.sqrt(D)

    ak = jnp.broadcast_to(params["anchor_key_w"][None], (B, A, D))
    avx = jnp.broadcast_to(jnp.asarray(avx0, jnp.float32), (B, A, D))

    def ln(h, g, b):
        mu = h.mean(-1, keepdims=True)
        var = ((h - mu) ** 2).mean(-1, keepdims=True)
        return (h - mu) / jnp.sqrt(var + EPS) * g + b

    for _ in range(T):
        q = z @ params["wq_r"] + params["bq_r"]
        k = av @ params["wk_r"] + params["bk_r"]
        s = jnp.einsum("bqd,bkd->bqk", q, k) * scale
        p = jax.nn.softmax(s, axis=-1)
        dg2 = jnp.einsum("bqk,bkd->bqd", p, av)

        qa = ak @ params["wq_a"] + params["bq_a"]
        ka = z @ params["wk_a"] + params["bk_a"]
        gate = jax.nn.sigmoid(jnp.einsum("bqd,bkd->bqk", qa, ka) * scale)   # (B, A, 1)
        avx = ln((1.0 - gate) * avx + gate * z, params["gamma3"], params["beta3"])

        z = ln(z + dg2, params["gamma2"], params["beta2"])

    y = z @ params["vocab_w"] + params["vocab_b"]
    return (z, av, avx), y


# ----------------------------------- main -------------------------------------

def make_params(key, embed_dim, anchor_count, output_vocab_size):
    D, A, V = embed_dim, anchor_count, output_vocab_size
    ks = jax.random.split(key, 16)
    s = 0.1
    n = lambda k, shape: s * jax.random.normal(k, shape, jnp.float32)
    return {
        "anchor_key_w": n(ks[0], (A, D)),            # decoder_anchor_key.weight
        "wq_r": n(ks[1], (D, D)), "bq_r": n(ks[2], (D,)),
        "wk_r": n(ks[3], (D, D)), "bk_r": n(ks[4], (D,)),
        "wq_a": n(ks[5], (D, D)), "bq_a": n(ks[6], (D,)),
        "wk_a": n(ks[7], (D, D)), "bk_a": n(ks[8], (D,)),
        "gamma2": 1.0 + n(ks[9], (D,)), "beta2": n(ks[10], (D,)),
        "gamma3": 1.0 + n(ks[11], (D,)), "beta3": n(ks[12], (D,)),
        "vocab_w": n(ks[13], (D, V)), "vocab_b": n(ks[14], (V,)),
    }


if __name__ == "__main__":
    B = 4
    embed_dim = 32
    mixture_count = 4           # anchor_count == mixture_count
    output_vocab_size = 16
    T = 8

    key = jax.random.PRNGKey(0)
    kp, kz, ka, kt = jax.random.split(key, 4)
    params = make_params(kp, embed_dim, mixture_count, output_vocab_size)

    z0 = 0.1 * jax.random.normal(kz, (B, 1, embed_dim), jnp.float32)
    anchor_value = 0.1 * jax.random.normal(ka, (B, mixture_count, embed_dim), jnp.float32)
    anchor_value_ximg = 0.0      # encode() returns a scalar 0.0 for this slot
    hidden_state = (z0, anchor_value, anchor_value_ximg)
    output_sequence = jax.random.randint(kt, (B, T), 0, output_vocab_size, dtype=jnp.int32)

    (z_out, av_out, avx_out), y = anchor_rnn_forward(params, hidden_state, output_sequence)
    z_out = jax.block_until_ready(z_out)
    avx_out = jax.block_until_ready(avx_out)
    y = jax.block_until_ready(y)

    (z_ref, av_ref, avx_ref), y_ref = anchor_rnn_forward_ref(params, hidden_state, output_sequence)

    assert z_out.shape == (B, 1, embed_dim)
    assert avx_out.shape == (B, mixture_count, embed_dim)
    assert y.shape == (B, 1, output_vocab_size)
    # 5e-3 tolerance accounts for pl.reciprocal(approx=True) in softmax/sigmoid over T steps.
    assert jnp.allclose(z_out, z_ref, rtol=5e-3, atol=5e-3)
    assert jnp.allclose(avx_out, avx_ref, rtol=5e-3, atol=5e-3)
    assert jnp.allclose(y, y_ref, rtol=5e-3, atol=5e-3)

    print("KERNEL_OK")
</pallas_src>

<mosaic_0001>
module attributes {stable_mosaic.version = 11 : i64} {
  func.func @anchor_rnn_kernel(%arg0: i32, %arg1: memref<1x4x32xf32, #tpu.memory_space<vmem>>, %arg2: memref<1x16x32xf32, #tpu.memory_space<vmem>>, %arg3: memref<1x16x32xf32, #tpu.memory_space<vmem>>, %arg4: memref<4x32xf32, #tpu.memory_space<vmem>>, %arg5: memref<32x64xf32, #tpu.memory_space<vmem>>, %arg6: memref<1x64xf32, #tpu.memory_space<vmem>>, %arg7: memref<32x64xf32, #tpu.memory_space<vmem>>, %arg8: memref<1x64xf32, #tpu.memory_space<vmem>>, %arg9: memref<32x64xf32, #tpu.memory_space<vmem>>, %arg10: memref<1x64xf32, #tpu.memory_space<vmem>>, %arg11: memref<1x32xf32, #tpu.memory_space<vmem>>, %arg12: memref<1x32xf32, #tpu.memory_space<vmem>>, %arg13: memref<1x32xf32, #tpu.memory_space<vmem>>, %arg14: memref<1x32xf32, #tpu.memory_space<vmem>>, %arg15: memref<32x16xf32, #tpu.memory_space<vmem>>, %arg16: memref<1x16xf32, #tpu.memory_space<vmem>>, %arg17: memref<1x4x32xf32, #tpu.memory_space<vmem>>, %arg18: memref<1x16x32xf32, #tpu.memory_space<vmem>>, %arg19: memref<1x4x16xf32, #tpu.memory_space<vmem>>) attributes {dimension_semantics = [#tpu.dimension_semantics<arbitrary>], iteration_bounds = array<i64: 1>, scalar_prefetch = 0 : i64, scratch_operands = 0 : i64, tpu.core_type = #tpu.core_type<tc>, window_params = [{transform_indices = @transform_0, window_bounds = array<i64: 1, 4, 32>}, {transform_indices = @transform_1, window_bounds = array<i64: 1, 16, 32>}, {transform_indices = @transform_2, window_bounds = array<i64: 1, 16, 32>}, {pipeline_mode = #tpu.pipeline_mode<synchronous>, transform_indices = @transform_3, window_bounds = array<i64: 4, 32>}, {pipeline_mode = #tpu.pipeline_mode<synchronous>, transform_indices = @transform_4, window_bounds = array<i64: 32, 64>}, {pipeline_mode = #tpu.pipeline_mode<synchronous>, transform_indices = @transform_5, window_bounds = array<i64: 1, 64>}, {pipeline_mode = #tpu.pipeline_mode<synchronous>, transform_indices = @transform_6, window_bounds = array<i64: 32, 64>}, {pipeline_mode = #tpu.pipeline_mode<synchronous>, transform_indices = @transform_7, window_bounds = array<i64: 1, 64>}, {pipeline_mode = #tpu.pipeline_mode<synchronous>, transform_indices = @transform_8, window_bounds = array<i64: 32, 64>}, {pipeline_mode = #tpu.pipeline_mode<synchronous>, transform_indices = @transform_9, window_bounds = array<i64: 1, 64>}, {pipeline_mode = #tpu.pipeline_mode<synchronous>, transform_indices = @transform_10, window_bounds = array<i64: 1, 32>}, {pipeline_mode = #tpu.pipeline_mode<synchronous>, transform_indices = @transform_11, window_bounds = array<i64: 1, 32>}, {pipeline_mode = #tpu.pipeline_mode<synchronous>, transform_indices = @transform_12, window_bounds = array<i64: 1, 32>}, {pipeline_mode = #tpu.pipeline_mode<synchronous>, transform_indices = @transform_13, window_bounds = array<i64: 1, 32>}, {pipeline_mode = #tpu.pipeline_mode<synchronous>, transform_indices = @transform_14, window_bounds = array<i64: 32, 16>}, {pipeline_mode = #tpu.pipeline_mode<synchronous>, transform_indices = @transform_15, window_bounds = array<i64: 1, 16>}, {transform_indices = @transform_16, window_bounds = array<i64: 1, 4, 32>}, {transform_indices = @transform_17, window_bounds = array<i64: 1, 16, 32>}, {transform_indices = @transform_18, window_bounds = array<i64: 1, 4, 16>}]} {
    %c0 = arith.constant 0 : index
    %c0_0 = arith.constant 0 : index
    %c0_1 = arith.constant 0 : index
    %0 = vector.load %arg1[%c0, %c0_0, %c0_1] : memref<1x4x32xf32, #tpu.memory_space<vmem>>, vector<1x4x32xf32>
    %1 = vector.shape_cast %0 : vector<1x4x32xf32> to vector<4x32xf32>
    %c0_2 = arith.constant 0 : index
    %c0_3 = arith.constant 0 : index
    %c0_4 = arith.constant 0 : index
    %2 = vector.load %arg2[%c0_2, %c0_3, %c0_4] : memref<1x16x32xf32, #tpu.memory_space<vmem>>, vector<1x16x32xf32>
    %3 = vector.shape_cast %2 : vector<1x16x32xf32> to vector<16x32xf32>
    %c0_5 = arith.constant 0 : index
    %c0_6 = arith.constant 0 : index
    %c0_7 = arith.constant 0 : index
    %4 = vector.load %arg3[%c0_5, %c0_6, %c0_7] : memref<1x16x32xf32, #tpu.memory_space<vmem>>, vector<1x16x32xf32>
    %5 = vector.shape_cast %4 : vector<1x16x32xf32> to vector<16x32xf32>
    %c0_8 = arith.constant 0 : index
    %c0_9 = arith.constant 0 : index
    %6 = vector.load %arg5[%c0_8, %c0_9] : memref<32x64xf32, #tpu.memory_space<vmem>>, vector<32x64xf32>
    %c0_10 = arith.constant 0 : index
    %c0_11 = arith.constant 0 : index
    %7 = vector.load %arg6[%c0_10, %c0_11] : memref<1x64xf32, #tpu.memory_space<vmem>>, vector<1x64xf32>
    %c0_12 = arith.constant 0 : index
    %c0_13 = arith.constant 0 : index
    %8 = vector.load %arg11[%c0_12, %c0_13] : memref<1x32xf32, #tpu.memory_space<vmem>>, vector<1x32xf32>
    %c0_14 = arith.constant 0 : index
    %c0_15 = arith.constant 0 : index
    %9 = vector.load %arg12[%c0_14, %c0_15] : memref<1x32xf32, #tpu.memory_space<vmem>>, vector<1x32xf32>
    %c0_16 = arith.constant 0 : index
    %c0_17 = arith.constant 0 : index
    %10 = vector.load %arg13[%c0_16, %c0_17] : memref<1x32xf32, #tpu.memory_space<vmem>>, vector<1x32xf32>
    %c0_18 = arith.constant 0 : index
    %c0_19 = arith.constant 0 : index
    %11 = vector.load %arg14[%c0_18, %c0_19] : memref<1x32xf32, #tpu.memory_space<vmem>>, vector<1x32xf32>
    %c0_20 = arith.constant 0 : index
    %c0_21 = arith.constant 0 : index
    %12 = vector.load %arg7[%c0_20, %c0_21] : memref<32x64xf32, #tpu.memory_space<vmem>>, vector<32x64xf32>
    %cst = arith.constant dense<0.000000e+00> : vector<16x64xf32>
    %13 = tpu.matmul %3, %12, %cst {dimension_numbers = #tpu.dot_dimension_numbers<[1], [0], [0], [1], [0, 0, 1, 1], [], []>} : vector<16x32xf32>, vector<32x64xf32>, vector<16x64xf32> -> vector<16x64xf32>
    %c0_22 = arith.constant 0 : index
    %c0_23 = arith.constant 0 : index
    %14 = vector.load %arg8[%c0_22, %c0_23] : memref<1x64xf32, #tpu.memory_space<vmem>>, vector<1x64xf32>
    %15 = vector.broadcast %14 : vector<1x64xf32> to vector<16x64xf32>
    %16 = arith.addf %13, %15 : vector<16x64xf32>
    %cst_24 = arith.constant 0.176776692 : f32
    %17 = vector.broadcast %cst_24 : f32 to vector<16x64xf32>
    %18 = arith.mulf %16, %17 : vector<16x64xf32>
    %c0_25 = arith.constant 0 : index
    %c0_26 = arith.constant 0 : index
    %19 = vector.load %arg4[%c0_25, %c0_26] : memref<4x32xf32, #tpu.memory_space<vmem>>, vector<4x32xf32>
    %c0_27 = arith.constant 0 : index
    %c0_28 = arith.constant 0 : index
    %20 = vector.load %arg9[%c0_27, %c0_28] : memref<32x64xf32, #tpu.memory_space<vmem>>, vector<32x64xf32>
    %cst_29 = arith.constant dense<0.000000e+00> : vector<4x64xf32>
    %21 = tpu.matmul %19, %20, %cst_29 {dimension_numbers = #tpu.dot_dimension_numbers<[1], [0], [0], [1], [0, 0, 1, 1], [], []>} : vector<4x32xf32>, vector<32x64xf32>, vector<4x64xf32> -> vector<4x64xf32>
    %c0_30 = arith.constant 0 : index
    %c0_31 = arith.constant 0 : index
    %22 = vector.load %arg10[%c0_30, %c0_31] : memref<1x64xf32, #tpu.memory_space<vmem>>, vector<1x64xf32>
    %23 = vector.broadcast %22 : vector<1x64xf32> to vector<4x64xf32>
    %24 = arith.addf %21, %23 : vector<4x64xf32>
    %cst_32 = arith.constant 0.176776692 : f32
    %25 = vector.broadcast %cst_32 : f32 to vector<4x64xf32>
    %26 = arith.mulf %24, %25 : vector<4x64xf32>
    %27 = tpu.iota {dimensions = array<i32: 0>} : vector<16x4xi32>
    %28 = arith.sitofp %27 : vector<16x4xi32> to vector<16x4xf32>
    %29 = tpu.iota {dimensions = array<i32: 1>} : vector<16x4xi32>
    %30 = arith.sitofp %29 : vector<16x4xi32> to vector<16x4xf32>
    %cst_33 = arith.constant 5.000000e-01 : f32
    %31 = vector.broadcast %cst_33 : f32 to vector<16x4xf32>
    %32 = arith.addf %28, %31 : vector<16x4xf32>
    %cst_34 = arith.constant 2.500000e-01 : f32
    %33 = vector.broadcast %cst_34 : f32 to vector<16x4xf32>
    %34 = arith.mulf %32, %33 : vector<16x4xf32>
    %35 = math.floor %34 : vector<16x4xf32>
    %cst_35 = arith.constant 4.000000e+00 : f32
    %36 = vector.broadcast %cst_35 : f32 to vector<16x4xf32>
    %37 = arith.mulf %36, %35 : vector<16x4xf32>
    %38 = arith.subf %28, %37 : vector<16x4xf32>
    %39 = arith.subf %38, %30 : vector<16x4xf32>
    %40 = math.absf %39 : vector<16x4xf32>
    %cst_36 = arith.constant 5.000000e-01 : f32
    %41 = vector.broadcast %cst_36 : f32 to vector<16x4xf32>
    %42 = arith.cmpf olt, %40, %41 : vector<16x4xf32>
    %43 = arith.extui %42 : vector<16x4xi1> to vector<16x4xi32>
    %44 = arith.sitofp %43 : vector<16x4xi32> to vector<16x4xf32>
    %cst_37 = arith.constant dense<0.000000e+00> : vector<16x64xf32>
    %45 = tpu.matmul %44, %26, %cst_37 {dimension_numbers = #tpu.dot_dimension_numbers<[1], [0], [0], [1], [0, 0, 1, 1], [], []>} : vector<16x4xf32>, vector<4x64xf32>, vector<16x64xf32> -> vector<16x64xf32>
    %46 = tpu.iota {dimensions = array<i32: 0>} : vector<16x4xi32>
    %47 = tpu.iota {dimensions = array<i32: 1>} : vector<16x4xi32>
    %c4_i32 = arith.constant 4 : i32
    %48 = vector.broadcast %c4_i32 : i32 to vector<16x4xi32>
    %49 = arith.muli %47, %48 : vector<16x4xi32>
    %50 = arith.cmpi sge, %46, %49 : vector<16x4xi32>
    %c1_i32 = arith.constant 1 : i32
    %51 = vector.broadcast %c1_i32 : i32 to vector<16x4xi32>
    %52 = arith.addi %47, %51 : vector<16x4xi32>
    %c4_i32_38 = arith.constant 4 : i32
    %53 = vector.broadcast %c4_i32_38 : i32 to vector<16x4xi32>
    %54 = arith.muli %52, %53 : vector<16x4xi32>
    %55 = arith.cmpi slt, %46, %54 : vector<16x4xi32>
    %56 = arith.andi %50, %55 : vector<16x4xi1>
    %57 = arith.extui %56 : vector<16x4xi1> to vector<16x4xi32>
    %58 = arith.sitofp %57 : vector<16x4xi32> to vector<16x4xf32>
    %59 = tpu.iota {dimensions = array<i32: 0>} : vector<4x16xi32>
    %60 = tpu.iota {dimensions = array<i32: 1>} : vector<4x16xi32>
    %c4_i32_39 = arith.constant 4 : i32
    %61 = vector.broadcast %c4_i32_39 : i32 to vector<4x16xi32>
    %62 = arith.muli %59, %61 : vector<4x16xi32>
    %63 = arith.cmpi sge, %60, %62 : vector<4x16xi32>
    %c1_i32_40 = arith.constant 1 : i32
    %64 = vector.broadcast %c1_i32_40 : i32 to vector<4x16xi32>
    %65 = arith.addi %59, %64 : vector<4x16xi32>
    %c4_i32_41 = arith.constant 4 : i32
    %66 = vector.broadcast %c4_i32_41 : i32 to vector<4x16xi32>
    %67 = arith.muli %65, %66 : vector<4x16xi32>
    %68 = arith.cmpi slt, %60, %67 : vector<4x16xi32>
    %69 = arith.andi %63, %68 : vector<4x16xi1>
    %cst_42 = arith.constant 0.000000e+00 : f32
    %cst_43 = arith.constant -1.000000e+30 : f32
    %70 = vector.broadcast %cst_42 : f32 to vector<4x16xf32>
    %71 = vector.broadcast %cst_43 : f32 to vector<4x16xf32>
    %72 = arith.select %69, %70, %71 : vector<4x16xi1>, vector<4x16xf32>
    %c0_i32 = arith.constant 0 : i32
    %cst_44 = arith.constant dense<0.000000e+00> : vector<4x64xf32>
    %73 = tpu.matmul %1, %6, %cst_44 {dimension_numbers = #tpu.dot_dimension_numbers<[1], [0], [0], [1], [0, 0, 1, 1], [], []>} : vector<4x32xf32>, vector<32x64xf32>, vector<4x64xf32> -> vector<4x64xf32>
    %74 = vector.broadcast %7 : vector<1x64xf32> to vector<4x64xf32>
    %75 = arith.addf %73, %74 : vector<4x64xf32>
    %cst_45 = arith.constant dense<0.000000e+00> : vector<4x16xf32>
    %76 = tpu.matmul %75, %18, %cst_45 {dimension_numbers = #tpu.dot_dimension_numbers<[1], [1], [0], [0], [0, 0, 1, 0], [], []>} : vector<4x64xf32>, vector<16x64xf32>, vector<4x16xf32> -> vector<4x16xf32>
    %77 = arith.addf %76, %72 : vector<4x16xf32>
    %cst_46 = arith.constant dense<0xFF800000> : vector<4xf32>
    %78 = vector.multi_reduction <maximumf>, %77, %cst_46 [1] : vector<4x16xf32> to vector<4xf32>
    %79 = vector.shape_cast %78 : vector<4xf32> to vector<4x1xf32>
    %80 = vector.broadcast %79 : vector<4x1xf32> to vector<4x16xf32>
    %81 = arith.subf %77, %80 : vector<4x16xf32>
    %82 = math.exp %81 : vector<4x16xf32>
    %cst_47 = arith.constant dense<0.000000e+00> : vector<4xf32>
    %83 = vector.multi_reduction <add>, %82, %cst_47 [1] : vector<4x16xf32> to vector<4xf32>
    %84 = vector.shape_cast %83 : vector<4xf32> to vector<4x1xf32>
    %85 = tpu.reciprocal %84 {approx = true} : vector<4x1xf32> -> vector<4x1xf32>
    %86 = vector.broadcast %85 : vector<4x1xf32> to vector<4x16xf32>
    %87 = arith.mulf %82, %86 : vector<4x16xf32>
    %cst_48 = arith.constant dense<0.000000e+00> : vector<4x32xf32>
    %88 = tpu.matmul %87, %3, %cst_48 {dimension_numbers = #tpu.dot_dimension_numbers<[1], [0], [0], [1], [0, 0, 1, 1], [], []>} : vector<4x16xf32>, vector<16x32xf32>, vector<4x32xf32> -> vector<4x32xf32>
    %cst_49 = arith.constant dense<0.000000e+00> : vector<16x4xf32>
    %89 = tpu.matmul %45, %75, %cst_49 {dimension_numbers = #tpu.dot_dimension_numbers<[1], [1], [0], [0], [0, 0, 1, 0], [], []>} : vector<16x64xf32>, vector<4x64xf32>, vector<16x4xf32> -> vector<16x4xf32>
    %90 = arith.mulf %89, %58 : vector<16x4xf32>
    %cst_50 = arith.constant dense<0.000000e+00> : vector<16xf32>
    %91 = vector.multi_reduction <add>, %90, %cst_50 [1] : vector<16x4xf32> to vector<16xf32>
    %92 = vector.shape_cast %91 : vector<16xf32> to vector<16x1xf32>
    %cst_51 = arith.constant 0.000000e+00 : f32
    %93 = vector.broadcast %cst_51 : f32 to vector<16x1xf32>
    %94 = arith.subf %93, %92 : vector<16x1xf32>
    %95 = math.exp %94 : vector<16x1xf32>
    %cst_52 = arith.constant 1.000000e+00 : f32
    %96 = vector.broadcast %cst_52 : f32 to vector<16x1xf32>
    %97 = arith.addf %96, %95 : vector<16x1xf32>
    %98 = tpu.reciprocal %97 {approx = true} : vector<16x1xf32> -> vector<16x1xf32>
    %cst_53 = arith.constant dense<0.000000e+00> : vector<16x32xf32>
    %99 = tpu.matmul %58, %1, %cst_53 {dimension_numbers = #tpu.dot_dimension_numbers<[1], [0], [0], [1], [0, 0, 1, 1], [], []>} : vector<16x4xf32>, vector<4x32xf32>, vector<16x32xf32> -> vector<16x32xf32>
    %cst_54 = arith.constant 1.000000e+00 : f32
    %100 = vector.broadcast %cst_54 : f32 to vector<16x1xf32>
    %101 = arith.subf %100, %98 : vector<16x1xf32>
    %102 = vector.broadcast %101 : vector<16x1xf32> to vector<16x32xf32>
    %103 = arith.mulf %102, %5 : vector<16x32xf32>
    %104 = vector.broadcast %98 : vector<16x1xf32> to vector<16x32xf32>
    %105 = arith.mulf %104, %99 : vector<16x32xf32>
    %106 = arith.addf %103, %105 : vector<16x32xf32>
    %cst_55 = arith.constant dense<0.000000e+00> : vector<16xf32>
    %107 = vector.multi_reduction <add>, %106, %cst_55 [1] : vector<16x32xf32> to vector<16xf32>
    %108 = vector.shape_cast %107 : vector<16xf32> to vector<16x1xf32>
    %cst_56 = arith.constant 3.200000e+01 : f32
    %109 = vector.broadcast %cst_56 : f32 to vector<16x1xf32>
    %110 = arith.divf %108, %109 : vector<16x1xf32>
    %111 = vector.broadcast %110 : vector<16x1xf32> to vector<16x32xf32>
    %112 = arith.subf %106, %111 : vector<16x32xf32>
    %113 = arith.mulf %112, %112 : vector<16x32xf32>
    %cst_57 = arith.constant dense<0.000000e+00> : vector<16xf32>
    %114 = vector.multi_reduction <add>, %113, %cst_57 [1] : vector<16x32xf32> to vector<16xf32>
    %115 = vector.shape_cast %114 : vector<16xf32> to vector<16x1xf32>
    %cst_58 = arith.constant 3.200000e+01 : f32
    %116 = vector.broadcast %cst_58 : f32 to vector<16x1xf32>
    %117 = arith.divf %115, %116 : vector<16x1xf32>
    %118 = vector.broadcast %110 : vector<16x1xf32> to vector<16x32xf32>
    %119 = arith.subf %106, %118 : vector<16x32xf32>
    %cst_59 = arith.constant 9.99999974E-6 : f32
    %120 = vector.broadcast %cst_59 : f32 to vector<16x1xf32>
    %121 = arith.addf %117, %120 : vector<16x1xf32>
    %122 = math.rsqrt %121 : vector<16x1xf32>
    %123 = vector.broadcast %122 : vector<16x1xf32> to vector<16x32xf32>
    %124 = arith.mulf %119, %123 : vector<16x32xf32>
    %125 = vector.broadcast %10 : vector<1x32xf32> to vector<16x32xf32>
    %126 = arith.mulf %124, %125 : vector<16x32xf32>
    %127 = vector.broadcast %11 : vector<1x32xf32> to vector<16x32xf32>
    %128 = arith.addf %126, %127 : vector<16x32xf32>
    %129 = arith.addf %1, %88 : vector<4x32xf32>
    %cst_60 = arith.constant dense<0.000000e+00> : vector<4xf32>
    %130 = vector.multi_reduction <add>, %129, %cst_60 [1] : vector<4x32xf32> to vector<4xf32>
    %131 = vector.shape_cast %130 : vector<4xf32> to vector<4x1xf32>
    %cst_61 = arith.constant 3.200000e+01 : f32
    %132 = vector.broadcast %cst_61 : f32 to vector<4x1xf32>
    %133 = arith.divf %131, %132 : vector<4x1xf32>
    %134 = vector.broadcast %133 : vector<4x1xf32> to vector<4x32xf32>
    %135 = arith.subf %129, %134 : vector<4x32xf32>
    %136 = arith.mulf %135, %135 : vector<4x32xf32>
    %cst_62 = arith.constant dense<0.000000e+00> : vector<4xf32>
    %137 = vector.multi_reduction <add>, %136, %cst_62 [1] : vector<4x32xf32> to vector<4xf32>
    %138 = vector.shape_cast %137 : vector<4xf32> to vector<4x1xf32>
    %cst_63 = arith.constant 3.200000e+01 : f32
    %139 = vector.broadcast %cst_63 : f32 to vector<4x1xf32>
    %140 = arith.divf %138, %139 : vector<4x1xf32>
    %141 = vector.broadcast %133 : vector<4x1xf32> to vector<4x32xf32>
    %142 = arith.subf %129, %141 : vector<4x32xf32>
    %cst_64 = arith.constant 9.99999974E-6 : f32
    %143 = vector.broadcast %cst_64 : f32 to vector<4x1xf32>
    %144 = arith.addf %140, %143 : vector<4x1xf32>
    %145 = math.rsqrt %144 : vector<4x1xf32>
    %146 = vector.broadcast %145 : vector<4x1xf32> to vector<4x32xf32>
    %147 = arith.mulf %142, %146 : vector<4x32xf32>
    %148 = vector.broadcast %8 : vector<1x32xf32> to vector<4x32xf32>
    %149 = arith.mulf %147, %148 : vector<4x32xf32>
    %150 = vector.broadcast %9 : vector<1x32xf32> to vector<4x32xf32>
    %151 = arith.addf %149, %150 : vector<4x32xf32>
    %c1_i32_65 = arith.constant 1 : i32
    %cst_66 = arith.constant dense<0.000000e+00> : vector<4x64xf32>
    %152 = tpu.matmul %151, %6, %cst_66 {dimension_numbers = #tpu.dot_dimension_numbers<[1], [0], [0], [1], [0, 0, 1, 1], [], []>} : vector<4x32xf32>, vector<32x64xf32>, vector<4x64xf32> -> vector<4x64xf32>
    %153 = vector.broadcast %7 : vector<1x64xf32> to vector<4x64xf32>
    %154 = arith.addf %152, %153 : vector<4x64xf32>
    %cst_67 = arith.constant dense<0.000000e+00> : vector<4x16xf32>
    %155 = tpu.matmul %154, %18, %cst_67 {dimension_numbers = #tpu.dot_dimension_numbers<[1], [1], [0], [0], [0, 0, 1, 0], [], []>} : vector<4x64xf32>, vector<16x64xf32>, vector<4x16xf32> -> vector<4x16xf32>
    %156 = arith.addf %155, %72 : vector<4x16xf32>
    %cst_68 = arith.constant dense<0xFF800000> : vector<4xf32>
    %157 = vector.multi_reduction <maximumf>, %156, %cst_68 [1] : vector<4x16xf32> to vector<4xf32>
    %158 = vector.shape_cast %157 : vector<4xf32> to vector<4x1xf32>
    %159 = vector.broadcast %158 : vector<4x1xf32> to vector<4x16xf32>
    %160 = arith.subf %156, %159 : vector<4x16xf32>
    %161 = math.exp %160 : vector<4x16xf32>
    %cst_69 = arith.constant dense<0.000000e+00> : vector<4xf32>
    %162 = vector.multi_reduction <add>, %161, %cst_69 [1] : vector<4x16xf32> to vector<4xf32>
    %163 = vector.shape_cast %162 : vector<4xf32> to vector<4x1xf32>
    %164 = tpu.reciprocal %163 {approx = true} : vector<4x1xf32> -> vector<4x1xf32>
    %165 = vector.broadcast %164 : vector<4x1xf32> to vector<4x16xf32>
    %166 = arith.mulf %161, %165 : vector<4x16xf32>
    %cst_70 = arith.constant dense<0.000000e+00> : vector<4x32xf32>
    %167 = tpu.matmul %166, %3, %cst_70 {dimension_numbers = #tpu.dot_dimension_numbers<[1], [0], [0], [1], [0, 0, 1, 1], [], []>} : vector<4x16xf32>, vector<16x32xf32>, vector<4x32xf32> -> vector<4x32xf32>
    %cst_71 = arith.constant dense<0.000000e+00> : vector<16x4xf32>
    %168 = tpu.matmul %45, %154, %cst_71 {dimension_numbers = #tpu.dot_dimension_numbers<[1], [1], [0], [0], [0, 0, 1, 0], [], []>} : vector<16x64xf32>, vector<4x64xf32>, vector<16x4xf32> -> vector<16x4xf32>
    %169 = arith.mulf %168, %58 : vector<16x4xf32>
    %cst_72 = arith.constant dense<0.000000e+00> : vector<16xf32>
    %170 = vector.multi_reduction <add>, %169, %cst_72 [1] : vector<16x4xf32> to vector<16xf32>
    %171 = vector.shape_cast %170 : vector<16xf32> to vector<16x1xf32>
    %cst_73 = arith.constant 0.000000e+00 : f32
    %172 = vector.broadcast %cst_73 : f32 to vector<16x1xf32>
    %173 = arith.subf %172, %171 : vector<16x1xf32>
    %174 = math.exp %173 : vector<16x1xf32>
    %cst_74 = arith.constant 1.000000e+00 : f32
    %175 = vector.broadcast %cst_74 : f32 to vector<16x1xf32>
    %176 = arith.addf %175, %174 : vector<16x1xf32>
    %177 = tpu.reciprocal %176 {approx = true} : vector<16x1xf32> -> vector<16x1xf32>
    %cst_75 = arith.constant dense<0.000000e+00> : vector<16x32xf32>
    %178 = tpu.matmul %58, %151, %cst_75 {dimension_numbers = #tpu.dot_dimension_numbers<[1], [0], [0], [1], [0, 0, 1, 1], [], []>} : vector<16x4xf32>, vector<4x32xf32>, vector<16x32xf32> -> vector<16x32xf32>
    %cst_76 = arith.constant 1.000000e+00 : f32
    %179 = vector.broadcast %cst_76 : f32 to vector<16x1xf32>
    %180 = arith.subf %179, %177 : vector<16x1xf32>
    %181 = vector.broadcast %180 : vector<16x1xf32> to vector<16x32xf32>
    %182 = arith.mulf %181, %128 : vector<16x32xf32>
    %183 = vector.broadcast %177 : vector<16x1xf32> to vector<16x32xf32>
    %184 = arith.mulf %183, %178 : vector<16x32xf32>
    %185 = arith.addf %182, %184 : vector<16x32xf32>
    %cst_77 = arith.constant dense<0.000000e+00> : vector<16xf32>
    %186 = vector.multi_reduction <add>, %185, %cst_77 [1] : vector<16x32xf32> to vector<16xf32>
    %187 = vector.shape_cast %186 : vector<16xf32> to vector<16x1xf32>
    %cst_78 = arith.constant 3.200000e+01 : f32
    %188 = vector.broadcast %cst_78 : f32 to vector<16x1xf32>
    %189 = arith.divf %187, %188 : vector<16x1xf32>
    %190 = vector.broadcast %189 : vector<16x1xf32> to vector<16x32xf32>
    %191 = arith.subf %185, %190 : vector<16x32xf32>
    %192 = arith.mulf %191, %191 : vector<16x32xf32>
    %cst_79 = arith.constant dense<0.000000e+00> : vector<16xf32>
    %193 = vector.multi_reduction <add>, %192, %cst_79 [1] : vector<16x32xf32> to vector<16xf32>
    %194 = vector.shape_cast %193 : vector<16xf32> to vector<16x1xf32>
    %cst_80 = arith.constant 3.200000e+01 : f32
    %195 = vector.broadcast %cst_80 : f32 to vector<16x1xf32>
    %196 = arith.divf %194, %195 : vector<16x1xf32>
    %197 = vector.broadcast %189 : vector<16x1xf32> to vector<16x32xf32>
    %198 = arith.subf %185, %197 : vector<16x32xf32>
    %cst_81 = arith.constant 9.99999974E-6 : f32
    %199 = vector.broadcast %cst_81 : f32 to vector<16x1xf32>
    %200 = arith.addf %196, %199 : vector<16x1xf32>
    %201 = math.rsqrt %200 : vector<16x1xf32>
    %202 = vector.broadcast %201 : vector<16x1xf32> to vector<16x32xf32>
    %203 = arith.mulf %198, %202 : vector<16x32xf32>
    %204 = vector.broadcast %10 : vector<1x32xf32> to vector<16x32xf32>
    %205 = arith.mulf %203, %204 : vector<16x32xf32>
    %206 = vector.broadcast %11 : vector<1x32xf32> to vector<16x32xf32>
    %207 = arith.addf %205, %206 : vector<16x32xf32>
    %208 = arith.addf %151, %167 : vector<4x32xf32>
    %cst_82 = arith.constant dense<0.000000e+00> : vector<4xf32>
    %209 = vector.multi_reduction <add>, %208, %cst_82 [1] : vector<4x32xf32> to vector<4xf32>
    %210 = vector.shape_cast %209 : vector<4xf32> to vector<4x1xf32>
    %cst_83 = arith.constant 3.200000e+01 : f32
    %211 = vector.broadcast %cst_83 : f32 to vector<4x1xf32>
    %212 = arith.divf %210, %211 : vector<4x1xf32>
    %213 = vector.broadcast %212 : vector<4x1xf32> to vector<4x32xf32>
    %214 = arith.subf %208, %213 : vector<4x32xf32>
    %215 = arith.mulf %214, %214 : vector<4x32xf32>
    %cst_84 = arith.constant dense<0.000000e+00> : vector<4xf32>
    %216 = vector.multi_reduction <add>, %215, %cst_84 [1] : vector<4x32xf32> to vector<4xf32>
    %217 = vector.shape_cast %216 : vector<4xf32> to vector<4x1xf32>
    %cst_85 = arith.constant 3.200000e+01 : f32
    %218 = vector.broadcast %cst_85 : f32 to vector<4x1xf32>
    %219 = arith.divf %217, %218 : vector<4x1xf32>
    %220 = vector.broadcast %212 : vector<4x1xf32> to vector<4x32xf32>
    %221 = arith.subf %208, %220 : vector<4x32xf32>
    %cst_86 = arith.constant 9.99999974E-6 : f32
    %222 = vector.broadcast %cst_86 : f32 to vector<4x1xf32>
    %223 = arith.addf %219, %222 : vector<4x1xf32>
    %224 = math.rsqrt %223 : vector<4x1xf32>
    %225 = vector.broadcast %224 : vector<4x1xf32> to vector<4x32xf32>
    %226 = arith.mulf %221, %225 : vector<4x32xf32>
    %227 = vector.broadcast %8 : vector<1x32xf32> to vector<4x32xf32>
    %228 = arith.mulf %226, %227 : vector<4x32xf32>
    %229 = vector.broadcast %9 : vector<1x32xf32> to vector<4x32xf32>
    %230 = arith.addf %228, %229 : vector<4x32xf32>
    %c2_i32 = arith.constant 2 : i32
    %cst_87 = arith.constant dense<0.000000e+00> : vector<4x64xf32>
    %231 = tpu.matmul %230, %6, %cst_87 {dimension_numbers = #tpu.dot_dimension_numbers<[1], [0], [0], [1], [0, 0, 1, 1], [], []>} : vector<4x32xf32>, vector<32x64xf32>, vector<4x64xf32> -> vector<4x64xf32>
    %232 = vector.broadcast %7 : vector<1x64xf32> to vector<4x64xf32>
    %233 = arith.addf %231, %232 : vector<4x64xf32>
    %cst_88 = arith.constant dense<0.000000e+00> : vector<4x16xf32>
    %234 = tpu.matmul %233, %18, %cst_88 {dimension_numbers = #tpu.dot_dimension_numbers<[1], [1], [0], [0], [0, 0, 1, 0], [], []>} : vector<4x64xf32>, vector<16x64xf32>, vector<4x16xf32> -> vector<4x16xf32>
    %235 = arith.addf %234, %72 : vector<4x16xf32>
    %cst_89 = arith.constant dense<0xFF800000> : vector<4xf32>
    %236 = vector.multi_reduction <maximumf>, %235, %cst_89 [1] : vector<4x16xf32> to vector<4xf32>
    %237 = vector.shape_cast %236 : vector<4xf32> to vector<4x1xf32>
    %238 = vector.broadcast %237 : vector<4x1xf32> to vector<4x16xf32>
    %239 = arith.subf %235, %238 : vector<4x16xf32>
    %240 = math.exp %239 : vector<4x16xf32>
    %cst_90 = arith.constant dense<0.000000e+00> : vector<4xf32>
    %241 = vector.multi_reduction <add>, %240, %cst_90 [1] : vector<4x16xf32> to vector<4xf32>
    %242 = vector.shape_cast %241 : vector<4xf32> to vector<4x1xf32>
    %243 = tpu.reciprocal %242 {approx = true} : vector<4x1xf32> -> vector<4x1xf32>
    %244 = vector.broadcast %243 : vector<4x1xf32> to vector<4x16xf32>
    %245 = arith.mulf %240, %244 : vector<4x16xf32>
    %cst_91 = arith.constant dense<0.000000e+00> : vector<4x32xf32>
    %246 = tpu.matmul %245, %3, %cst_91 {dimension_numbers = #tpu.dot_dimension_numbers<[1], [0], [0], [1], [0, 0, 1, 1], [], []>} : vector<4x16xf32>, vector<16x32xf32>, vector<4x32xf32> -> vector<4x32xf32>
    %cst_92 = arith.constant dense<0.000000e+00> : vector<16x4xf32>
    %247 = tpu.matmul %45, %233, %cst_92 {dimension_numbers = #tpu.dot_dimension_numbers<[1], [1], [0], [0], [0, 0, 1, 0], [], []>} : vector<16x64xf32>, vector<4x64xf32>, vector<16x4xf32> -> vector<16x4xf32>
    %248 = arith.mulf %247, %58 : vector<16x4xf32>
    %cst_93 = arith.constant dense<0.000000e+00> : vector<16xf32>
    %249 = vector.multi_reduction <add>, %248, %cst_93 [1] : vector<16x4xf32> to vector<16xf32>
    %250 = vector.shape_cast %249 : vector<16xf32> to vector<16x1xf32>
    %cst_94 = arith.constant 0.000000e+00 : f32
    %251 = vector.broadcast %cst_94 : f32 to vector<16x1xf32>
    %252 = arith.subf %251, %250 : vector<16x1xf32>
    %253 = math.exp %252 : vector<16x1xf32>
    %cst_95 = arith.constant 1.000000e+00 : f32
    %254 = vector.broadcast %cst_95 : f32 to vector<16x1xf32>
    %255 = arith.addf %254, %253 : vector<16x1xf32>
    %256 = tpu.reciprocal %255 {approx = true} : vector<16x1xf32> -> vector<16x1xf32>
    %cst_96 = arith.constant dense<0.000000e+00> : vector<16x32xf32>
    %257 = tpu.matmul %58, %230, %cst_96 {dimension_numbers = #tpu.dot_dimension_numbers<[1], [0], [0], [1], [0, 0, 1, 1], [], []>} : vector<16x4xf32>, vector<4x32xf32>, vector<16x32xf32> -> vector<16x32xf32>
    %cst_97 = arith.constant 1.000000e+00 : f32
    %258 = vector.broadcast %cst_97 : f32 to vector<16x1xf32>
    %259 = arith.subf %258, %256 : vector<16x1xf32>
    %260 = vector.broadcast %259 : vector<16x1xf32> to vector<16x32xf32>
    %261 = arith.mulf %260, %207 : vector<16x32xf32>
    %262 = vector.broadcast %256 : vector<16x1xf32> to vector<16x32xf32>
    %263 = arith.mulf %262, %257 : vector<16x32xf32>
    %264 = arith.addf %261, %263 : vector<16x32xf32>
    %cst_98 = arith.constant dense<0.000000e+00> : vector<16xf32>
    %265 = vector.multi_reduction <add>, %264, %cst_98 [1] : vector<16x32xf32> to vector<16xf32>
    %266 = vector.shape_cast %265 : vector<16xf32> to vector<16x1xf32>
    %cst_99 = arith.constant 3.200000e+01 : f32
    %267 = vector.broadcast %cst_99 : f32 to vector<16x1xf32>
    %268 = arith.divf %266, %267 : vector<16x1xf32>
    %269 = vector.broadcast %268 : vector<16x1xf32> to vector<16x32xf32>
    %270 = arith.subf %264, %269 : vector<16x32xf32>
    %271 = arith.mulf %270, %270 : vector<16x32xf32>
    %cst_100 = arith.constant dense<0.000000e+00> : vector<16xf32>
    %272 = vector.multi_reduction <add>, %271, %cst_100 [1] : vector<16x32xf32> to vector<16xf32>
    %273 = vector.shape_cast %272 : vector<16xf32> to vector<16x1xf32>
    %cst_101 = arith.constant 3.200000e+01 : f32
    %274 = vector.broadcast %cst_101 : f32 to vector<16x1xf32>
    %275 = arith.divf %273, %274 : vector<16x1xf32>
    %276 = vector.broadcast %268 : vector<16x1xf32> to vector<16x32xf32>
    %277 = arith.subf %264, %276 : vector<16x32xf32>
    %cst_102 = arith.constant 9.99999974E-6 : f32
    %278 = vector.broadcast %cst_102 : f32 to vector<16x1xf32>
    %279 = arith.addf %275, %278 : vector<16x1xf32>
    %280 = math.rsqrt %279 : vector<16x1xf32>
    %281 = vector.broadcast %280 : vector<16x1xf32> to vector<16x32xf32>
    %282 = arith.mulf %277, %281 : vector<16x32xf32>
    %283 = vector.broadcast %10 : vector<1x32xf32> to vector<16x32xf32>
    %284 = arith.mulf %282, %283 : vector<16x32xf32>
    %285 = vector.broadcast %11 : vector<1x32xf32> to vector<16x32xf32>
    %286 = arith.addf %284, %285 : vector<16x32xf32>
    %287 = arith.addf %230, %246 : vector<4x32xf32>
    %cst_103 = arith.constant dense<0.000000e+00> : vector<4xf32>
    %288 = vector.multi_reduction <add>, %287, %cst_103 [1] : vector<4x32xf32> to vector<4xf32>
    %289 = vector.shape_cast %288 : vector<4xf32> to vector<4x1xf32>
    %cst_104 = arith.constant 3.200000e+01 : f32
    %290 = vector.broadcast %cst_104 : f32 to vector<4x1xf32>
    %291 = arith.divf %289, %290 : vector<4x1xf32>
    %292 = vector.broadcast %291 : vector<4x1xf32> to vector<4x32xf32>
    %293 = arith.subf %287, %292 : vector<4x32xf32>
    %294 = arith.mulf %293, %293 : vector<4x32xf32>
    %cst_105 = arith.constant dense<0.000000e+00> : vector<4xf32>
    %295 = vector.multi_reduction <add>, %294, %cst_105 [1] : vector<4x32xf32> to vector<4xf32>
    %296 = vector.shape_cast %295 : vector<4xf32> to vector<4x1xf32>
    %cst_106 = arith.constant 3.200000e+01 : f32
    %297 = vector.broadcast %cst_106 : f32 to vector<4x1xf32>
    %298 = arith.divf %296, %297 : vector<4x1xf32>
    %299 = vector.broadcast %291 : vector<4x1xf32> to vector<4x32xf32>
    %300 = arith.subf %287, %299 : vector<4x32xf32>
    %cst_107 = arith.constant 9.99999974E-6 : f32
    %301 = vector.broadcast %cst_107 : f32 to vector<4x1xf32>
    %302 = arith.addf %298, %301 : vector<4x1xf32>
    %303 = math.rsqrt %302 : vector<4x1xf32>
    %304 = vector.broadcast %303 : vector<4x1xf32> to vector<4x32xf32>
    %305 = arith.mulf %300, %304 : vector<4x32xf32>
    %306 = vector.broadcast %8 : vector<1x32xf32> to vector<4x32xf32>
    %307 = arith.mulf %305, %306 : vector<4x32xf32>
    %308 = vector.broadcast %9 : vector<1x32xf32> to vector<4x32xf32>
    %309 = arith.addf %307, %308 : vector<4x32xf32>
    %c3_i32 = arith.constant 3 : i32
    %cst_108 = arith.constant dense<0.000000e+00> : vector<4x64xf32>
    %310 = tpu.matmul %309, %6, %cst_108 {dimension_numbers = #tpu.dot_dimension_numbers<[1], [0], [0], [1], [0, 0, 1, 1], [], []>} : vector<4x32xf32>, vector<32x64xf32>, vector<4x64xf32> -> vector<4x64xf32>
    %311 = vector.broadcast %7 : vector<1x64xf32> to vector<4x64xf32>
    %312 = arith.addf %310, %311 : vector<4x64xf32>
    %cst_109 = arith.constant dense<0.000000e+00> : vector<4x16xf32>
    %313 = tpu.matmul %312, %18, %cst_109 {dimension_numbers = #tpu.dot_dimension_numbers<[1], [1], [0], [0], [0, 0, 1, 0], [], []>} : vector<4x64xf32>, vector<16x64xf32>, vector<4x16xf32> -> vector<4x16xf32>
    %314 = arith.addf %313, %72 : vector<4x16xf32>
    %cst_110 = arith.constant dense<0xFF800000> : vector<4xf32>
    %315 = vector.multi_reduction <maximumf>, %314, %cst_110 [1] : vector<4x16xf32> to vector<4xf32>
    %316 = vector.shape_cast %315 : vector<4xf32> to vector<4x1xf32>
    %317 = vector.broadcast %316 : vector<4x1xf32> to vector<4x16xf32>
    %318 = arith.subf %314, %317 : vector<4x16xf32>
    %319 = math.exp %318 : vector<4x16xf32>
    %cst_111 = arith.constant dense<0.000000e+00> : vector<4xf32>
    %320 = vector.multi_reduction <add>, %319, %cst_111 [1] : vector<4x16xf32> to vector<4xf32>
    %321 = vector.shape_cast %320 : vector<4xf32> to vector<4x1xf32>
    %322 = tpu.reciprocal %321 {approx = true} : vector<4x1xf32> -> vector<4x1xf32>
    %323 = vector.broadcast %322 : vector<4x1xf32> to vector<4x16xf32>
    %324 = arith.mulf %319, %323 : vector<4x16xf32>
    %cst_112 = arith.constant dense<0.000000e+00> : vector<4x32xf32>
    %325 = tpu.matmul %324, %3, %cst_112 {dimension_numbers = #tpu.dot_dimension_numbers<[1], [0], [0], [1], [0, 0, 1, 1], [], []>} : vector<4x16xf32>, vector<16x32xf32>, vector<4x32xf32> -> vector<4x32xf32>
    %cst_113 = arith.constant dense<0.000000e+00> : vector<16x4xf32>
    %326 = tpu.matmul %45, %312, %cst_113 {dimension_numbers = #tpu.dot_dimension_numbers<[1], [1], [0], [0], [0, 0, 1, 0], [], []>} : vector<16x64xf32>, vector<4x64xf32>, vector<16x4xf32> -> vector<16x4xf32>
    %327 = arith.mulf %326, %58 : vector<16x4xf32>
    %cst_114 = arith.constant dense<0.000000e+00> : vector<16xf32>
    %328 = vector.multi_reduction <add>, %327, %cst_114 [1] : vector<16x4xf32> to vector<16xf32>
    %329 = vector.shape_cast %328 : vector<16xf32> to vector<16x1xf32>
    %cst_115 = arith.constant 0.000000e+00 : f32
    %330 = vector.broadcast %cst_115 : f32 to vector<16x1xf32>
    %331 = arith.subf %330, %329 : vector<16x1xf32>
    %332 = math.exp %331 : vector<16x1xf32>
    %cst_116 = arith.constant 1.000000e+00 : f32
    %333 = vector.broadcast %cst_116 : f32 to vector<16x1xf32>
    %334 = arith.addf %333, %332 : vector<16x1xf32>
    %335 = tpu.reciprocal %334 {approx = true} : vector<16x1xf32> -> vector<16x1xf32>
    %cst_117 = arith.constant dense<0.000000e+00> : vector<16x32xf32>
    %336 = tpu.matmul %58, %309, %cst_117 {dimension_numbers = #tpu.dot_dimension_numbers<[1], [0], [0], [1], [0, 0, 1, 1], [], []>} : vector<16x4xf32>, vector<4x32xf32>, vector<16x32xf32> -> vector<16x32xf32>
    %cst_118 = arith.constant 1.000000e+00 : f32
    %337 = vector.broadcast %cst_118 : f32 to vector<16x1xf32>
    %338 = arith.subf %337, %335 : vector<16x1xf32>
    %339 = vector.broadcast %338 : vector<16x1xf32> to vector<16x32xf32>
    %340 = arith.mulf %339, %286 : vector<16x32xf32>
    %341 = vector.broadcast %335 : vector<16x1xf32> to vector<16x32xf32>
    %342 = arith.mulf %341, %336 : vector<16x32xf32>
    %343 = arith.addf %340, %342 : vector<16x32xf32>
    %cst_119 = arith.constant dense<0.000000e+00> : vector<16xf32>
    %344 = vector.multi_reduction <add>, %343, %cst_119 [1] : vector<16x32xf32> to vector<16xf32>
    %345 = vector.shape_cast %344 : vector<16xf32> to vector<16x1xf32>
    %cst_120 = arith.constant 3.200000e+01 : f32
    %346 = vector.broadcast %cst_120 : f32 to vector<16x1xf32>
    %347 = arith.divf %345, %346 : vector<16x1xf32>
    %348 = vector.broadcast %347 : vector<16x1xf32> to vector<16x32xf32>
    %349 = arith.subf %343, %348 : vector<16x32xf32>
    %350 = arith.mulf %349, %349 : vector<16x32xf32>
    %cst_121 = arith.constant dense<0.000000e+00> : vector<16xf32>
    %351 = vector.multi_reduction <add>, %350, %cst_121 [1] : vector<16x32xf32> to vector<16xf32>
    %352 = vector.shape_cast %351 : vector<16xf32> to vector<16x1xf32>
    %cst_122 = arith.constant 3.200000e+01 : f32
    %353 = vector.broadcast %cst_122 : f32 to vector<16x1xf32>
    %354 = arith.divf %352, %353 : vector<16x1xf32>
    %355 = vector.broadcast %347 : vector<16x1xf32> to vector<16x32xf32>
    %356 = arith.subf %343, %355 : vector<16x32xf32>
    %cst_123 = arith.constant 9.99999974E-6 : f32
    %357 = vector.broadcast %cst_123 : f32 to vector<16x1xf32>
    %358 = arith.addf %354, %357 : vector<16x1xf32>
    %359 = math.rsqrt %358 : vector<16x1xf32>
    %360 = vector.broadcast %359 : vector<16x1xf32> to vector<16x32xf32>
    %361 = arith.mulf %356, %360 : vector<16x32xf32>
    %362 = vector.broadcast %10 : vector<1x32xf32> to vector<16x32xf32>
    %363 = arith.mulf %361, %362 : vector<16x32xf32>
    %364 = vector.broadcast %11 : vector<1x32xf32> to vector<16x32xf32>
    %365 = arith.addf %363, %364 : vector<16x32xf32>
    %366 = arith.addf %309, %325 : vector<4x32xf32>
    %cst_124 = arith.constant dense<0.000000e+00> : vector<4xf32>
    %367 = vector.multi_reduction <add>, %366, %cst_124 [1] : vector<4x32xf32> to vector<4xf32>
    %368 = vector.shape_cast %367 : vector<4xf32> to vector<4x1xf32>
    %cst_125 = arith.constant 3.200000e+01 : f32
    %369 = vector.broadcast %cst_125 : f32 to vector<4x1xf32>
    %370 = arith.divf %368, %369 : vector<4x1xf32>
    %371 = vector.broadcast %370 : vector<4x1xf32> to vector<4x32xf32>
    %372 = arith.subf %366, %371 : vector<4x32xf32>
    %373 = arith.mulf %372, %372 : vector<4x32xf32>
    %cst_126 = arith.constant dense<0.000000e+00> : vector<4xf32>
    %374 = vector.multi_reduction <add>, %373, %cst_126 [1] : vector<4x32xf32> to vector<4xf32>
    %375 = vector.shape_cast %374 : vector<4xf32> to vector<4x1xf32>
    %cst_127 = arith.constant 3.200000e+01 : f32
    %376 = vector.broadcast %cst_127 : f32 to vector<4x1xf32>
    %377 = arith.divf %375, %376 : vector<4x1xf32>
    %378 = vector.broadcast %370 : vector<4x1xf32> to vector<4x32xf32>
    %379 = arith.subf %366, %378 : vector<4x32xf32>
    %cst_128 = arith.constant 9.99999974E-6 : f32
    %380 = vector.broadcast %cst_128 : f32 to vector<4x1xf32>
    %381 = arith.addf %377, %380 : vector<4x1xf32>
    %382 = math.rsqrt %381 : vector<4x1xf32>
    %383 = vector.broadcast %382 : vector<4x1xf32> to vector<4x32xf32>
    %384 = arith.mulf %379, %383 : vector<4x32xf32>
    %385 = vector.broadcast %8 : vector<1x32xf32> to vector<4x32xf32>
    %386 = arith.mulf %384, %385 : vector<4x32xf32>
    %387 = vector.broadcast %9 : vector<1x32xf32> to vector<4x32xf32>
    %388 = arith.addf %386, %387 : vector<4x32xf32>
    %c4_i32_129 = arith.constant 4 : i32
    %cst_130 = arith.constant dense<0.000000e+00> : vector<4x64xf32>
    %389 = tpu.matmul %388, %6, %cst_130 {dimension_numbers = #tpu.dot_dimension_numbers<[1], [0], [0], [1], [0, 0, 1, 1], [], []>} : vector<4x32xf32>, vector<32x64xf32>, vector<4x64xf32> -> vector<4x64xf32>
    %390 = vector.broadcast %7 : vector<1x64xf32> to vector<4x64xf32>
    %391 = arith.addf %389, %390 : vector<4x64xf32>
    %cst_131 = arith.constant dense<0.000000e+00> : vector<4x16xf32>
    %392 = tpu.matmul %391, %18, %cst_131 {dimension_numbers = #tpu.dot_dimension_numbers<[1], [1], [0], [0], [0, 0, 1, 0], [], []>} : vector<4x64xf32>, vector<16x64xf32>, vector<4x16xf32> -> vector<4x16xf32>
    %393 = arith.addf %392, %72 : vector<4x16xf32>
    %cst_132 = arith.constant dense<0xFF800000> : vector<4xf32>
    %394 = vector.multi_reduction <maximumf>, %393, %cst_132 [1] : vector<4x16xf32> to vector<4xf32>
    %395 = vector.shape_cast %394 : vector<4xf32> to vector<4x1xf32>
    %396 = vector.broadcast %395 : vector<4x1xf32> to vector<4x16xf32>
    %397 = arith.subf %393, %396 : vector<4x16xf32>
    %398 = math.exp %397 : vector<4x16xf32>
    %cst_133 = arith.constant dense<0.000000e+00> : vector<4xf32>
    %399 = vector.multi_reduction <add>, %398, %cst_133 [1] : vector<4x16xf32> to vector<4xf32>
    %400 = vector.shape_cast %399 : vector<4xf32> to vector<4x1xf32>
    %401 = tpu.reciprocal %400 {approx = true} : vector<4x1xf32> -> vector<4x1xf32>
    %402 = vector.broadcast %401 : vector<4x1xf32> to vector<4x16xf32>
    %403 = arith.mulf %398, %402 : vector<4x16xf32>
    %cst_134 = arith.constant dense<0.000000e+00> : vector<4x32xf32>
    %404 = tpu.matmul %403, %3, %cst_134 {dimension_numbers = #tpu.dot_dimension_numbers<[1], [0], [0], [1], [0, 0, 1, 1], [], []>} : vector<4x16xf32>, vector<16x32xf32>, vector<4x32xf32> -> vector<4x32xf32>
    %cst_135 = arith.constant dense<0.000000e+00> : vector<16x4xf32>
    %405 = tpu.matmul %45, %391, %cst_135 {dimension_numbers = #tpu.dot_dimension_numbers<[1], [1], [0], [0], [0, 0, 1, 0], [], []>} : vector<16x64xf32>, vector<4x64xf32>, vector<16x4xf32> -> vector<16x4xf32>
    %406 = arith.mulf %405, %58 : vector<16x4xf32>
    %cst_136 = arith.constant dense<0.000000e+00> : vector<16xf32>
    %407 = vector.multi_reduction <add>, %406, %cst_136 [1] : vector<16x4xf32> to vector<16xf32>
    %408 = vector.shape_cast %407 : vector<16xf32> to vector<16x1xf32>
    %cst_137 = arith.constant 0.000000e+00 : f32
    %409 = vector.broadcast %cst_137 : f32 to vector<16x1xf32>
    %410 = arith.subf %409, %408 : vector<16x1xf32>
    %411 = math.exp %410 : vector<16x1xf32>
    %cst_138 = arith.constant 1.000000e+00 : f32
    %412 = vector.broadcast %cst_138 : f32 to vector<16x1xf32>
    %413 = arith.addf %412, %411 : vector<16x1xf32>
    %414 = tpu.reciprocal %413 {approx = true} : vector<16x1xf32> -> vector<16x1xf32>
    %cst_139 = arith.constant dense<0.000000e+00> : vector<16x32xf32>
    %415 = tpu.matmul %58, %388, %cst_139 {dimension_numbers = #tpu.dot_dimension_numbers<[1], [0], [0], [1], [0, 0, 1, 1], [], []>} : vector<16x4xf32>, vector<4x32xf32>, vector<16x32xf32> -> vector<16x32xf32>
    %cst_140 = arith.constant 1.000000e+00 : f32
    %416 = vector.broadcast %cst_140 : f32 to vector<16x1xf32>
    %417 = arith.subf %416, %414 : vector<16x1xf32>
    %418 = vector.broadcast %417 : vector<16x1xf32> to vector<16x32xf32>
    %419 = arith.mulf %418, %365 : vector<16x32xf32>
    %420 = vector.broadcast %414 : vector<16x1xf32> to vector<16x32xf32>
    %421 = arith.mulf %420, %415 : vector<16x32xf32>
    %422 = arith.addf %419, %421 : vector<16x32xf32>
    %cst_141 = arith.constant dense<0.000000e+00> : vector<16xf32>
    %423 = vector.multi_reduction <add>, %422, %cst_141 [1] : vector<16x32xf32> to vector<16xf32>
    %424 = vector.shape_cast %423 : vector<16xf32> to vector<16x1xf32>
    %cst_142 = arith.constant 3.200000e+01 : f32
    %425 = vector.broadcast %cst_142 : f32 to vector<16x1xf32>
    %426 = arith.divf %424, %425 : vector<16x1xf32>
    %427 = vector.broadcast %426 : vector<16x1xf32> to vector<16x32xf32>
    %428 = arith.subf %422, %427 : vector<16x32xf32>
    %429 = arith.mulf %428, %428 : vector<16x32xf32>
    %cst_143 = arith.constant dense<0.000000e+00> : vector<16xf32>
    %430 = vector.multi_reduction <add>, %429, %cst_143 [1] : vector<16x32xf32> to vector<16xf32>
    %431 = vector.shape_cast %430 : vector<16xf32> to vector<16x1xf32>
    %cst_144 = arith.constant 3.200000e+01 : f32
    %432 = vector.broadcast %cst_144 : f32 to vector<16x1xf32>
    %433 = arith.divf %431, %432 : vector<16x1xf32>
    %434 = vector.broadcast %426 : vector<16x1xf32> to vector<16x32xf32>
    %435 = arith.subf %422, %434 : vector<16x32xf32>
    %cst_145 = arith.constant 9.99999974E-6 : f32
    %436 = vector.broadcast %cst_145 : f32 to vector<16x1xf32>
    %437 = arith.addf %433, %436 : vector<16x1xf32>
    %438 = math.rsqrt %437 : vector<16x1xf32>
    %439 = vector.broadcast %438 : vector<16x1xf32> to vector<16x32xf32>
    %440 = arith.mulf %435, %439 : vector<16x32xf32>
    %441 = vector.broadcast %10 : vector<1x32xf32> to vector<16x32xf32>
    %442 = arith.mulf %440, %441 : vector<16x32xf32>
    %443 = vector.broadcast %11 : vector<1x32xf32> to vector<16x32xf32>
    %444 = arith.addf %442, %443 : vector<16x32xf32>
    %445 = arith.addf %388, %404 : vector<4x32xf32>
    %cst_146 = arith.constant dense<0.000000e+00> : vector<4xf32>
    %446 = vector.multi_reduction <add>, %445, %cst_146 [1] : vector<4x32xf32> to vector<4xf32>
    %447 = vector.shape_cast %446 : vector<4xf32> to vector<4x1xf32>
    %cst_147 = arith.constant 3.200000e+01 : f32
    %448 = vector.broadcast %cst_147 : f32 to vector<4x1xf32>
    %449 = arith.divf %447, %448 : vector<4x1xf32>
    %450 = vector.broadcast %449 : vector<4x1xf32> to vector<4x32xf32>
    %451 = arith.subf %445, %450 : vector<4x32xf32>
    %452 = arith.mulf %451, %451 : vector<4x32xf32>
    %cst_148 = arith.constant dense<0.000000e+00> : vector<4xf32>
    %453 = vector.multi_reduction <add>, %452, %cst_148 [1] : vector<4x32xf32> to vector<4xf32>
    %454 = vector.shape_cast %453 : vector<4xf32> to vector<4x1xf32>
    %cst_149 = arith.constant 3.200000e+01 : f32
    %455 = vector.broadcast %cst_149 : f32 to vector<4x1xf32>
    %456 = arith.divf %454, %455 : vector<4x1xf32>
    %457 = vector.broadcast %449 : vector<4x1xf32> to vector<4x32xf32>
    %458 = arith.subf %445, %457 : vector<4x32xf32>
    %cst_150 = arith.constant 9.99999974E-6 : f32
    %459 = vector.broadcast %cst_150 : f32 to vector<4x1xf32>
    %460 = arith.addf %456, %459 : vector<4x1xf32>
    %461 = math.rsqrt %460 : vector<4x1xf32>
    %462 = vector.broadcast %461 : vector<4x1xf32> to vector<4x32xf32>
    %463 = arith.mulf %458, %462 : vector<4x32xf32>
    %464 = vector.broadcast %8 : vector<1x32xf32> to vector<4x32xf32>
    %465 = arith.mulf %463, %464 : vector<4x32xf32>
    %466 = vector.broadcast %9 : vector<1x32xf32> to vector<4x32xf32>
    %467 = arith.addf %465, %466 : vector<4x32xf32>
    %c5_i32 = arith.constant 5 : i32
    %cst_151 = arith.constant dense<0.000000e+00> : vector<4x64xf32>
    %468 = tpu.matmul %467, %6, %cst_151 {dimension_numbers = #tpu.dot_dimension_numbers<[1], [0], [0], [1], [0, 0, 1, 1], [], []>} : vector<4x32xf32>, vector<32x64xf32>, vector<4x64xf32> -> vector<4x64xf32>
    %469 = vector.broadcast %7 : vector<1x64xf32> to vector<4x64xf32>
    %470 = arith.addf %468, %469 : vector<4x64xf32>
    %cst_152 = arith.constant dense<0.000000e+00> : vector<4x16xf32>
    %471 = tpu.matmul %470, %18, %cst_152 {dimension_numbers = #tpu.dot_dimension_numbers<[1], [1], [0], [0], [0, 0, 1, 0], [], []>} : vector<4x64xf32>, vector<16x64xf32>, vector<4x16xf32> -> vector<4x16xf32>
    %472 = arith.addf %471, %72 : vector<4x16xf32>
    %cst_153 = arith.constant dense<0xFF800000> : vector<4xf32>
    %473 = vector.multi_reduction <maximumf>, %472, %cst_153 [1] : vector<4x16xf32> to vector<4xf32>
    %474 = vector.shape_cast %473 : vector<4xf32> to vector<4x1xf32>
    %475 = vector.broadcast %474 : vector<4x1xf32> to vector<4x16xf32>
    %476 = arith.subf %472, %475 : vector<4x16xf32>
    %477 = math.exp %476 : vector<4x16xf32>
    %cst_154 = arith.constant dense<0.000000e+00> : vector<4xf32>
    %478 = vector.multi_reduction <add>, %477, %cst_154 [1] : vector<4x16xf32> to vector<4xf32>
    %479 = vector.shape_cast %478 : vector<4xf32> to vector<4x1xf32>
    %480 = tpu.reciprocal %479 {approx = true} : vector<4x1xf32> -> vector<4x1xf32>
    %481 = vector.broadcast %480 : vector<4x1xf32> to vector<4x16xf32>
    %482 = arith.mulf %477, %481 : vector<4x16xf32>
    %cst_155 = arith.constant dense<0.000000e+00> : vector<4x32xf32>
    %483 = tpu.matmul %482, %3, %cst_155 {dimension_numbers = #tpu.dot_dimension_numbers<[1], [0], [0], [1], [0, 0, 1, 1], [], []>} : vector<4x16xf32>, vector<16x32xf32>, vector<4x32xf32> -> vector<4x32xf32>
    %cst_156 = arith.constant dense<0.000000e+00> : vector<16x4xf32>
    %484 = tpu.matmul %45, %470, %cst_156 {dimension_numbers = #tpu.dot_dimension_numbers<[1], [1], [0], [0], [0, 0, 1, 0], [], []>} : vector<16x64xf32>, vector<4x64xf32>, vector<16x4xf32> -> vector<16x4xf32>
    %485 = arith.mulf %484, %58 : vector<16x4xf32>
    %cst_157 = arith.constant dense<0.000000e+00> : vector<16xf32>
    %486 = vector.multi_reduction <add>, %485, %cst_157 [1] : vector<16x4xf32> to vector<16xf32>
    %487 = vector.shape_cast %486 : vector<16xf32> to vector<16x1xf32>
    %cst_158 = arith.constant 0.000000e+00 : f32
    %488 = vector.broadcast %cst_158 : f32 to vector<16x1xf32>
    %489 = arith.subf %488, %487 : vector<16x1xf32>
    %490 = math.exp %489 : vector<16x1xf32>
    %cst_159 = arith.constant 1.000000e+00 : f32
    %491 = vector.broadcast %cst_159 : f32 to vector<16x1xf32>
    %492 = arith.addf %491, %490 : vector<16x1xf32>
    %493 = tpu.reciprocal %492 {approx = true} : vector<16x1xf32> -> vector<16x1xf32>
    %cst_160 = arith.constant dense<0.000000e+00> : vector<16x32xf32>
    %494 = tpu.matmul %58, %467, %cst_160 {dimension_numbers = #tpu.dot_dimension_numbers<[1], [0], [0], [1], [0, 0, 1, 1], [], []>} : vector<16x4xf32>, vector<4x32xf32>, vector<16x32xf32> -> vector<16x32xf32>
    %cst_161 = arith.constant 1.000000e+00 : f32
    %495 = vector.broadcast %cst_161 : f32 to vector<16x1xf32>
    %496 = arith.subf %495, %493 : vector<16x1xf32>
    %497 = vector.broadcast %496 : vector<16x1xf32> to vector<16x32xf32>
    %498 = arith.mulf %497, %444 : vector<16x32xf32>
    %499 = vector.broadcast %493 : vector<16x1xf32> to vector<16x32xf32>
    %500 = arith.mulf %499, %494 : vector<16x32xf32>
    %501 = arith.addf %498, %500 : vector<16x32xf32>
    %cst_162 = arith.constant dense<0.000000e+00> : vector<16xf32>
    %502 = vector.multi_reduction <add>, %501, %cst_162 [1] : vector<16x32xf32> to vector<16xf32>
    %503 = vector.shape_cast %502 : vector<16xf32> to vector<16x1xf32>
    %cst_163 = arith.constant 3.200000e+01 : f32
    %504 = vector.broadcast %cst_163 : f32 to vector<16x1xf32>
    %505 = arith.divf %503, %504 : vector<16x1xf32>
    %506 = vector.broadcast %505 : vector<16x1xf32> to vector<16x32xf32>
    %507 = arith.subf %501, %506 : vector<16x32xf32>
    %508 = arith.mulf %507, %507 : vector<16x32xf32>
    %cst_164 = arith.constant dense<0.000000e+00> : vector<16xf32>
    %509 = vector.multi_reduction <add>, %508, %cst_164 [1] : vector<16x32xf32> to vector<16xf32>
    %510 = vector.shape_cast %509 : vector<16xf32> to vector<16x1xf32>
    %cst_165 = arith.constant 3.200000e+01 : f32
    %511 = vector.broadcast %cst_165 : f32 to vector<16x1xf32>
    %512 = arith.divf %510, %511 : vector<16x1xf32>
    %513 = vector.broadcast %505 : vector<16x1xf32> to vector<16x32xf32>
    %514 = arith.subf %501, %513 : vector<16x32xf32>
    %cst_166 = arith.constant 9.99999974E-6 : f32
    %515 = vector.broadcast %cst_166 : f32 to vector<16x1xf32>
    %516 = arith.addf %512, %515 : vector<16x1xf32>
    %517 = math.rsqrt %516 : vector<16x1xf32>
    %518 = vector.broadcast %517 : vector<16x1xf32> to vector<16x32xf32>
    %519 = arith.mulf %514, %518 : vector<16x32xf32>
    %520 = vector.broadcast %10 : vector<1x32xf32> to vector<16x32xf32>
    %521 = arith.mulf %519, %520 : vector<16x32xf32>
    %522 = vector.broadcast %11 : vector<1x32xf32> to vector<16x32xf32>
    %523 = arith.addf %521, %522 : vector<16x32xf32>
    %524 = arith.addf %467, %483 : vector<4x32xf32>
    %cst_167 = arith.constant dense<0.000000e+00> : vector<4xf32>
    %525 = vector.multi_reduction <add>, %524, %cst_167 [1] : vector<4x32xf32> to vector<4xf32>
    %526 = vector.shape_cast %525 : vector<4xf32> to vector<4x1xf32>
    %cst_168 = arith.constant 3.200000e+01 : f32
    %527 = vector.broadcast %cst_168 : f32 to vector<4x1xf32>
    %528 = arith.divf %526, %527 : vector<4x1xf32>
    %529 = vector.broadcast %528 : vector<4x1xf32> to vector<4x32xf32>
    %530 = arith.subf %524, %529 : vector<4x32xf32>
    %531 = arith.mulf %530, %530 : vector<4x32xf32>
    %cst_169 = arith.constant dense<0.000000e+00> : vector<4xf32>
    %532 = vector.multi_reduction <add>, %531, %cst_169 [1] : vector<4x32xf32> to vector<4xf32>
    %533 = vector.shape_cast %532 : vector<4xf32> to vector<4x1xf32>
    %cst_170 = arith.constant 3.200000e+01 : f32
    %534 = vector.broadcast %cst_170 : f32 to vector<4x1xf32>
    %535 = arith.divf %533, %534 : vector<4x1xf32>
    %536 = vector.broadcast %528 : vector<4x1xf32> to vector<4x32xf32>
    %537 = arith.subf %524, %536 : vector<4x32xf32>
    %cst_171 = arith.constant 9.99999974E-6 : f32
    %538 = vector.broadcast %cst_171 : f32 to vector<4x1xf32>
    %539 = arith.addf %535, %538 : vector<4x1xf32>
    %540 = math.rsqrt %539 : vector<4x1xf32>
    %541 = vector.broadcast %540 : vector<4x1xf32> to vector<4x32xf32>
    %542 = arith.mulf %537, %541 : vector<4x32xf32>
    %543 = vector.broadcast %8 : vector<1x32xf32> to vector<4x32xf32>
    %544 = arith.mulf %542, %543 : vector<4x32xf32>
    %545 = vector.broadcast %9 : vector<1x32xf32> to vector<4x32xf32>
    %546 = arith.addf %544, %545 : vector<4x32xf32>
    %c6_i32 = arith.constant 6 : i32
    %cst_172 = arith.constant dense<0.000000e+00> : vector<4x64xf32>
    %547 = tpu.matmul %546, %6, %cst_172 {dimension_numbers = #tpu.dot_dimension_numbers<[1], [0], [0], [1], [0, 0, 1, 1], [], []>} : vector<4x32xf32>, vector<32x64xf32>, vector<4x64xf32> -> vector<4x64xf32>
    %548 = vector.broadcast %7 : vector<1x64xf32> to vector<4x64xf32>
    %549 = arith.addf %547, %548 : vector<4x64xf32>
    %cst_173 = arith.constant dense<0.000000e+00> : vector<4x16xf32>
    %550 = tpu.matmul %549, %18, %cst_173 {dimension_numbers = #tpu.dot_dimension_numbers<[1], [1], [0], [0], [0, 0, 1, 0], [], []>} : vector<4x64xf32>, vector<16x64xf32>, vector<4x16xf32> -> vector<4x16xf32>
    %551 = arith.addf %550, %72 : vector<4x16xf32>
    %cst_174 = arith.constant dense<0xFF800000> : vector<4xf32>
    %552 = vector.multi_reduction <maximumf>, %551, %cst_174 [1] : vector<4x16xf32> to vector<4xf32>
    %553 = vector.shape_cast %552 : vector<4xf32> to vector<4x1xf32>
    %554 = vector.broadcast %553 : vector<4x1xf32> to vector<4x16xf32>
    %555 = arith.subf %551, %554 : vector<4x16xf32>
    %556 = math.exp %555 : vector<4x16xf32>
    %cst_175 = arith.constant dense<0.000000e+00> : vector<4xf32>
    %557 = vector.multi_reduction <add>, %556, %cst_175 [1] : vector<4x16xf32> to vector<4xf32>
    %558 = vector.shape_cast %557 : vector<4xf32> to vector<4x1xf32>
    %559 = tpu.reciprocal %558 {approx = true} : vector<4x1xf32> -> vector<4x1xf32>
    %560 = vector.broadcast %559 : vector<4x1xf32> to vector<4x16xf32>
    %561 = arith.mulf %556, %560 : vector<4x16xf32>
    %cst_176 = arith.constant dense<0.000000e+00> : vector<4x32xf32>
    %562 = tpu.matmul %561, %3, %cst_176 {dimension_numbers = #tpu.dot_dimension_numbers<[1], [0], [0], [1], [0, 0, 1, 1], [], []>} : vector<4x16xf32>, vector<16x32xf32>, vector<4x32xf32> -> vector<4x32xf32>
    %cst_177 = arith.constant dense<0.000000e+00> : vector<16x4xf32>
    %563 = tpu.matmul %45, %549, %cst_177 {dimension_numbers = #tpu.dot_dimension_numbers<[1], [1], [0], [0], [0, 0, 1, 0], [], []>} : vector<16x64xf32>, vector<4x64xf32>, vector<16x4xf32> -> vector<16x4xf32>
    %564 = arith.mulf %563, %58 : vector<16x4xf32>
    %cst_178 = arith.constant dense<0.000000e+00> : vector<16xf32>
    %565 = vector.multi_reduction <add>, %564, %cst_178 [1] : vector<16x4xf32> to vector<16xf32>
    %566 = vector.shape_cast %565 : vector<16xf32> to vector<16x1xf32>
    %cst_179 = arith.constant 0.000000e+00 : f32
    %567 = vector.broadcast %cst_179 : f32 to vector<16x1xf32>
    %568 = arith.subf %567, %566 : vector<16x1xf32>
    %569 = math.exp %568 : vector<16x1xf32>
    %cst_180 = arith.constant 1.000000e+00 : f32
    %570 = vector.broadcast %cst_180 : f32 to vector<16x1xf32>
    %571 = arith.addf %570, %569 : vector<16x1xf32>
    %572 = tpu.reciprocal %571 {approx = true} : vector<16x1xf32> -> vector<16x1xf32>
    %cst_181 = arith.constant dense<0.000000e+00> : vector<16x32xf32>
    %573 = tpu.matmul %58, %546, %cst_181 {dimension_numbers = #tpu.dot_dimension_numbers<[1], [0], [0], [1], [0, 0, 1, 1], [], []>} : vector<16x4xf32>, vector<4x32xf32>, vector<16x32xf32> -> vector<16x32xf32>
    %cst_182 = arith.constant 1.000000e+00 : f32
    %574 = vector.broadcast %cst_182 : f32 to vector<16x1xf32>
    %575 = arith.subf %574, %572 : vector<16x1xf32>
    %576 = vector.broadcast %575 : vector<16x1xf32> to vector<16x32xf32>
    %577 = arith.mulf %576, %523 : vector<16x32xf32>
    %578 = vector.broadcast %572 : vector<16x1xf32> to vector<16x32xf32>
    %579 = arith.mulf %578, %573 : vector<16x32xf32>
    %580 = arith.addf %577, %579 : vector<16x32xf32>
    %cst_183 = arith.constant dense<0.000000e+00> : vector<16xf32>
    %581 = vector.multi_reduction <add>, %580, %cst_183 [1] : vector<16x32xf32> to vector<16xf32>
    %582 = vector.shape_cast %581 : vector<16xf32> to vector<16x1xf32>
    %cst_184 = arith.constant 3.200000e+01 : f32
    %583 = vector.broadcast %cst_184 : f32 to vector<16x1xf32>
    %584 = arith.divf %582, %583 : vector<16x1xf32>
    %585 = vector.broadcast %584 : vector<16x1xf32> to vector<16x32xf32>
    %586 = arith.subf %580, %585 : vector<16x32xf32>
    %587 = arith.mulf %586, %586 : vector<16x32xf32>
    %cst_185 = arith.constant dense<0.000000e+00> : vector<16xf32>
    %588 = vector.multi_reduction <add>, %587, %cst_185 [1] : vector<16x32xf32> to vector<16xf32>
    %589 = vector.shape_cast %588 : vector<16xf32> to vector<16x1xf32>
    %cst_186 = arith.constant 3.200000e+01 : f32
    %590 = vector.broadcast %cst_186 : f32 to vector<16x1xf32>
    %591 = arith.divf %589, %590 : vector<16x1xf32>
    %592 = vector.broadcast %584 : vector<16x1xf32> to vector<16x32xf32>
    %593 = arith.subf %580, %592 : vector<16x32xf32>
    %cst_187 = arith.constant 9.99999974E-6 : f32
    %594 = vector.broadcast %cst_187 : f32 to vector<16x1xf32>
    %595 = arith.addf %591, %594 : vector<16x1xf32>
    %596 = math.rsqrt %595 : vector<16x1xf32>
    %597 = vector.broadcast %596 : vector<16x1xf32> to vector<16x32xf32>
    %598 = arith.mulf %593, %597 : vector<16x32xf32>
    %599 = vector.broadcast %10 : vector<1x32xf32> to vector<16x32xf32>
    %600 = arith.mulf %598, %599 : vector<16x32xf32>
    %601 = vector.broadcast %11 : vector<1x32xf32> to vector<16x32xf32>
    %602 = arith.addf %600, %601 : vector<16x32xf32>
    %603 = arith.addf %546, %562 : vector<4x32xf32>
    %cst_188 = arith.constant dense<0.000000e+00> : vector<4xf32>
    %604 = vector.multi_reduction <add>, %603, %cst_188 [1] : vector<4x32xf32> to vector<4xf32>
    %605 = vector.shape_cast %604 : vector<4xf32> to vector<4x1xf32>
    %cst_189 = arith.constant 3.200000e+01 : f32
    %606 = vector.broadcast %cst_189 : f32 to vector<4x1xf32>
    %607 = arith.divf %605, %606 : vector<4x1xf32>
    %608 = vector.broadcast %607 : vector<4x1xf32> to vector<4x32xf32>
    %609 = arith.subf %603, %608 : vector<4x32xf32>
    %610 = arith.mulf %609, %609 : vector<4x32xf32>
    %cst_190 = arith.constant dense<0.000000e+00> : vector<4xf32>
    %611 = vector.multi_reduction <add>, %610, %cst_190 [1] : vector<4x32xf32> to vector<4xf32>
    %612 = vector.shape_cast %611 : vector<4xf32> to vector<4x1xf32>
    %cst_191 = arith.constant 3.200000e+01 : f32
    %613 = vector.broadcast %cst_191 : f32 to vector<4x1xf32>
    %614 = arith.divf %612, %613 : vector<4x1xf32>
    %615 = vector.broadcast %607 : vector<4x1xf32> to vector<4x32xf32>
    %616 = arith.subf %603, %615 : vector<4x32xf32>
    %cst_192 = arith.constant 9.99999974E-6 : f32
    %617 = vector.broadcast %cst_192 : f32 to vector<4x1xf32>
    %618 = arith.addf %614, %617 : vector<4x1xf32>
    %619 = math.rsqrt %618 : vector<4x1xf32>
    %620 = vector.broadcast %619 : vector<4x1xf32> to vector<4x32xf32>
    %621 = arith.mulf %616, %620 : vector<4x32xf32>
    %622 = vector.broadcast %8 : vector<1x32xf32> to vector<4x32xf32>
    %623 = arith.mulf %621, %622 : vector<4x32xf32>
    %624 = vector.broadcast %9 : vector<1x32xf32> to vector<4x32xf32>
    %625 = arith.addf %623, %624 : vector<4x32xf32>
    %c7_i32 = arith.constant 7 : i32
    %cst_193 = arith.constant dense<0.000000e+00> : vector<4x64xf32>
    %626 = tpu.matmul %625, %6, %cst_193 {dimension_numbers = #tpu.dot_dimension_numbers<[1], [0], [0], [1], [0, 0, 1, 1], [], []>} : vector<4x32xf32>, vector<32x64xf32>, vector<4x64xf32> -> vector<4x64xf32>
    %627 = vector.broadcast %7 : vector<1x64xf32> to vector<4x64xf32>
    %628 = arith.addf %626, %627 : vector<4x64xf32>
    %cst_194 = arith.constant dense<0.000000e+00> : vector<4x16xf32>
    %629 = tpu.matmul %628, %18, %cst_194 {dimension_numbers = #tpu.dot_dimension_numbers<[1], [1], [0], [0], [0, 0, 1, 0], [], []>} : vector<4x64xf32>, vector<16x64xf32>, vector<4x16xf32> -> vector<4x16xf32>
    %630 = arith.addf %629, %72 : vector<4x16xf32>
    %cst_195 = arith.constant dense<0xFF800000> : vector<4xf32>
    %631 = vector.multi_reduction <maximumf>, %630, %cst_195 [1] : vector<4x16xf32> to vector<4xf32>
    %632 = vector.shape_cast %631 : vector<4xf32> to vector<4x1xf32>
    %633 = vector.broadcast %632 : vector<4x1xf32> to vector<4x16xf32>
    %634 = arith.subf %630, %633 : vector<4x16xf32>
    %635 = math.exp %634 : vector<4x16xf32>
    %cst_196 = arith.constant dense<0.000000e+00> : vector<4xf32>
    %636 = vector.multi_reduction <add>, %635, %cst_196 [1] : vector<4x16xf32> to vector<4xf32>
    %637 = vector.shape_cast %636 : vector<4xf32> to vector<4x1xf32>
    %638 = tpu.reciprocal %637 {approx = true} : vector<4x1xf32> -> vector<4x1xf32>
    %639 = vector.broadcast %638 : vector<4x1xf32> to vector<4x16xf32>
    %640 = arith.mulf %635, %639 : vector<4x16xf32>
    %cst_197 = arith.constant dense<0.000000e+00> : vector<4x32xf32>
    %641 = tpu.matmul %640, %3, %cst_197 {dimension_numbers = #tpu.dot_dimension_numbers<[1], [0], [0], [1], [0, 0, 1, 1], [], []>} : vector<4x16xf32>, vector<16x32xf32>, vector<4x32xf32> -> vector<4x32xf32>
    %cst_198 = arith.constant dense<0.000000e+00> : vector<16x4xf32>
    %642 = tpu.matmul %45, %628, %cst_198 {dimension_numbers = #tpu.dot_dimension_numbers<[1], [1], [0], [0], [0, 0, 1, 0], [], []>} : vector<16x64xf32>, vector<4x64xf32>, vector<16x4xf32> -> vector<16x4xf32>
    %643 = arith.mulf %642, %58 : vector<16x4xf32>
    %cst_199 = arith.constant dense<0.000000e+00> : vector<16xf32>
    %644 = vector.multi_reduction <add>, %643, %cst_199 [1] : vector<16x4xf32> to vector<16xf32>
    %645 = vector.shape_cast %644 : vector<16xf32> to vector<16x1xf32>
    %cst_200 = arith.constant 0.000000e+00 : f32
    %646 = vector.broadcast %cst_200 : f32 to vector<16x1xf32>
    %647 = arith.subf %646, %645 : vector<16x1xf32>
    %648 = math.exp %647 : vector<16x1xf32>
    %cst_201 = arith.constant 1.000000e+00 : f32
    %649 = vector.broadcast %cst_201 : f32 to vector<16x1xf32>
    %650 = arith.addf %649, %648 : vector<16x1xf32>
    %651 = tpu.reciprocal %650 {approx = true} : vector<16x1xf32> -> vector<16x1xf32>
    %cst_202 = arith.constant dense<0.000000e+00> : vector<16x32xf32>
    %652 = tpu.matmul %58, %625, %cst_202 {dimension_numbers = #tpu.dot_dimension_numbers<[1], [0], [0], [1], [0, 0, 1, 1], [], []>} : vector<16x4xf32>, vector<4x32xf32>, vector<16x32xf32> -> vector<16x32xf32>
    %cst_203 = arith.constant 1.000000e+00 : f32
    %653 = vector.broadcast %cst_203 : f32 to vector<16x1xf32>
    %654 = arith.subf %653, %651 : vector<16x1xf32>
    %655 = vector.broadcast %654 : vector<16x1xf32> to vector<16x32xf32>
    %656 = arith.mulf %655, %602 : vector<16x32xf32>
    %657 = vector.broadcast %651 : vector<16x1xf32> to vector<16x32xf32>
    %658 = arith.mulf %657, %652 : vector<16x32xf32>
    %659 = arith.addf %656, %658 : vector<16x32xf32>
    %cst_204 = arith.constant dense<0.000000e+00> : vector<16xf32>
    %660 = vector.multi_reduction <add>, %659, %cst_204 [1] : vector<16x32xf32> to vector<16xf32>
    %661 = vector.shape_cast %660 : vector<16xf32> to vector<16x1xf32>
    %cst_205 = arith.constant 3.200000e+01 : f32
    %662 = vector.broadcast %cst_205 : f32 to vector<16x1xf32>
    %663 = arith.divf %661, %662 : vector<16x1xf32>
    %664 = vector.broadcast %663 : vector<16x1xf32> to vector<16x32xf32>
    %665 = arith.subf %659, %664 : vector<16x32xf32>
    %666 = arith.mulf %665, %665 : vector<16x32xf32>
    %cst_206 = arith.constant dense<0.000000e+00> : vector<16xf32>
    %667 = vector.multi_reduction <add>, %666, %cst_206 [1] : vector<16x32xf32> to vector<16xf32>
    %668 = vector.shape_cast %667 : vector<16xf32> to vector<16x1xf32>
    %cst_207 = arith.constant 3.200000e+01 : f32
    %669 = vector.broadcast %cst_207 : f32 to vector<16x1xf32>
    %670 = arith.divf %668, %669 : vector<16x1xf32>
    %671 = vector.broadcast %663 : vector<16x1xf32> to vector<16x32xf32>
    %672 = arith.subf %659, %671 : vector<16x32xf32>
    %cst_208 = arith.constant 9.99999974E-6 : f32
    %673 = vector.broadcast %cst_208 : f32 to vector<16x1xf32>
    %674 = arith.addf %670, %673 : vector<16x1xf32>
    %675 = math.rsqrt %674 : vector<16x1xf32>
    %676 = vector.broadcast %675 : vector<16x1xf32> to vector<16x32xf32>
    %677 = arith.mulf %672, %676 : vector<16x32xf32>
    %678 = vector.broadcast %10 : vector<1x32xf32> to vector<16x32xf32>
    %679 = arith.mulf %677, %678 : vector<16x32xf32>
    %680 = vector.broadcast %11 : vector<1x32xf32> to vector<16x32xf32>
    %681 = arith.addf %679, %680 : vector<16x32xf32>
    %682 = arith.addf %625, %641 : vector<4x32xf32>
    %cst_209 = arith.constant dense<0.000000e+00> : vector<4xf32>
    %683 = vector.multi_reduction <add>, %682, %cst_209 [1] : vector<4x32xf32> to vector<4xf32>
    %684 = vector.shape_cast %683 : vector<4xf32> to vector<4x1xf32>
    %cst_210 = arith.constant 3.200000e+01 : f32
    %685 = vector.broadcast %cst_210 : f32 to vector<4x1xf32>
    %686 = arith.divf %684, %685 : vector<4x1xf32>
    %687 = vector.broadcast %686 : vector<4x1xf32> to vector<4x32xf32>
    %688 = arith.subf %682, %687 : vector<4x32xf32>
    %689 = arith.mulf %688, %688 : vector<4x32xf32>
    %cst_211 = arith.constant dense<0.000000e+00> : vector<4xf32>
    %690 = vector.multi_reduction <add>, %689, %cst_211 [1] : vector<4x32xf32> to vector<4xf32>
    %691 = vector.shape_cast %690 : vector<4xf32> to vector<4x1xf32>
    %cst_212 = arith.constant 3.200000e+01 : f32
    %692 = vector.broadcast %cst_212 : f32 to vector<4x1xf32>
    %693 = arith.divf %691, %692 : vector<4x1xf32>
    %694 = vector.broadcast %686 : vector<4x1xf32> to vector<4x32xf32>
    %695 = arith.subf %682, %694 : vector<4x32xf32>
    %cst_213 = arith.constant 9.99999974E-6 : f32
    %696 = vector.broadcast %cst_213 : f32 to vector<4x1xf32>
    %697 = arith.addf %693, %696 : vector<4x1xf32>
    %698 = math.rsqrt %697 : vector<4x1xf32>
    %699 = vector.broadcast %698 : vector<4x1xf32> to vector<4x32xf32>
    %700 = arith.mulf %695, %699 : vector<4x32xf32>
    %701 = vector.broadcast %8 : vector<1x32xf32> to vector<4x32xf32>
    %702 = arith.mulf %700, %701 : vector<4x32xf32>
    %703 = vector.broadcast %9 : vector<1x32xf32> to vector<4x32xf32>
    %704 = arith.addf %702, %703 : vector<4x32xf32>
    %c0_214 = arith.constant 0 : index
    %c0_215 = arith.constant 0 : index
    %c0_216 = arith.constant 0 : index
    %705 = vector.load %arg17[%c0_214, %c0_215, %c0_216] : memref<1x4x32xf32, #tpu.memory_space<vmem>>, vector<1x4x32xf32>
    %706 = vector.shape_cast %705 : vector<1x4x32xf32> to vector<4x32xf32>
    %707 = vector.shape_cast %704 : vector<4x32xf32> to vector<1x4x32xf32>
    tpu.vector_store %arg17[%c0_214, %c0_215, %c0_216], %707 {strides = array<i32>} : memref<1x4x32xf32, #tpu.memory_space<vmem>>, vector<1x4x32xf32>,
    %c0_217 = arith.constant 0 : index
    %c0_218 = arith.constant 0 : index
    %c0_219 = arith.constant 0 : index
    %708 = vector.load %arg18[%c0_217, %c0_218, %c0_219] : memref<1x16x32xf32, #tpu.memory_space<vmem>>, vector<1x16x32xf32>
    %709 = vector.shape_cast %708 : vector<1x16x32xf32> to vector<16x32xf32>
    %710 = vector.shape_cast %681 : vector<16x32xf32> to vector<1x16x32xf32>
    tpu.vector_store %arg18[%c0_217, %c0_218, %c0_219], %710 {strides = array<i32>} : memref<1x16x32xf32, #tpu.memory_space<vmem>>, vector<1x16x32xf32>,
    %c0_220 = arith.constant 0 : index
    %c0_221 = arith.constant 0 : index
    %711 = vector.load %arg15[%c0_220, %c0_221] : memref<32x16xf32, #tpu.memory_space<vmem>>, vector<32x16xf32>
    %cst_222 = arith.constant dense<0.000000e+00> : vector<4x16xf32>
    %712 = tpu.matmul %704, %711, %cst_222 {dimension_numbers = #tpu.dot_dimension_numbers<[1], [0], [0], [1], [0, 0, 1, 1], [], []>} : vector<4x32xf32>, vector<32x16xf32>, vector<4x16xf32> -> vector<4x16xf32>
    %c0_223 = arith.constant 0 : index
    %c0_224 = arith.constant 0 : index
    %713 = vector.load %arg16[%c0_223, %c0_224] : memref<1x16xf32, #tpu.memory_space<vmem>>, vector<1x16xf32>
    %714 = vector.broadcast %713 : vector<1x16xf32> to vector<4x16xf32>
    %715 = arith.addf %712, %714 : vector<4x16xf32>
    %c0_225 = arith.constant 0 : index
    %c0_226 = arith.constant 0 : index
    %c0_227 = arith.constant 0 : index
    %716 = vector.load %arg19[%c0_225, %c0_226, %c0_227] : memref<1x4x16xf32, #tpu.memory_space<vmem>>, vector<1x4x16xf32>
    %717 = vector.shape_cast %716 : vector<1x4x16xf32> to vector<4x16xf32>
    %718 = vector.shape_cast %715 : vector<4x16xf32> to vector<1x4x16xf32>
    tpu.vector_store %arg19[%c0_225, %c0_226, %c0_227], %718 {strides = array<i32>} : memref<1x4x16xf32, #tpu.memory_space<vmem>>, vector<1x4x16xf32>,
    return
  }
  func.func @transform_0(%arg0: i32) -> (i32, i32, i32) {
    %c0_i32 = arith.constant 0 : i32
    %c0_i32_0 = arith.constant 0 : i32
    %c0_i32_1 = arith.constant 0 : i32
    return %arg0, %c0_i32, %c0_i32_0 : i32, i32, i32
  }
  func.func @transform_1(%arg0: i32) -> (i32, i32, i32) {
    %c0_i32 = arith.constant 0 : i32
    %c0_i32_0 = arith.constant 0 : i32
    %c0_i32_1 = arith.constant 0 : i32
    return %arg0, %c0_i32, %c0_i32_0 : i32, i32, i32
  }
  func.func @transform_2(%arg0: i32) -> (i32, i32, i32) {
    %c0_i32 = arith.constant 0 : i32
    %c0_i32_0 = arith.constant 0 : i32
    %c0_i32_1 = arith.constant 0 : i32
    return %arg0, %c0_i32, %c0_i32_0 : i32, i32, i32
  }
  func.func @transform_3(%arg0: i32) -> (i32, i32) {
    %c0_i32 = arith.constant 0 : i32
    %c0_i32_0 = arith.constant 0 : i32
    %c0_i32_1 = arith.constant 0 : i32
    return %c0_i32, %c0_i32_0 : i32, i32
  }
  func.func @transform_4(%arg0: i32) -> (i32, i32) {
    %c0_i32 = arith.constant 0 : i32
    %c0_i32_0 = arith.constant 0 : i32
    %c0_i32_1 = arith.constant 0 : i32
    return %c0_i32, %c0_i32_0 : i32, i32
  }
  func.func @transform_5(%arg0: i32) -> (i32, i32) {
    %c0_i32 = arith.constant 0 : i32
    %c0_i32_0 = arith.constant 0 : i32
    %c0_i32_1 = arith.constant 0 : i32
    return %c0_i32, %c0_i32_0 : i32, i32
  }
  func.func @transform_6(%arg0: i32) -> (i32, i32) {
    %c0_i32 = arith.constant 0 : i32
    %c0_i32_0 = arith.constant 0 : i32
    %c0_i32_1 = arith.constant 0 : i32
    return %c0_i32, %c0_i32_0 : i32, i32
  }
  func.func @transform_7(%arg0: i32) -> (i32, i32) {
    %c0_i32 = arith.constant 0 : i32
    %c0_i32_0 = arith.constant 0 : i32
    %c0_i32_1 = arith.constant 0 : i32
    return %c0_i32, %c0_i32_0 : i32, i32
  }
  func.func @transform_8(%arg0: i32) -> (i32, i32) {
    %c0_i32 = arith.constant 0 : i32
    %c0_i32_0 = arith.constant 0 : i32
    %c0_i32_1 = arith.constant 0 : i32
    return %c0_i32, %c0_i32_0 : i32, i32
  }
  func.func @transform_9(%arg0: i32) -> (i32, i32) {
    %c0_i32 = arith.constant 0 : i32
    %c0_i32_0 = arith.constant 0 : i32
    %c0_i32_1 = arith.constant 0 : i32
    return %c0_i32, %c0_i32_0 : i32, i32
  }
  func.func @transform_10(%arg0: i32) -> (i32, i32) {
    %c0_i32 = arith.constant 0 : i32
    %c0_i32_0 = arith.constant 0 : i32
    %c0_i32_1 = arith.constant 0 : i32
    return %c0_i32, %c0_i32_0 : i32, i32
  }
  func.func @transform_11(%arg0: i32) -> (i32, i32) {
    %c0_i32 = arith.constant 0 : i32
    %c0_i32_0 = arith.constant 0 : i32
    %c0_i32_1 = arith.constant 0 : i32
    return %c0_i32, %c0_i32_0 : i32, i32
  }
  func.func @transform_12(%arg0: i32) -> (i32, i32) {
    %c0_i32 = arith.constant 0 : i32
    %c0_i32_0 = arith.constant 0 : i32
    %c0_i32_1 = arith.constant 0 : i32
    return %c0_i32, %c0_i32_0 : i32, i32
  }
  func.func @transform_13(%arg0: i32) -> (i32, i32) {
    %c0_i32 = arith.constant 0 : i32
    %c0_i32_0 = arith.constant 0 : i32
    %c0_i32_1 = arith.constant 0 : i32
    return %c0_i32, %c0_i32_0 : i32, i32
  }
  func.func @transform_14(%arg0: i32) -> (i32, i32) {
    %c0_i32 = arith.constant 0 : i32
    %c0_i32_0 = arith.constant 0 : i32
    %c0_i32_1 = arith.constant 0 : i32
    return %c0_i32, %c0_i32_0 : i32, i32
  }
  func.func @transform_15(%arg0: i32) -> (i32, i32) {
    %c0_i32 = arith.constant 0 : i32
    %c0_i32_0 = arith.constant 0 : i32
    %c0_i32_1 = arith.constant 0 : i32
    return %c0_i32, %c0_i32_0 : i32, i32
  }
  func.func @transform_16(%arg0: i32) -> (i32, i32, i32) {
    %c0_i32 = arith.constant 0 : i32
    %c0_i32_0 = arith.constant 0 : i32
    %c0_i32_1 = arith.constant 0 : i32
    return %arg0, %c0_i32, %c0_i32_0 : i32, i32, i32
  }
  func.func @transform_17(%arg0: i32) -> (i32, i32, i32) {
    %c0_i32 = arith.constant 0 : i32
    %c0_i32_0 = arith.constant 0 : i32
    %c0_i32_1 = arith.constant 0 : i32
    return %arg0, %c0_i32, %c0_i32_0 : i32, i32, i32
  }
  func.func @transform_18(%arg0: i32) -> (i32, i32, i32) {
    %c0_i32 = arith.constant 0 : i32
    %c0_i32_0 = arith.constant 0 : i32
    %c0_i32_1 = arith.constant 0 : i32
    return %arg0, %c0_i32, %c0_i32_0 : i32, i32, i32
  }
}

</mosaic_0001>

<bundles_post_ra>
// kernel: tpu_custom_call.1
= control target key start
LH: loop header
LB: loop body
LE: loop exit
PB: predicated region body
PF: predicated region fallthrough
CT: control target
= control target key end

     0   :  { %s3531_s0 = inlined_call_operand.hbm [shape: f32[1,4,32], index: 0, kind: input, shape index: {}]   ;;  %s3532_s1 = inlined_call_operand.vmem [shape: f32[1,16,32], index: 1, kind: input, shape index: {}]   ;;  %s3533_s2 = inlined_call_operand.hbm [shape: f32[1,16,32], index: 2, kind: input, shape index: {}]   ;;  %s3534_s3 = inlined_call_operand.hbm [shape: f32[4,32], index: 3, kind: input, shape index: {}]   ;;  %s3535_s4 = inlined_call_operand.vmem [shape: f32[32,64], index: 4, kind: input, shape index: {}]   ;;  %s3536_s5 = inlined_call_operand.vmem [shape: f32[1,64], index: 5, kind: input, shape index: {}]   ;;  %s3537_s6 = inlined_call_operand.hbm [shape: f32[32,64], index: 6, kind: input, shape index: {}]   ;;  %s3538_s7 = inlined_call_operand.vmem [shape: f32[1,64], index: 7, kind: input, shape index: {}]   ;;  %s3539_s8 = inlined_call_operand.hbm [shape: f32[32,64], index: 8, kind: input, shape index: {}]   ;;  %s3540_s9 = inlined_call_operand.vmem [shape: f32[1,64], index: 9, kind: input, shape index: {}]   ;;  %s3541_s10 = inlined_call_operand.vmem [shape: f32[1,32], index: 10, kind: input, shape index: {}]   ;;  %s3542_s11 = inlined_call_operand.vmem [shape: f32[1,32], index: 11, kind: input, shape index: {}]   ;;  %s3543_s12 = inlined_call_operand.vmem [shape: f32[1,32], index: 12, kind: input, shape index: {}]   ;;  %s3544_s13 = inlined_call_operand.vmem [shape: f32[1,32], index: 13, kind: input, shape index: {}]   ;;  %s3545_s14 = inlined_call_operand.vmem [shape: f32[32,16], index: 14, kind: input, shape index: {}]   ;;  %s3546_s15 = inlined_call_operand.vmem [shape: f32[1,16], index: 15, kind: input, shape index: {}]   ;;  %s3547_s16 = inlined_call_operand.hbm [shape: f32[1,4,32], index: 16, kind: output, shape index: {0}]   ;;  %s3548_s17 = inlined_call_operand.hbm [shape: f32[1,16,32], index: 17, kind: output, shape index: {1}]   ;;  %s3549_s18 = inlined_call_operand.hbm [shape: f32[1,4,16], index: 18, kind: output, shape index: {2}]  }
   0x1   :  { %3551 = sst [smem:[#allocation20_spill]] %s3531_s0 }
   0x2   :  { %3552 = sst [smem:[#allocation21_spill]] %s3532_s1 }
   0x3   :  { %3553 = sst [smem:[#allocation22_spill]] %s3533_s2 }
   0x4   :  { %24 = vsyncpa [#allocation3], 0 }
   0x5   :  { %25 = vsyncpa [#allocation6], 0 }
   0x6   :  { %26 = vsyncpa [#allocation9], 0 }
   0x7   :  { %27 = vsyncpa [#allocation4], 0  ;;  %s3554_s29 = sld [smem:[#allocation22_spill]] }
   0xd   :  { %s46_s30 = sshll.u32 %s3554_s29, 4  ;;  %s47_s30 = int_to_ptr.hbm [resolvable:$true] %s46_s30 }
   0xe   :  { %28 = vsyncpa [#allocation13], 0  ;;  %s2722_s0 = smov [#allocation5]   ;;  %s74_s21 = sshll.u32 %s3537_s6, 4  ;;  %s75_s21 = int_to_ptr.hbm [resolvable:$true] %s74_s21 }
   0xf   :  { %s48_s19 = sshll.u32 %s2722_s0, 4  ;;  %s2723_s22 = smov 128   ;;  %s49_s19 = int_to_ptr.vmem [resolvable:$true] %s48_s19 }
  0x10   :  { %s2724_s2 = smov 8   ;;  %s2725_s23 = smov [#allocation8]  }
  0x11   :  { %54 = dma.hbm_to_vmem [thread:$0]  %s47_s30, 256, %s49_s19, [#allocation6], %s2723_s22, %s2723_s22, %s2724_s2  }
  0x12   :  { %s76_s24 = sshll.u32 %s2725_s23, 4  ;;  %s3555_s27 = sld [smem:[#allocation20_spill]]  ;;  %s77_s24 = int_to_ptr.vmem [resolvable:$true] %s76_s24 }
  0x13   :  { %82 = dma.hbm_to_vmem [thread:$0]  %s75_s21, 512, %s77_s24, [#allocation9], %s2723_s22, %s2723_s22, %s2724_s2  }
  0x14   :  { %s60_s0 = sshll.u32 %s3534_s3, 4  ;;  %s2726_s1 = smov [#allocation2]   ;;  %s61_s0 = int_to_ptr.hbm [resolvable:$true] %s60_s0 }
  0x15   :  { %s36_s20 = sshll.u32 %s2726_s1, 4  ;;  %s2727_s30 = smov [#allocation7]   ;;  %s37_s20 = int_to_ptr.vmem [resolvable:$true] %s36_s20 }
  0x16   :  { %s62_s19 = sshll.u32 %s2727_s30, 4  ;;  %s89_s26 = sshll.u32 %s3539_s8, 4  ;;  %s63_s19 = int_to_ptr.vmem [resolvable:$true] %s62_s19  ;;  %s90_s26 = int_to_ptr.hbm [resolvable:$true] %s89_s26 }
  0x17   :  { %65 = dma.hbm_to_vmem [thread:$0]  %s61_s0, 64, %s63_s19, [#allocation6]  }
  0x18   :  { %s34_s28 = sshll.u32 %s3555_s27, 4  ;;  %s2728_s27 = smov [#allocation10]   ;;  %s35_s28 = int_to_ptr.hbm [resolvable:$true] %s34_s28 }
  0x19   :  { %39 = dma.hbm_to_vmem [thread:$0]  %s35_s28, 64, %s37_s20, [#allocation3]  }
  0x1a   :  { %s91_s21 = sshll.u32 %s2728_s27, 4  ;;  %s92_s21 = int_to_ptr.vmem [resolvable:$true] %s91_s21 }
  0x1b   :  { %97 = dma.hbm_to_vmem [thread:$0]  %s90_s26, 512, %s92_s21, [#allocation9], %s2723_s22, %s2723_s22, %s2724_s2  }
  0x1c   :  { %2712 = dma.done.wait [#allocation3], 64  }
  0x1d   :  { %2713 = vsyncadd [#allocation3], 4294967232 }
  0x1e   :  { %2714 = dma.done.wait [#allocation6], 320  }
  0x1f   :  { %2715 = vsyncadd [#allocation6], 4294966976 }
  0x20   :  { %2716 = dma.done.wait [#allocation9], 1024  }
  0x21   :  { %2717 = vsyncadd [#allocation9], 4294966272  ;;  %v149_v0 = vld [vmem:[#allocation8 + $0x18] sm:$0xff]  ;;  %v148_v1 = vld [vmem:[#allocation8 + $0x10] sm:$0xff]  ;;  %s3556_s0 = sld [smem:[#allocation21_spill]]  ;;  %vm154_vm0 = vcmask 261120   ;;  %v219_v30 = vlaneseq }
  0x22   :  { %173 = vmatpush.msra.mxu0 %v149_v0  ;;  %v147_v2 = vld [vmem:[#allocation8 + $0x8] sm:$0xff]  ;;  %v2857_v3 = vld [vmem:[%s3535_s4 + $0x18] sm:$0xff]  ;;  %v2863_v5 = vld [vmem:[%s3535_s4 + $0x10] sm:$0xff]  ;;  %vm254_vm1 = vcmask 1043456   ;;  %vm327_vm2 = vcmask 523264   ;;  %vm357_vm6 = vcmask 125952  }
  0x23   :  { %v146_v4 = vld [vmem:[#allocation8] sm:$0xff]  ;;  %319 = vmatpush.msra.mxu3 %v2857_v3  ;;  %v190_v6 = vld [vmem:[#allocation10 + $0x18] sm:$0xff]  ;;  %v2873_v8 = vld [vmem:[%s3535_s4 + $0x8] sm:$0xff]  ;;  %v220_v31 = vshrl.u32 %v219_v30, 7  ;;  %v2938_v33 = vand.u32 127, %v219_v30  ;;  %vm369_vm7 = vcmask 130048  }
  0x24   :  { %174 = vmatpush.msra.mxu0 %v148_v1  ;;  %210 = vmatpush.msra.mxu1 %v190_v6  ;;  %v189_v9 = vld [vmem:[#allocation10 + $0x10] sm:$0xff]  ;;  %v2879_v10 = vld [vmem:[%s3535_s4] sm:$0xff]  ;;  %v187_v13 = vld [vmem:[#allocation10] sm:$0xff]  ;;  %v2729_v36 = vmov -1e+30   ;;  %vm541_vm8 = vcmask 257024  }
  0x25   :  { %320 = vmatpush.msra.mxu3 %v2863_v5  ;;  %v2881_v11 = vld [vmem:[#allocation2] sm:$0xf]  ;;  %v186_v14 = vld [vmem:[#allocation7] sm:$0xf]  ;;  %v296_v32 = vadd.s32 1, %v220_v31  ;;  %v294_v34 = vmul.u32 4, %v220_v31  ;;  %v222_v52 = vcvt.s32.f32 %v220_v31  ;;  %v226_v60 = vcvt.s32.f32 %v2938_v33 }
  0x26   :  { %v188_v12 = vld [vmem:[#allocation10 + $0x8] sm:$0xff]  ;;  %175 = vmatpush.msra.mxu0 %v147_v2  ;;  %211 = vmatpush.msra.mxu1 %v189_v9  ;;  %v2730_v54 = vmov 32.0   ;;  %v281_v57 = vmul.u32 4, %v2938_v33  ;;  %v284_v58 = vadd.s32 1, %v2938_v33  ;;  %v221_v59 = vadd.s32 8, %v220_v31  ;;  %s2203_s6 = sshll.u32 %s3547_s16, 4  ;;  %s2204_s6 = int_to_ptr.hbm [resolvable:$true] %s2203_s6 }
  0x27   :  { %v2868_v7 = vld [vmem:[%s3556_s0] sm:$0xff]  ;;  %321 = vmatpush.msra.mxu3 %v2873_v8  ;;  %v2890_v15 = vld [vmem:[%s3556_s0 + $0x8] sm:$0xff]  ;;  %v297_v35 = vmul.u32 4, %v296_v32  ;;  %vm295_vm3 = vcmp.ge.s32.totalorder %v2938_v33, %v294_v34  ;;  %v227_v53 = vadd.f32 0.5, %v222_v52  ;;  %vm247_vm14 = vcmask 31744   ;;  %s2732_s29 = smov [#allocation11]  }
  0x28   :  { %176 = vmatpush.msra.mxu0 %v146_v4  ;;  %212 = vmatpush.msra.mxu1 %v188_v12  ;;  %v2362_v16 = vld [vmem:[%s3540_s9] ss:$0 sm:$0xff]  ;;  %vm282_vm9 = vcmp.ge.s32.totalorder %v220_v31, %v281_v57  ;;  %v285_v63 = vmul.u32 4, %v284_v58  ;;  %vm2953_vm10 = vcmp.ge.s32.totalorder %v221_v59, %v281_v57  ;;  %v2731_v9 = vmov 0.0   ;;  %s2201_s0 = sshll.u32 %s2732_s29, 4  ;;  %s2733_s16 = smov [#allocation12]   ;;  %s2202_s0 = int_to_ptr.vmem [resolvable:$true] %s2201_s0 }
  0x29   :  { %2248 = vmatmul.msk.f32.vlgmr.msra.gmra.mxu0 %vm154_vm0, %v2868_v7  ;;  %322 = vmatpush.msra.mxu3 %v2879_v10  ;;  %v2911_v20 = vld [vmem:[%s3536_s5] ss:$0 sm:$0xff]  ;;  %vm298_vm4 = vcmp.lt.s32.totalorder %v2938_v33, %v297_v35  ;;  %v229_v55 = vmul.f32 0.25, %v227_v53  ;;  %s2211_s1 = sshll.u32 %s2733_s16, 4  ;;  %s2213_s19 = sshll.u32 %s3548_s17, 4  ;;  %s2212_s1 = int_to_ptr.vmem [resolvable:$true] %s2211_s1  ;;  %s2214_s19 = int_to_ptr.hbm [resolvable:$true] %s2213_s19 }
  0x2a   :  { %2258 = vmatmul.msk.f32.vlgmr.msra.gmra.mxu3 %vm154_vm0, %v2881_v11  ;;  %213 = vmatpush.msra.mxu1 %v187_v13  ;;  %v2361_v22 = vld [vmem:[%s3538_s7] ss:$0 sm:$0xff]  ;;  %vm299_vm5 = vmand %vm295_vm3, %vm298_vm4  ;;  %vm286_vm11 = vcmp.lt.s32.totalorder %v220_v31, %v285_v63  ;;  %vm2957_vm12 = vcmp.lt.s32.totalorder %v221_v59, %v285_v63  ;;  %s2734_s23 = smov [#allocation14]   ;;  %s2227_s4 = sshll.u32 %s3549_s18, 4  ;;  %s2228_s4 = int_to_ptr.hbm [resolvable:$true] %s2227_s4 }
  0x2b   :  { %2250 = vmatmul.msk.f32.vlgmr.msra.gmra.mxu1 %vm154_vm0, %v186_v14  ;;  %387 = vmatpush.msrb.mxu3 %v2890_v15  ;;  %v2942_v37 = vsel %vm299_vm5, 0.0, %v2729_v36  ;;  %v231_v56 = vfloor.f32 %v229_v55  ;;  %vm288_vm13 = vmand %vm282_vm9, %vm286_vm11 }
  0x2c   :  { %2266 = vmatpush.msk.msrb.mxu0 %vm254_vm1, %v2881_v11  ;;  %vm289_vm15 = vmand %vm2953_vm10, %vm2957_vm12  ;;  %v2966_v12 = vsel %vm288_vm13, 1.0, %v2731_v9 }
  0x2d   :  { %388 = vmatpush.msrb.mxu3 %v2868_v7  ;;  %v233_v61 = vmul.f32 4.0, %v231_v56 }
  0x2e   :  { %814 = vmatpush.msra.mxu0 %v2857_v3 }
  0x2f   :  { %v235_v0 = vsub.f32 %v222_v52, %v233_v61 }
  0x30   :  { %815 = vmatpush.msra.mxu0 %v2863_v5 }
  0x31   :  { %2249 = vmatmul.msk.f32.gmra.mxu0 %vm154_vm0, %v2890_v15  ;;  %v237_v6 = vsub.f32 %v235_v0, %v226_v60 }
  0x32   :  { %816 = vmatpush.msra.mxu0 %v2873_v8 }
  0x33   :  { %v239_v13 = vand.u32 2147483647, %v237_v6 }
  0x34   :  { %817 = vmatpush.msra.mxu0 %v2879_v10 }
  0x35   :  { %vm241_vm3 = vcmp.lt.f32.partialorder %v239_v13, 0.5 }
  0x39   :  { %2267 = vmatmul.msk.f32.vlgmr.msrb.gmra.mxu0 %vm247_vm14, %v2966_v12 }
  0x3a   :  { %873 = vmatpush.msrb.mxu0 %v2890_v15 }
  0x3c   :  { %874 = vmatpush.msrb.mxu0 %v2868_v7 }
  0xa6   :  { %v178_v17 = vpop.f32.mrf.mxu0 }
  0xa7   :  { %v179_v27 = vadd.f32 %v2361_v22, %v178_v17 }
  0xa8   :  { %v215_v18 = vpop.f32.mrf.mxu1 }
  0xa9   :  { %v216_v19 = vadd.f32 %v2362_v16, %v215_v18  ;;  %v2925_v29 = vmul.f32 0.17677669, %v179_v27  ;;  %v2251_v16 = vsel %vm241_vm3, 1.0, %v2731_v9 }
  0xab   :  { %v218_v21 = vmul.f32 0.17677669, %v216_v19 }
  0xad   :  { %v324_v23 = vpop.f32.mrf.mxu3  ;;  %2253 = vmatpush.msk.msra.mxu2 %vm254_vm1, %v218_v21 }
  0xae   :  { %v181_v24 = vpop.f32.mrf.mxu0  ;;  %v325_v25 = vadd.f32 %v2911_v20, %v324_v23  ;;  %2254 = vmatmul.msk.f32.vlgmr.msra.gmra.mxu2 %vm247_vm14, %v2251_v16 }
  0xaf   :  { %v182_v26 = vadd.f32 %v2361_v22, %v181_v24 }
  0xb0   :  { %2263 = vmatpush.xpose.msk.msrb.mxu2 %vm327_vm2, %v325_v25 }
  0xb1   :  { %v2919_v28 = vmul.f32 0.17677669, %v182_v26  ;;  %v223_v26 = vcvt.s32.f32 %v221_v59 }
  0xb3   :  { %2259 = vmatpush.xpose.msk.msrb.mxu1 %vm327_vm2, %v2919_v28  ;;  %2270 = vmatpush.xpose.msk.msra.mxu3 %vm327_vm2, %v2919_v28  ;;  %v228_v27 = vadd.f32 0.5, %v223_v26 }
  0xb4   :  { %2347 = vmatpush.msk.msra.mxu2 %vm254_vm1, %v2881_v11 }
  0xb5   :  { %v230_v30 = vmul.f32 0.25, %v228_v27 }
  0xb7   :  { %2260 = vmatpush.xpose.msk.msrb.mxu1 %vm327_vm2, %v2925_v29  ;;  %2271 = vmatpush.xpose.msk.msra.mxu3 %vm327_vm2, %v2925_v29  ;;  %v232_v31 = vfloor.f32 %v230_v30 }
  0xb9   :  { %v234_v32 = vmul.f32 4.0, %v232_v31 }
  0xba   :  { %2261 = vmatmul.msk.f32.vlgmr.msrb.gmra.mxu1 %vm327_vm2, %v325_v25 }
  0xbb   :  { %587 = vmatpush.msra.mxu1 %v2857_v3  ;;  %v236_v33 = vsub.f32 %v223_v26, %v234_v32 }
  0xbd   :  { %588 = vmatpush.msra.mxu1 %v2863_v5 }
  0xbf   :  { %589 = vmatpush.msra.mxu1 %v2873_v8 }
  0xc1   :  { %590 = vmatpush.msra.mxu1 %v2879_v10 }
  0xc3   :  { %646 = vmatpush.msrb.mxu1 %v2890_v15 }
  0xc5   :  { %647 = vmatpush.msrb.mxu1 %v2868_v7 }
 0x131   :  { %v2982_v36 = vpop.f32.mrf.mxu2 }
 0x137   :  { %v354_v38 = vpop.f32.mrf.mxu1 }
 0x138   :  { %v355_v39 = vadd.f32 %v354_v38, %v2942_v37 }
 0x13a   :  { %v358_v40 = vsel %vm357_vm6, %v355_v39, -inf }
 0x13b   :  { %359 = vmax.xlane.f32.xlu0 %v358_v40 }
 0x1ae   :  { %v360_v41 = vpop.xlane.xlu0 %359 }
 0x1af   :  { %v361_v42 = vsub.f32 %v355_v39, %v360_v41 }
 0x1b1   :  { %v362_v43 = vmul.f32 1.442695, %v361_v42 }
 0x1b3   :  { %2369 = vpow2.f32 %v362_v43 }
 0x1b9   :  { %v2370_v44 = vpop.eup %2369 }
 0x1ba   :  { %v364_v45 = vsel %vm357_vm6, %v2370_v44, 0.0 }
 0x1bb   :  { %365 = vadd.xlane.f32.xlu0 %v364_v45 }
 0x22e   :  { %v366_v46 = vpop.xlane.xlu0 %365 }
 0x22f   :  { %2371 = vrcp.f32 %v366_v46 }
 0x230   :  { %2373 = vrcp.f32 %v2730_v54 }
 0x235   :  { %v2372_v47 = vpop.eup %2371 }
 0x236   :  { %v368_v48 = vmul.f32 %v2372_v47, %v2370_v44  ;;  %v2374_v62 = vpop.eup %2373  ;;  %v2990_v47 = vld [vmem:[%s3541_s10] ss:$0 sm:$0xff] }
 0x237   :  { %v486_v4 = vmul.f32 32.0, %v2374_v62  ;;  %vm490_vm4 = vweird.f32 %v2374_v62 }
 0x238   :  { %2262 = vmatmul.msk.f32.vlgmr.msrb.gmra.mxu3 %vm369_vm7, %v368_v48 }
 0x239   :  { %v487_v14 = vsub.f32 1.0, %v486_v4 }
 0x23b   :  { %v488_v17 = vmul.f32 %v2374_v62, %v487_v14 }
 0x23d   :  { %v489_v18 = vadd.f32 %v2374_v62, %v488_v17 }
 0x23f   :  { %v2976_v19 = vsel %vm490_vm4, %v2374_v62, %v489_v18 }
 0x2bb   :  { %v390_v49 = vpop.f32.mrf.mxu3 }
 0x2bc   :  { %v540_v50 = vadd.f32 %v390_v49, %v2881_v11  ;;  %v238_v11 = vsub.f32 %v236_v33, %v226_v60 }
 0x2be   :  { %v542_v51 = vsel %vm541_vm8, %v540_v50, 0.0  ;;  %v240_v34 = vand.u32 2147483647, %v238_v11 }
 0x2bf   :  { %543 = vadd.xlane.f32.xlu1 %v542_v51 }
 0x2c0   :  { %vm242_vm5 = vcmp.lt.f32.partialorder %v240_v34, 0.5 }
 0x2c1   :  { %v2252_v35 = vsel %vm242_vm5, 1.0, %v2731_v9 }
 0x2c2   :  { %2255 = vmatmul.msk.f32.gmra.mxu2 %vm247_vm14, %v2252_v35 }
 0x2ca   :  { %2264 = vmatmul.msk.f32.vlgmr.msrb.gmra.mxu2 %vm327_vm2, %v2982_v36 }
 0x332   :  { %v544_v21 = vpop.xlane.xlu1 %543 }
 0x333   :  { %v545_v22 = vmul.f32 %v544_v21, %v2976_v19 }
 0x335   :  { %v546_v23 = vsub.f32 %v540_v50, %v545_v22  ;;  %v2995_v50 = vld [vmem:[%s3542_s11] ss:$0 sm:$0xff] }
 0x337   :  { %v547_v24 = vmul.f32 %v546_v23, %v546_v23 }
 0x339   :  { %v548_v25 = vsel %vm541_vm8, %v547_v24, 0.0 }
 0x33a   :  { %549 = vadd.xlane.f32.xlu1 %v548_v25 }
 0x3ad   :  { %v550_v38 = vpop.xlane.xlu1 %549 }
 0x3ae   :  { %v551_v39 = vmul.f32 %v550_v38, %v2976_v19 }
 0x3b0   :  { %v552_v40 = vadd.f32 1e-05, %v551_v39  ;;  %v3030_v39 = vpop.f32.mrf.mxu0 }
 0x3b2   :  { %2375 = vrsqrt.f32 %v552_v40  ;;  %vm559_vm11 = vweird.f32 %v552_v40 }
 0x3b8   :  { %v2376_v41 = vpop.eup %2375 }
 0x3b9   :  { %v554_v42 = vmul.f32 %v2376_v41, %v552_v40  ;;  %vm560_vm9 = vweird.f32 %v2376_v41 }
 0x3ba   :  { %vm561_vm13 = vmor %vm559_vm11, %vm560_vm9 }
 0x3bb   :  { %v555_v43 = vmul.f32 %v2376_v41, %v554_v42 }
 0x3bd   :  { %v556_v44 = vmul.f32 0.5, %v555_v43 }
 0x3bf   :  { %v557_v45 = vsub.f32 1.5, %v556_v44 }
 0x3c1   :  { %v558_v46 = vmul.f32 %v2376_v41, %v557_v45 }
 0x3c3   :  { %v562_v48 = vsel %vm561_vm13, %v2376_v41, %v558_v46 }
 0x3c4   :  { %v563_v49 = vmul.f32 %v562_v48, %v546_v23 }
 0x3c6   :  { %v567_v51 = vmul.f32 %v2990_v47, %v563_v49 }
 0x3c8   :  { %v571_v52 = vadd.f32 %v2995_v50, %v567_v51 }
 0x3ca   :  { %2269 = vmatmul.msk.f32.vlgmr.msra.gmra.mxu1 %vm154_vm0, %v571_v52  ;;  %2277 = vmatpush.msk.msrb.mxu2 %vm254_vm1, %v571_v52 }
 0x3cb   :  { %2281 = vmatpush.xpose.msk.msra.mxu1 %vm327_vm2, %v2919_v28 }
 0x3cf   :  { %2282 = vmatpush.xpose.msk.msra.mxu1 %vm327_vm2, %v2925_v29 }
 0x447   :  { %v592_v53 = vpop.f32.mrf.mxu1 }
 0x448   :  { %v593_v54 = vadd.f32 %v2911_v20, %v592_v53 }
 0x44a   :  { %2272 = vmatmul.msk.f32.vlgmr.msra.gmra.mxu3 %vm327_vm2, %v593_v54 }
 0x44b   :  { %2274 = vmatpush.xpose.msk.msrb.mxu3 %vm327_vm2, %v593_v54 }
 0x452   :  { %2275 = vmatmul.msk.f32.vlgmr.msrb.gmra.mxu3 %vm327_vm2, %v2982_v36 }
 0x4cd   :  { %v615_v55 = vpop.f32.mrf.mxu3 }
 0x4ce   :  { %v616_v56 = vadd.f32 %v615_v55, %v2942_v37 }
 0x4d0   :  { %v618_v57 = vsel %vm357_vm6, %v616_v56, -inf }
 0x4d1   :  { %619 = vmax.xlane.f32.xlu2 %v618_v57 }
 0x544   :  { %v620_v58 = vpop.xlane.xlu2 %619 }
 0x545   :  { %v621_v59 = vsub.f32 %v616_v56, %v620_v58  ;;  %v3042_v58 = vpop.f32.mrf.mxu2 }
 0x546   :  { %2265 = vmatmul.msk.f32.gmra.mxu2 %vm327_vm2, %v3042_v58  ;;  %2276 = vmatmul.msk.f32.gmra.mxu3 %vm327_vm2, %v3042_v58 }
 0x547   :  { %v622_v60 = vmul.f32 1.442695, %v621_v59  ;;  %v3056_v59 = vsel %vm289_vm15, 1.0, %v2731_v9 }
 0x549   :  { %2377 = vpow2.f32 %v622_v60 }
 0x54e   :  { %2268 = vmatmul.msk.f32.vlgmr.msra.gmra.mxu2 %vm247_vm14, %v3056_v59 }
 0x54f   :  { %v2378_v61 = vpop.eup %2377  ;;  %1041 = vmatpush.msra.mxu2 %v2857_v3 }
 0x550   :  { %v624_v62 = vsel %vm357_vm6, %v2378_v61, 0.0 }
 0x551   :  { %625 = vadd.xlane.f32.xlu2 %v624_v62  ;;  %1042 = vmatpush.msra.mxu2 %v2863_v5 }
 0x553   :  { %1043 = vmatpush.msra.mxu2 %v2873_v8 }
 0x555   :  { %1044 = vmatpush.msra.mxu2 %v2879_v10 }
 0x556   :  { %2278 = vmatmul.msk.f32.vlgmr.msrb.gmra.mxu2 %vm247_vm14, %v2966_v12 }
 0x557   :  { %1100 = vmatpush.msrb.mxu2 %v2890_v15 }
 0x559   :  { %1101 = vmatpush.msrb.mxu2 %v2868_v7 }
 0x55e   :  { %2279 = vmatmul.msk.f32.gmra.mxu2 %vm247_vm14, %v3056_v59 }
 0x5c4   :  { %v626_v63 = vpop.xlane.xlu2 %625 }
 0x5c5   :  { %2379 = vrcp.f32 %v626_v63 }
 0x5cb   :  { %v2380_v0 = vpop.eup %2379 }
 0x5cc   :  { %v628_v4 = vmul.f32 %v2380_v0, %v2378_v61 }
 0x5ce   :  { %2273 = vmatmul.msk.f32.vlgmr.msrb.gmra.mxu1 %vm369_vm7, %v628_v4 }
 0x64b   :  { %v649_v6 = vpop.f32.mrf.mxu1 }
 0x64c   :  { %v774_v13 = vadd.f32 %v649_v6, %v571_v52 }
 0x64e   :  { %v775_v14 = vsel %vm541_vm8, %v774_v13, 0.0 }
 0x64f   :  { %776 = vadd.xlane.f32.xlu0 %v775_v14 }
 0x6c2   :  { %v777_v16 = vpop.xlane.xlu0 %776 }
 0x6c3   :  { %v778_v17 = vmul.f32 %v777_v16, %v2976_v19 }
 0x6c5   :  { %v779_v18 = vsub.f32 %v774_v13, %v778_v17 }
 0x6c7   :  { %v780_v21 = vmul.f32 %v779_v18, %v779_v18 }
 0x6c9   :  { %v781_v22 = vsel %vm541_vm8, %v780_v21, 0.0 }
 0x6ca   :  { %782 = vadd.xlane.f32.xlu1 %v781_v22 }
 0x73d   :  { %v783_v23 = vpop.xlane.xlu1 %782 }
 0x73e   :  { %v784_v24 = vmul.f32 %v783_v23, %v2976_v19 }
 0x740   :  { %v785_v25 = vadd.f32 1e-05, %v784_v24  ;;  %v3097_v24 = vpop.f32.mrf.mxu2 }
 0x742   :  { %2381 = vrsqrt.f32 %v785_v25  ;;  %vm792_vm4 = vweird.f32 %v785_v25 }
 0x748   :  { %v2382_v26 = vpop.eup %2381 }
 0x749   :  { %v787_v27 = vmul.f32 %v2382_v26, %v785_v25  ;;  %vm793_vm3 = vweird.f32 %v2382_v26  ;;  %v3099_v25 = vpop.f32.mrf.mxu2 }
 0x74a   :  { %vm794_vm5 = vmor %vm792_vm4, %vm793_vm3 }
 0x74b   :  { %v788_v30 = vmul.f32 %v2382_v26, %v787_v27 }
 0x74d   :  { %v789_v31 = vmul.f32 0.5, %v788_v30 }
 0x74f   :  { %v790_v32 = vsub.f32 1.5, %v789_v31 }
 0x751   :  { %v791_v33 = vmul.f32 %v2382_v26, %v790_v32 }
 0x753   :  { %v795_v11 = vsel %vm794_vm5, %v2382_v26, %v791_v33  ;;  %v3101_v26 = vpop.f32.mrf.mxu2 }
 0x754   :  { %v796_v34 = vmul.f32 %v795_v11, %v779_v18 }
 0x756   :  { %v797_v35 = vmul.f32 %v2990_v47, %v796_v34 }
 0x758   :  { %v798_v38 = vadd.f32 %v2995_v50, %v797_v35 }
 0x75a   :  { %2280 = vmatmul.msk.f32.vlgmr.msra.gmra.mxu0 %vm154_vm0, %v798_v38  ;;  %2288 = vmatpush.msk.msra.mxu3 %vm254_vm1, %v798_v38 }
 0x75b   :  { %2292 = vmatpush.xpose.msk.msra.mxu0 %vm327_vm2, %v2919_v28  ;;  %2289 = vmatmul.msk.f32.vlgmr.msra.gmra.mxu3 %vm247_vm14, %v2966_v12  ;;  %v3103_v27 = vpop.f32.mrf.mxu2 }
 0x75c   :  { %1268 = vmatpush.msrb.mxu3 %v2857_v3 }
 0x75e   :  { %1269 = vmatpush.msrb.mxu3 %v2863_v5 }
 0x75f   :  { %2293 = vmatpush.xpose.msk.msra.mxu0 %vm327_vm2, %v2925_v29 }
 0x760   :  { %1270 = vmatpush.msrb.mxu3 %v2873_v8 }
 0x762   :  { %1271 = vmatpush.msrb.mxu3 %v2879_v10 }
 0x763   :  { %2290 = vmatmul.msk.f32.gmra.mxu3 %vm247_vm14, %v3056_v59  ;;  %v3105_v30 = vpop.f32.mrf.mxu2 }
 0x764   :  { %1327 = vmatpush.msra.mxu3 %v2890_v15 }
 0x766   :  { %1328 = vmatpush.msra.mxu3 %v2868_v7 }
 0x7d7   :  { %v819_v40 = vpop.f32.mrf.mxu0 }
 0x7d8   :  { %v820_v41 = vadd.f32 %v2911_v20, %v819_v40 }
 0x7da   :  { %2283 = vmatmul.msk.f32.vlgmr.msra.gmra.mxu1 %vm327_vm2, %v820_v41 }
 0x7db   :  { %2285 = vmatpush.xpose.msk.msrb.mxu1 %vm327_vm2, %v820_v41 }
 0x7e2   :  { %2286 = vmatmul.msk.f32.vlgmr.msrb.gmra.mxu1 %vm327_vm2, %v2982_v36 }
 0x7ea   :  { %2287 = vmatmul.msk.f32.gmra.mxu1 %vm327_vm2, %v3042_v58 }
 0x857   :  { %v842_v42 = vpop.f32.mrf.mxu1 }
 0x858   :  { %v843_v43 = vadd.f32 %v842_v42, %v2942_v37 }
 0x85a   :  { %v845_v44 = vsel %vm357_vm6, %v843_v43, -inf }
 0x85b   :  { %846 = vmax.xlane.f32.xlu2 %v845_v44 }
 0x8ce   :  { %v847_v45 = vpop.xlane.xlu2 %846 }
 0x8cf   :  { %v848_v46 = vsub.f32 %v843_v43, %v847_v45 }
 0x8d1   :  { %v849_v48 = vmul.f32 1.442695, %v848_v46 }
 0x8d3   :  { %2383 = vpow2.f32 %v849_v48 }
 0x8d9   :  { %v2384_v49 = vpop.eup %2383 }
 0x8da   :  { %v851_v51 = vsel %vm357_vm6, %v2384_v49, 0.0 }
 0x8db   :  { %852 = vadd.xlane.f32.xlu0 %v851_v51 }
 0x94e   :  { %v853_v52 = vpop.xlane.xlu0 %852 }
 0x94f   :  { %2385 = vrcp.f32 %v853_v52 }
 0x955   :  { %v2386_v53 = vpop.eup %2385 }
 0x956   :  { %v855_v54 = vmul.f32 %v2386_v53, %v2384_v49 }
 0x958   :  { %2284 = vmatmul.msk.f32.vlgmr.msrb.gmra.mxu0 %vm369_vm7, %v855_v54 }
 0x9d5   :  { %v876_v55 = vpop.f32.mrf.mxu0 }
 0x9d6   :  { %v1001_v56 = vadd.f32 %v876_v55, %v798_v38 }
 0x9d8   :  { %v1002_v57 = vsel %vm541_vm8, %v1001_v56, 0.0 }
 0x9d9   :  { %1003 = vadd.xlane.f32.xlu1 %v1002_v57 }
 0xa4c   :  { %v1004_v1 = vpop.xlane.xlu1 %1003 }
 0xa4d   :  { %v1005_v2 = vmul.f32 %v1004_v1, %v2976_v19 }
 0xa4f   :  { %v1006_v9 = vsub.f32 %v1001_v56, %v1005_v2 }
 0xa51   :  { %v1007_v60 = vmul.f32 %v1006_v9, %v1006_v9 }
 0xa53   :  { %v1008_v61 = vsel %vm541_vm8, %v1007_v60, 0.0 }
 0xa54   :  { %1009 = vadd.xlane.f32.xlu2 %v1008_v61 }
 0xac7   :  { %v1010_v62 = vpop.xlane.xlu2 %1009 }
 0xac8   :  { %v1011_v63 = vmul.f32 %v1010_v62, %v2976_v19 }
 0xaca   :  { %v1012_v0 = vadd.f32 1e-05, %v1011_v63 }
 0xacc   :  { %2387 = vrsqrt.f32 %v1012_v0  ;;  %vm1019_vm12 = vweird.f32 %v1012_v0 }
 0xad2   :  { %v2388_v4 = vpop.eup %2387 }
 0xad3   :  { %v1014_v6 = vmul.f32 %v2388_v4, %v1012_v0  ;;  %vm1020_vm10 = vweird.f32 %v2388_v4 }
 0xad4   :  { %vm1021_vm15 = vmor %vm1019_vm12, %vm1020_vm10 }
 0xad5   :  { %v1015_v13 = vmul.f32 %v2388_v4, %v1014_v6 }
 0xad7   :  { %v1016_v14 = vmul.f32 0.5, %v1015_v13 }
 0xad9   :  { %v1017_v16 = vsub.f32 1.5, %v1016_v14  ;;  %v3140_v14 = vpop.f32.mrf.mxu3 }
 0xadb   :  { %v1018_v17 = vmul.f32 %v2388_v4, %v1017_v16 }
 0xadd   :  { %v1022_v18 = vsel %vm1021_vm15, %v2388_v4, %v1018_v17 }
 0xade   :  { %v1023_v21 = vmul.f32 %v1022_v18, %v1006_v9 }
 0xae0   :  { %v1024_v22 = vmul.f32 %v2990_v47, %v1023_v21 }
 0xae1   :  { %v3142_v16 = vpop.f32.mrf.mxu3 }
 0xae2   :  { %v1025_v23 = vadd.f32 %v2995_v50, %v1024_v22 }
 0xae4   :  { %2291 = vmatmul.msk.f32.vlgmr.msra.gmra.mxu2 %vm154_vm0, %v1025_v23  ;;  %2299 = vmatpush.msk.msra.mxu1 %vm254_vm1, %v1025_v23 }
 0xae5   :  { %2303 = vmatpush.xpose.msk.msra.mxu2 %vm327_vm2, %v2919_v28  ;;  %2300 = vmatmul.msk.f32.vlgmr.msra.gmra.mxu1 %vm247_vm14, %v2966_v12 }
 0xae6   :  { %1495 = vmatpush.msrb.mxu1 %v2857_v3 }
 0xae8   :  { %1496 = vmatpush.msrb.mxu1 %v2863_v5 }
 0xae9   :  { %2304 = vmatpush.xpose.msk.msra.mxu2 %vm327_vm2, %v2925_v29  ;;  %v3144_v17 = vpop.f32.mrf.mxu3 }
 0xaea   :  { %1497 = vmatpush.msrb.mxu1 %v2873_v8 }
 0xaec   :  { %1498 = vmatpush.msrb.mxu1 %v2879_v10 }
 0xaed   :  { %2301 = vmatmul.msk.f32.gmra.mxu1 %vm247_vm14, %v3056_v59 }
 0xaee   :  { %1554 = vmatpush.msra.mxu1 %v2890_v15 }
 0xaf0   :  { %1555 = vmatpush.msra.mxu1 %v2868_v7 }
 0xaf1   :  { %v3146_v18 = vpop.f32.mrf.mxu3 }
 0xb67   :  { %v1046_v31 = vpop.f32.mrf.mxu2 }
 0xb68   :  { %v1047_v32 = vadd.f32 %v2911_v20, %v1046_v31 }
 0xb6a   :  { %2294 = vmatmul.msk.f32.vlgmr.msra.gmra.mxu0 %vm327_vm2, %v1047_v32 }
 0xb6b   :  { %2296 = vmatpush.xpose.msk.msrb.mxu0 %vm327_vm2, %v1047_v32 }
 0xb72   :  { %2297 = vmatmul.msk.f32.vlgmr.msrb.gmra.mxu0 %vm327_vm2, %v2982_v36 }
 0xb7a   :  { %2298 = vmatmul.msk.f32.gmra.mxu0 %vm327_vm2, %v3042_v58 }
 0xbe7   :  { %v1069_v33 = vpop.f32.mrf.mxu0 }
 0xbe8   :  { %v1070_v11 = vadd.f32 %v1069_v33, %v2942_v37 }
 0xbea   :  { %v1072_v34 = vsel %vm357_vm6, %v1070_v11, -inf }
 0xbeb   :  { %1073 = vmax.xlane.f32.xlu0 %v1072_v34 }
 0xc5e   :  { %v1074_v35 = vpop.xlane.xlu0 %1073 }
 0xc5f   :  { %v1075_v38 = vsub.f32 %v1070_v11, %v1074_v35 }
 0xc61   :  { %v1076_v40 = vmul.f32 1.442695, %v1075_v38 }
 0xc63   :  { %2389 = vpow2.f32 %v1076_v40 }
 0xc69   :  { %v2390_v41 = vpop.eup %2389 }
 0xc6a   :  { %v1078_v42 = vsel %vm357_vm6, %v2390_v41, 0.0 }
 0xc6b   :  { %1079 = vadd.xlane.f32.xlu1 %v1078_v42 }
 0xcde   :  { %v1080_v43 = vpop.xlane.xlu1 %1079 }
 0xcdf   :  { %2391 = vrcp.f32 %v1080_v43 }
 0xce5   :  { %v2392_v44 = vpop.eup %2391 }
 0xce6   :  { %v1082_v45 = vmul.f32 %v2392_v44, %v2390_v41 }
 0xce8   :  { %2295 = vmatmul.msk.f32.vlgmr.msrb.gmra.mxu2 %vm369_vm7, %v1082_v45 }
 0xd6b   :  { %v1103_v46 = vpop.f32.mrf.mxu2 }
 0xd6c   :  { %v1228_v48 = vadd.f32 %v1103_v46, %v1025_v23 }
 0xd6e   :  { %v1229_v49 = vsel %vm541_vm8, %v1228_v48, 0.0 }
 0xd6f   :  { %1230 = vadd.xlane.f32.xlu2 %v1229_v49 }
 0xde2   :  { %v1231_v51 = vpop.xlane.xlu2 %1230 }
 0xde3   :  { %v1232_v52 = vmul.f32 %v1231_v51, %v2976_v19 }
 0xde5   :  { %v1233_v53 = vsub.f32 %v1228_v48, %v1232_v52 }
 0xde7   :  { %v1234_v54 = vmul.f32 %v1233_v53, %v1233_v53 }
 0xde9   :  { %v1235_v55 = vsel %vm541_vm8, %v1234_v54, 0.0 }
 0xdea   :  { %1236 = vadd.xlane.f32.xlu0 %v1235_v55 }
 0xe5d   :  { %v1237_v56 = vpop.xlane.xlu0 %1236 }
 0xe5e   :  { %v1238_v57 = vmul.f32 %v1237_v56, %v2976_v19 }
 0xe60   :  { %v1239_v1 = vadd.f32 1e-05, %v1238_v57 }
 0xe62   :  { %2393 = vrsqrt.f32 %v1239_v1  ;;  %vm1246_vm11 = vweird.f32 %v1239_v1 }
 0xe68   :  { %v2394_v2 = vpop.eup %2393 }
 0xe69   :  { %v1241_v9 = vmul.f32 %v2394_v2, %v1239_v1  ;;  %vm1247_vm9 = vweird.f32 %v2394_v2 }
 0xe6a   :  { %vm1248_vm13 = vmor %vm1246_vm11, %vm1247_vm9 }
 0xe6b   :  { %v1242_v60 = vmul.f32 %v2394_v2, %v1241_v9 }
 0xe6d   :  { %v1243_v61 = vmul.f32 0.5, %v1242_v60 }
 0xe6f   :  { %v1244_v62 = vsub.f32 1.5, %v1243_v61 }
 0xe71   :  { %v1245_v63 = vmul.f32 %v2394_v2, %v1244_v62 }
 0xe73   :  { %v1249_v0 = vsel %vm1248_vm13, %v2394_v2, %v1245_v63 }
 0xe74   :  { %v1250_v4 = vmul.f32 %v1249_v0, %v1233_v53 }
 0xe76   :  { %v1251_v6 = vmul.f32 %v2990_v47, %v1250_v4  ;;  %v3181_v4 = vpop.f32.mrf.mxu1 }
 0xe78   :  { %v1252_v13 = vadd.f32 %v2995_v50, %v1251_v6 }
 0xe7a   :  { %2302 = vmatmul.msk.f32.vlgmr.msrb.gmra.mxu3 %vm154_vm0, %v1252_v13  ;;  %2310 = vmatpush.msk.msra.mxu0 %vm254_vm1, %v1252_v13 }
 0xe7b   :  { %2314 = vmatpush.xpose.msk.msrb.mxu3 %vm327_vm2, %v2919_v28  ;;  %2311 = vmatmul.msk.f32.vlgmr.msra.gmra.mxu0 %vm247_vm14, %v2966_v12 }
 0xe7c   :  { %1722 = vmatpush.msrb.mxu0 %v2857_v3 }
 0xe7e   :  { %1723 = vmatpush.msrb.mxu0 %v2863_v5  ;;  %v3183_v6 = vpop.f32.mrf.mxu1 }
 0xe7f   :  { %2315 = vmatpush.xpose.msk.msrb.mxu3 %vm327_vm2, %v2925_v29 }
 0xe80   :  { %1724 = vmatpush.msrb.mxu0 %v2873_v8 }
 0xe82   :  { %1725 = vmatpush.msrb.mxu0 %v2879_v10 }
 0xe83   :  { %2312 = vmatmul.msk.f32.gmra.mxu0 %vm247_vm14, %v3056_v59 }
 0xe84   :  { %1781 = vmatpush.msra.mxu0 %v2890_v15 }
 0xe86   :  { %1782 = vmatpush.msra.mxu0 %v2868_v7 }
 0xefd   :  { %v1273_v21 = vpop.f32.mrf.mxu3 }
 0xefe   :  { %v1274_v22 = vadd.f32 %v2911_v20, %v1273_v21 }
 0xf00   :  { %2305 = vmatmul.msk.f32.vlgmr.msra.gmra.mxu2 %vm327_vm2, %v1274_v22 }
 0xf01   :  { %2307 = vmatpush.xpose.msk.msrb.mxu2 %vm327_vm2, %v1274_v22 }
 0xf08   :  { %2308 = vmatmul.msk.f32.vlgmr.msrb.gmra.mxu2 %vm327_vm2, %v2982_v36 }
 0xf10   :  { %2309 = vmatmul.msk.f32.gmra.mxu2 %vm327_vm2, %v3042_v58 }
 0xf83   :  { %v1296_v23 = vpop.f32.mrf.mxu2 }
 0xf84   :  { %v1297_v31 = vadd.f32 %v1296_v23, %v2942_v37 }
 0xf86   :  { %v1299_v32 = vsel %vm357_vm6, %v1297_v31, -inf }
 0xf87   :  { %1300 = vmax.xlane.f32.xlu1 %v1299_v32 }
 0xffa   :  { %v1301_v33 = vpop.xlane.xlu1 %1300 }
 0xffb   :  { %v1302_v11 = vsub.f32 %v1297_v31, %v1301_v33 }
 0xffd   :  { %v1303_v34 = vmul.f32 1.442695, %v1302_v11 }
 0xfff   :  { %2395 = vpow2.f32 %v1303_v34 }
0x1005   :  { %v2396_v35 = vpop.eup %2395 }
0x1006   :  { %v1305_v38 = vsel %vm357_vm6, %v2396_v35, 0.0 }
0x1007   :  { %1306 = vadd.xlane.f32.xlu2 %v1305_v38 }
0x107a   :  { %v1307_v40 = vpop.xlane.xlu2 %1306 }
0x107b   :  { %2397 = vrcp.f32 %v1307_v40 }
0x1081   :  { %v2398_v41 = vpop.eup %2397 }
0x1082   :  { %v1309_v42 = vmul.f32 %v2398_v41, %v2396_v35 }
0x1084   :  { %2306 = vmatmul.msk.f32.vlgmr.msra.gmra.mxu3 %vm369_vm7, %v1309_v42 }
0x1107   :  { %v1330_v43 = vpop.f32.mrf.mxu3 }
0x1108   :  { %v1455_v44 = vadd.f32 %v1330_v43, %v1252_v13 }
0x110a   :  { %v1456_v45 = vsel %vm541_vm8, %v1455_v44, 0.0 }
0x110b   :  { %1457 = vadd.xlane.f32.xlu0 %v1456_v45 }
0x117e   :  { %v1458_v46 = vpop.xlane.xlu0 %1457 }
0x117f   :  { %v1459_v48 = vmul.f32 %v1458_v46, %v2976_v19  ;;  %v422_v46 = vmul.f32 %v2966_v12, %v3097_v24 }
0x1181   :  { %v1460_v49 = vsub.f32 %v1455_v44, %v1459_v48  ;;  %v424_v48 = vsel %vm247_vm14, %v422_v46, 0.0 }
0x1183   :  { %v1461_v51 = vmul.f32 %v1460_v49, %v1460_v49 }
0x1185   :  { %v1462_v52 = vsel %vm541_vm8, %v1461_v51, 0.0 }
0x1186   :  { %1463 = vadd.xlane.f32.xlu1 %v1462_v52 }
0x11f9   :  { %v1464_v53 = vpop.xlane.xlu1 %1463 }
0x11fa   :  { %v1465_v54 = vmul.f32 %v1464_v53, %v2976_v19 }
0x11fc   :  { %v1466_v55 = vadd.f32 1e-05, %v1465_v54 }
0x11fe   :  { %2399 = vrsqrt.f32 %v1466_v55  ;;  %vm1473_vm4 = vweird.f32 %v1466_v55 }
0x1204   :  { %v2400_v56 = vpop.eup %2399 }
0x1205   :  { %v1468_v57 = vmul.f32 %v2400_v56, %v1466_v55  ;;  %vm1474_vm3 = vweird.f32 %v2400_v56 }
0x1206   :  { %vm1475_vm5 = vmor %vm1473_vm4, %vm1474_vm3 }
0x1207   :  { %v1469_v1 = vmul.f32 %v2400_v56, %v1468_v57 }
0x1209   :  { %v1470_v2 = vmul.f32 0.5, %v1469_v1 }
0x120b   :  { %v1471_v9 = vsub.f32 1.5, %v1470_v2 }
0x120d   :  { %v1472_v60 = vmul.f32 %v2400_v56, %v1471_v9 }
0x120f   :  { %v1476_v61 = vsel %vm1475_vm5, %v2400_v56, %v1472_v60 }
0x1210   :  { %v1477_v62 = vmul.f32 %v1476_v61, %v1460_v49 }
0x1212   :  { %v1478_v63 = vmul.f32 %v2990_v47, %v1477_v62 }
0x1214   :  { %v1479_v0 = vadd.f32 %v2995_v50, %v1478_v63 }
0x1216   :  { %2313 = vmatmul.msk.f32.vlgmr.msrb.gmra.mxu1 %vm154_vm0, %v1479_v0  ;;  %2321 = vmatpush.msk.msra.mxu2 %vm254_vm1, %v1479_v0 }
0x1217   :  { %2325 = vmatpush.xpose.msk.msrb.mxu1 %vm327_vm2, %v2919_v28  ;;  %2322 = vmatmul.msk.f32.vlgmr.msra.gmra.mxu2 %vm247_vm14, %v2966_v12 }
0x1218   :  { %1949 = vmatpush.msrb.mxu2 %v2857_v3  ;;  %v3185_v3 = vpop.f32.mrf.mxu1 }
0x121a   :  { %1950 = vmatpush.msrb.mxu2 %v2863_v5 }
0x121b   :  { %2326 = vmatpush.xpose.msk.msrb.mxu1 %vm327_vm2, %v2925_v29 }
0x121c   :  { %1951 = vmatpush.msrb.mxu2 %v2873_v8 }
0x121e   :  { %1952 = vmatpush.msrb.mxu2 %v2879_v10 }
0x121f   :  { %2323 = vmatmul.msk.f32.gmra.mxu2 %vm247_vm14, %v3056_v59 }
0x1220   :  { %2008 = vmatpush.msra.mxu2 %v2890_v15  ;;  %v3187_v5 = vpop.f32.mrf.mxu1 }
0x1222   :  { %2009 = vmatpush.msra.mxu2 %v2868_v7 }
0x1293   :  { %v1500_v13 = vpop.f32.mrf.mxu1 }
0x1294   :  { %v1501_v8 = vadd.f32 %v2911_v20, %v1500_v13 }
0x1296   :  { %2316 = vmatmul.msk.f32.vlgmr.msrb.gmra.mxu3 %vm327_vm2, %v1501_v8 }
0x1297   :  { %2318 = vmatpush.xpose.msk.msra.mxu3 %vm327_vm2, %v1501_v8  ;;  %v423_v8 = vmul.f32 %v3056_v59, %v3099_v25 }
0x129e   :  { %2319 = vmatmul.msk.f32.vlgmr.msra.gmra.mxu3 %vm327_vm2, %v2982_v36 }
0x12a6   :  { %2320 = vmatmul.msk.f32.gmra.mxu3 %vm327_vm2, %v3042_v58 }
0x1319   :  { %v1523_v7 = vpop.f32.mrf.mxu3 }
0x131a   :  { %v1524_v10 = vadd.f32 %v1523_v7, %v2942_v37 }
0x131c   :  { %v1526_v15 = vsel %vm357_vm6, %v1524_v10, -inf }
0x131d   :  { %1527 = vmax.xlane.f32.xlu2 %v1526_v15 }
0x1390   :  { %v1528_v21 = vpop.xlane.xlu2 %1527 }
0x1391   :  { %v1529_v22 = vsub.f32 %v1524_v10, %v1528_v21 }
0x1393   :  { %v1530_v23 = vmul.f32 1.442695, %v1529_v22 }
0x1395   :  { %2401 = vpow2.f32 %v1530_v23 }
0x139b   :  { %v2402_v31 = vpop.eup %2401 }
0x139c   :  { %v1532_v32 = vsel %vm357_vm6, %v2402_v31, 0.0 }
0x139d   :  { %1533 = vadd.xlane.f32.xlu0 %v1532_v32 }
0x1410   :  { %v1534_v33 = vpop.xlane.xlu0 %1533 }
0x1411   :  { %2403 = vrcp.f32 %v1534_v33 }
0x1417   :  { %v2404_v11 = vpop.eup %2403 }
0x1418   :  { %v1536_v34 = vmul.f32 %v2404_v11, %v2402_v31 }
0x141a   :  { %2317 = vmatmul.msk.f32.vlgmr.msra.gmra.mxu1 %vm369_vm7, %v1536_v34 }
0x1497   :  { %v1557_v35 = vpop.f32.mrf.mxu1 }
0x1498   :  { %v1682_v38 = vadd.f32 %v1557_v35, %v1479_v0 }
0x149a   :  { %v1683_v40 = vsel %vm541_vm8, %v1682_v38, 0.0 }
0x149b   :  { %1684 = vadd.xlane.f32.xlu1 %v1683_v40 }
0x150e   :  { %v1685_v41 = vpop.xlane.xlu1 %1684 }
0x150f   :  { %v1686_v42 = vmul.f32 %v1685_v41, %v2976_v19 }
0x1511   :  { %v1687_v43 = vsub.f32 %v1682_v38, %v1686_v42  ;;  %v135_v38 = vld [vmem:[#allocation5] sm:$0xff] }
0x1513   :  { %v1688_v44 = vmul.f32 %v1687_v43, %v1687_v43 }
0x1515   :  { %v1689_v45 = vsel %vm541_vm8, %v1688_v44, 0.0 }
0x1516   :  { %1690 = vadd.xlane.f32.xlu2 %v1689_v45 }
0x151e   :  { %425 = vadd.xlane.f32.xlu2 %v424_v48 }
0x1589   :  { %v1691_v49 = vpop.xlane.xlu2 %1690 }
0x158a   :  { %v1692_v51 = vmul.f32 %v1691_v49, %v2976_v19 }
0x158c   :  { %v1693_v52 = vadd.f32 1e-05, %v1692_v51  ;;  %v136_v51 = vld [vmem:[#allocation5 + $0x8] sm:$0xff] }
0x158e   :  { %2405 = vrsqrt.f32 %v1693_v52  ;;  %vm1700_vm12 = vweird.f32 %v1693_v52 }
0x1591   :  { %v426_v7 = vpop.xlane.xlu2 %425 }
0x1592   :  { %v430_v10 = vsub.f32 0.0, %v426_v7 }
0x1594   :  { %v2406_v53 = vpop.eup %2405  ;;  %v432_v15 = vmul.f32 1.442695, %v430_v10 }
0x1595   :  { %v1695_v54 = vmul.f32 %v2406_v53, %v1693_v52  ;;  %vm1701_vm10 = vweird.f32 %v2406_v53 }
0x1596   :  { %vm1702_vm15 = vmor %vm1700_vm12, %vm1701_vm10  ;;  %2407 = vpow2.f32 %v432_v15 }
0x1597   :  { %v1696_v55 = vmul.f32 %v2406_v53, %v1695_v54 }
0x1599   :  { %v1697_v56 = vmul.f32 0.5, %v1696_v55 }
0x159b   :  { %v1698_v57 = vsub.f32 1.5, %v1697_v56 }
0x159c   :  { %v2408_v21 = vpop.eup %2407 }
0x159d   :  { %v1699_v1 = vmul.f32 %v2406_v53, %v1698_v57  ;;  %v436_v22 = vadd.f32 1.0, %v2408_v21 }
0x159f   :  { %v1703_v2 = vsel %vm1702_vm15, %v2406_v53, %v1699_v1  ;;  %2409 = vrcp.f32 %v436_v22 }
0x15a0   :  { %v1704_v9 = vmul.f32 %v1703_v2, %v1687_v43 }
0x15a2   :  { %v1705_v24 = vmul.f32 %v2990_v47, %v1704_v9  ;;  %v3223_v47 = vpop.f32.mrf.mxu0 }
0x15a4   :  { %v3209_v60 = vadd.f32 %v2995_v50, %v1705_v24 }
0x15a5   :  { %v2410_v33 = vpop.eup %2409 }
0x15a6   :  { %2324 = vmatmul.msk.f32.vlgmr.msrb.gmra.mxu0 %vm154_vm0, %v3209_v60  ;;  %2332 = vmatpush.msk.msrb.mxu3 %vm254_vm1, %v3209_v60  ;;  %v471_v34 = vsub.f32 1.0, %v2410_v33  ;;  %v475_v43 = vmul.f32 %v2410_v33, %v3030_v39  ;;  %v675_v39 = vmul.f32 %v2966_v12, %v3140_v14  ;;  %v676_v14 = vmul.f32 %v3056_v59, %v3142_v16 }
0x15a7   :  { %2336 = vmatpush.xpose.msk.msrb.mxu0 %vm327_vm2, %v2919_v28  ;;  %2333 = vmatmul.msk.f32.vlgmr.msrb.gmra.mxu3 %vm247_vm14, %v2966_v12 }
0x15a8   :  { %v473_v42 = vmul.f32 %v471_v34, %v135_v38  ;;  %v677_v57 = vsel %vm247_vm14, %v675_v39, 0.0 }
0x15aa   :  { %v3225_v50 = vpop.f32.mrf.mxu0  ;;  %v477_v44 = vadd.f32 %v475_v43, %v473_v42 }
0x15ab   :  { %2337 = vmatpush.xpose.msk.msrb.mxu0 %vm327_vm2, %v2925_v29 }
0x15ac   :  { %v479_v48 = vsel %vm154_vm0, %v477_v44, 0.0 }
0x15af   :  { %2334 = vmatmul.msk.f32.gmra.mxu3 %vm247_vm14, %v3056_v59 }
0x15b2   :  { %v3227_v61 = vpop.f32.mrf.mxu0 }
0x15ba   :  { %v3229_v62 = vpop.f32.mrf.mxu0 }
0x1623   :  { %v1727_v63 = vpop.f32.mrf.mxu0 }
0x1624   :  { %v1728_v28 = vadd.f32 %v2911_v20, %v1727_v63  ;;  %v427_v20 = vsel %vm247_vm14, %v423_v8, 0.0 }
0x1626   :  { %2327 = vmatmul.msk.f32.vlgmr.msrb.gmra.mxu1 %vm327_vm2, %v1728_v28 }
0x1627   :  { %2329 = vmatpush.xpose.msk.msra.mxu1 %vm327_vm2, %v1728_v28 }
0x162e   :  { %2330 = vmatmul.msk.f32.vlgmr.msra.gmra.mxu1 %vm327_vm2, %v2982_v36 }
0x1636   :  { %2331 = vmatmul.msk.f32.gmra.mxu1 %vm327_vm2, %v3042_v58 }
0x16a3   :  { %v1750_v29 = vpop.f32.mrf.mxu1 }
0x16a4   :  { %v1751_v0 = vadd.f32 %v1750_v29, %v2942_v37 }
0x16a6   :  { %v1753_v13 = vsel %vm357_vm6, %v1751_v0, -inf }
0x16a7   :  { %1754 = vmax.xlane.f32.xlu0 %v1753_v13  ;;  %v680_v13 = vsel %vm247_vm14, %v676_v14, 0.0 }
0x16af   :  { %428 = vadd.xlane.f32.xlu0 %v427_v20 }
0x171a   :  { %v1755_v23 = vpop.xlane.xlu0 %1754 }
0x171b   :  { %v1756_v31 = vsub.f32 %v1751_v0, %v1755_v23 }
0x171d   :  { %v1757_v32 = vmul.f32 1.442695, %v1756_v31 }
0x171f   :  { %2411 = vpow2.f32 %v1757_v32 }
0x1722   :  { %v429_v11 = vpop.xlane.xlu0 %428 }
0x1723   :  { %v431_v35 = vsub.f32 0.0, %v429_v11 }
0x1725   :  { %v2412_v25 = vpop.eup %2411  ;;  %v434_v40 = vmul.f32 1.442695, %v431_v35 }
0x1726   :  { %v1759_v41 = vsel %vm357_vm6, %v2412_v25, 0.0 }
0x1727   :  { %2413 = vpow2.f32 %v434_v40  ;;  %1760 = vadd.xlane.f32.xlu1 %v1759_v41 }
0x172d   :  { %v2414_v45 = vpop.eup %2413 }
0x172e   :  { %v437_v46 = vadd.f32 1.0, %v2414_v45 }
0x172f   :  { %480 = vadd.xlane.f32.xlu1 %v479_v48 }
0x1730   :  { %2415 = vrcp.f32 %v437_v46 }
0x1736   :  { %v2416_v49 = vpop.eup %2415 }
0x1737   :  { %v472_v52 = vsub.f32 1.0, %v2416_v49  ;;  %v476_v54 = vmul.f32 %v2416_v49, %v3101_v26 }
0x1739   :  { %v474_v53 = vmul.f32 %v472_v52, %v136_v51  ;;  %v3270_v51 = vld [vmem:[%s3543_s12] ss:$0 sm:$0xff] }
0x173b   :  { %v478_v55 = vadd.f32 %v476_v54, %v474_v53  ;;  %v3275_v54 = vld [vmem:[%s3544_s13] ss:$0 sm:$0xff] }
0x173d   :  { %v482_v56 = vsel %vm154_vm0, %v478_v55, 0.0 }
0x173e   :  { %483 = vadd.xlane.f32.xlu2 %v482_v56 }
0x1746   :  { %678 = vadd.xlane.f32.xlu2 %v677_v57 }
0x179a   :  { %v1761_v1 = vpop.xlane.xlu1 %1760 }
0x179b   :  { %2417 = vrcp.f32 %v1761_v1 }
0x17a1   :  { %v2418_v2 = vpop.eup %2417 }
0x17a2   :  { %v1763_v9 = vmul.f32 %v2418_v2, %v2412_v25  ;;  %v481_v24 = vpop.xlane.xlu1 %480 }
0x17a3   :  { %v492_v63 = vmul.f32 %v2976_v19, %v481_v24 }
0x17a4   :  { %2328 = vmatmul.msk.f32.vlgmr.msra.gmra.mxu0 %vm369_vm7, %v1763_v9 }
0x17a5   :  { %v494_v26 = vsub.f32 %v477_v44, %v492_v63 }
0x17a7   :  { %v496_v28 = vmul.f32 %v494_v26, %v494_v26 }
0x17a9   :  { %v498_v29 = vsel %vm154_vm0, %v496_v28, 0.0 }
0x17aa   :  { %499 = vadd.xlane.f32.xlu0 %v498_v29 }
0x17b1   :  { %v484_v0 = vpop.xlane.xlu2 %483 }
0x17b2   :  { %v493_v8 = vmul.f32 %v2976_v19, %v484_v0  ;;  %681 = vadd.xlane.f32.xlu0 %v680_v13 }
0x17b4   :  { %v3258_v20 = vsub.f32 %v478_v55, %v493_v8 }
0x17b6   :  { %v497_v7 = vmul.f32 %v3258_v20, %v3258_v20 }
0x17b8   :  { %v501_v10 = vsel %vm154_vm0, %v497_v7, 0.0 }
0x17b9   :  { %502 = vadd.xlane.f32.xlu1 %v501_v10  ;;  %v679_v15 = vpop.xlane.xlu2 %678 }
0x17ba   :  { %v683_v21 = vsub.f32 0.0, %v679_v15 }
0x17bc   :  { %v685_v22 = vmul.f32 1.442695, %v683_v21 }
0x17be   :  { %2419 = vpow2.f32 %v685_v22 }
0x17c4   :  { %v2420_v35 = vpop.eup %2419 }
0x17c5   :  { %v689_v41 = vadd.f32 1.0, %v2420_v35 }
0x181d   :  { %v500_v23 = vpop.xlane.xlu0 %499 }
0x181e   :  { %v504_v16 = vmul.f32 %v500_v23, %v2976_v19 }
0x1820   :  { %v506_v31 = vadd.f32 1e-05, %v504_v16 }
0x1821   :  { %v1784_v32 = vpop.f32.mrf.mxu0 }
0x1822   :  { %2421 = vrsqrt.f32 %v506_v31  ;;  %v1909_v33 = vadd.f32 %v1784_v32, %v3209_v60  ;;  %vm514_vm11 = vweird.f32 %v506_v31 }
0x1823   :  { %2423 = vrcp.f32 %v689_v41 }
0x1824   :  { %v1910_v11 = vsel %vm541_vm8, %v1909_v33, 0.0 }
0x1825   :  { %v682_v34 = vpop.xlane.xlu0 %681  ;;  %1911 = vadd.xlane.f32.xlu1 %v1910_v11 }
0x1826   :  { %v684_v25 = vsub.f32 0.0, %v682_v34 }
0x1828   :  { %v2422_v38 = vpop.eup %2421  ;;  %v687_v43 = vmul.f32 1.442695, %v684_v25  ;;  %v902_v25 = vmul.f32 %v2966_v12, %v3181_v4 }
0x1829   :  { %v509_v40 = vmul.f32 %v2422_v38, %v506_v31  ;;  %vm515_vm9 = vweird.f32 %v2422_v38  ;;  %v2424_v55 = vpop.eup %2423 }
0x182a   :  { %2425 = vpow2.f32 %v687_v43  ;;  %vm516_vm13 = vmor %vm514_vm11, %vm515_vm9  ;;  %v718_v9 = vsub.f32 1.0, %v2424_v55  ;;  %v722_v29 = vmul.f32 %v2424_v55, %v3103_v27 }
0x182b   :  { %v510_v42 = vmul.f32 %v2422_v38, %v509_v40  ;;  %v904_v40 = vsel %vm247_vm14, %v902_v25, 0.0 }
0x182c   :  { %v503_v44 = vpop.xlane.xlu1 %502 }
0x182d   :  { %v511_v45 = vmul.f32 0.5, %v510_v42  ;;  %v505_v46 = vmul.f32 %v503_v44, %v2976_v19  ;;  %v903_v44 = vmul.f32 %v3056_v59, %v3183_v6 }
0x182f   :  { %v512_v48 = vsub.f32 1.5, %v511_v45  ;;  %v507_v49 = vadd.f32 1e-05, %v505_v46  ;;  %v907_v4 = vsel %vm247_vm14, %v903_v44, 0.0 }
0x1830   :  { %v2426_v56 = vpop.eup %2425 }
0x1831   :  { %v513_v60 = vmul.f32 %v2422_v38, %v512_v48  ;;  %2427 = vrsqrt.f32 %v507_v49  ;;  %v690_v24 = vadd.f32 1.0, %v2426_v56  ;;  %vm524_vm4 = vweird.f32 %v507_v49 }
0x1833   :  { %v517_v52 = vsel %vm516_vm13, %v2422_v38, %v513_v60  ;;  %2429 = vrcp.f32 %v690_v24 }
0x1834   :  { %v528_v53 = vmul.f32 %v517_v52, %v494_v26 }
0x1836   :  { %v533_v39 = vmul.f32 %v3270_v51, %v528_v53 }
0x1837   :  { %v2428_v57 = vpop.eup %2427 }
0x1838   :  { %v519_v1 = vmul.f32 %v2428_v57, %v507_v49  ;;  %v538_v2 = vadd.f32 %v3275_v54, %v533_v39  ;;  %vm525_vm3 = vweird.f32 %v2428_v57 }
0x1839   :  { %vm526_vm5 = vmor %vm524_vm4, %vm525_vm3  ;;  %v2430_v15 = vpop.eup %2429 }
0x183a   :  { %v520_v63 = vmul.f32 %v2428_v57, %v519_v1  ;;  %v720_v28 = vmul.f32 %v718_v9, %v538_v2  ;;  %v719_v27 = vsub.f32 1.0, %v2430_v15  ;;  %v723_v16 = vmul.f32 %v2430_v15, %v3105_v30 }
0x183c   :  { %v521_v26 = vmul.f32 0.5, %v520_v63  ;;  %v724_v14 = vadd.f32 %v722_v29, %v720_v28  ;;  %v3310_v29 = vld [vmem:[%s3541_s10] ss:$0 sm:$0xff]  ;;  %s2225_s10 = sshll.u32 %s2734_s23, 4  ;;  %s2226_s10 = int_to_ptr.vmem [resolvable:$true] %s2225_s10 }
0x183e   :  { %v522_v0 = vsub.f32 1.5, %v521_v26  ;;  %v726_v13 = vsel %vm154_vm0, %v724_v14, 0.0 }
0x183f   :  { %727 = vadd.xlane.f32.xlu2 %v726_v13 }
0x1840   :  { %v523_v8 = vmul.f32 %v2428_v57, %v522_v0 }
0x1842   :  { %v527_v7 = vsel %vm526_vm5, %v2428_v57, %v523_v8  ;;  %v3317_v8 = vld [vmem:[%s3542_s11] ss:$0 sm:$0xff] }
0x1843   :  { %v529_v10 = vmul.f32 %v527_v7, %v3258_v20 }
0x1845   :  { %v534_v21 = vmul.f32 %v3270_v51, %v529_v10 }
0x1847   :  { %v539_v22 = vadd.f32 %v3275_v54, %v534_v21 }
0x1849   :  { %v721_v23 = vmul.f32 %v719_v27, %v539_v22 }
0x184b   :  { %v725_v31 = vadd.f32 %v723_v16, %v721_v23 }
0x184d   :  { %v729_v32 = vsel %vm154_vm0, %v725_v31, 0.0 }
0x184e   :  { %730 = vadd.xlane.f32.xlu0 %v729_v32 }
0x1898   :  { %v1912_v11 = vpop.xlane.xlu1 %1911 }
0x1899   :  { %v1913_v34 = vmul.f32 %v1912_v11, %v2976_v19 }
0x189b   :  { %v1914_v35 = vsub.f32 %v1909_v33, %v1913_v34 }
0x189d   :  { %v1915_v38 = vmul.f32 %v1914_v35, %v1914_v35 }
0x189f   :  { %v1916_v20 = vsel %vm541_vm8, %v1915_v38, 0.0 }
0x18a0   :  { %1917 = vadd.xlane.f32.xlu1 %v1916_v20 }
0x18a8   :  { %905 = vadd.xlane.f32.xlu1 %v904_v40 }
0x18b2   :  { %v728_v41 = vpop.xlane.xlu2 %727 }
0x18b3   :  { %v732_v30 = vmul.f32 %v728_v41, %v2976_v19 }
0x18b5   :  { %v3292_v42 = vsub.f32 %v724_v14, %v732_v30 }
0x18b7   :  { %v736_v43 = vmul.f32 %v3292_v42, %v3292_v42 }
0x18b9   :  { %v738_v33 = vsel %vm154_vm0, %v736_v43, 0.0 }
0x18ba   :  { %739 = vadd.xlane.f32.xlu2 %v738_v33 }
0x18c1   :  { %v731_v45 = vpop.xlane.xlu0 %730 }
0x18c2   :  { %v733_v46 = vmul.f32 %v731_v45, %v2976_v19  ;;  %908 = vadd.xlane.f32.xlu2 %v907_v4 }
0x18c4   :  { %v3301_v48 = vsub.f32 %v725_v31, %v733_v46 }
0x18c6   :  { %v737_v49 = vmul.f32 %v3301_v48, %v3301_v48 }
0x18c8   :  { %v741_v60 = vsel %vm154_vm0, %v737_v49, 0.0 }
0x18c9   :  { %742 = vadd.xlane.f32.xlu0 %v741_v60 }
0x1913   :  { %v1918_v52 = vpop.xlane.xlu1 %1917 }
0x1914   :  { %v1919_v53 = vmul.f32 %v1918_v52, %v2976_v19 }
0x1916   :  { %v1920_v55 = vadd.f32 1e-05, %v1919_v53 }
0x1918   :  { %2431 = vrsqrt.f32 %v1920_v55  ;;  %vm1927_vm12 = vweird.f32 %v1920_v55 }
0x191b   :  { %v906_v2 = vpop.xlane.xlu1 %905 }
0x191c   :  { %v910_v63 = vsub.f32 0.0, %v906_v2 }
0x191e   :  { %v2432_v6 = vpop.eup %2431  ;;  %v912_v14 = vmul.f32 1.442695, %v910_v63 }
0x191f   :  { %v1922_v56 = vmul.f32 %v2432_v6, %v1920_v55  ;;  %vm1928_vm10 = vweird.f32 %v2432_v6 }
0x1920   :  { %vm1929_vm15 = vmor %vm1927_vm12, %vm1928_vm10  ;;  %2433 = vpow2.f32 %v912_v14 }
0x1921   :  { %v1923_v39 = vmul.f32 %v2432_v6, %v1922_v56 }
0x1923   :  { %v1924_v57 = vmul.f32 0.5, %v1923_v39 }
0x1925   :  { %v1925_v1 = vsub.f32 1.5, %v1924_v57 }
0x1926   :  { %v2434_v21 = vpop.eup %2433 }
0x1927   :  { %v1926_v9 = vmul.f32 %v2432_v6, %v1925_v1  ;;  %v916_v16 = vadd.f32 1.0, %v2434_v21 }
0x1929   :  { %v1930_v24 = vsel %vm1929_vm15, %v2432_v6, %v1926_v9 }
0x192a   :  { %v1931_v28 = vmul.f32 %v1930_v24, %v1914_v35 }
0x192c   :  { %v1932_v26 = vmul.f32 %v3310_v29, %v1931_v28 }
0x192d   :  { %v740_v0 = vpop.xlane.xlu2 %739 }
0x192e   :  { %v744_v13 = vmul.f32 %v740_v0, %v2976_v19  ;;  %v3320_v7 = vadd.f32 %v3317_v8, %v1932_v26  ;;  %v1129_v0 = vmul.f32 %v2966_v12, %v3223_v47 }
0x1930   :  { %v746_v10 = vadd.f32 1e-05, %v744_v13  ;;  %2335 = vmatmul.msk.f32.vlgmr.msrb.gmra.mxu2 %vm154_vm0, %v3320_v7  ;;  %2343 = vmatpush.msk.msrb.mxu1 %vm254_vm1, %v3320_v7  ;;  %v1131_v13 = vsel %vm247_vm14, %v1129_v0, 0.0 }
0x1931   :  { %2344 = vmatmul.msk.f32.vlgmr.msrb.gmra.mxu1 %vm247_vm14, %v2966_v12 }
0x1932   :  { %2435 = vrsqrt.f32 %v746_v10  ;;  %vm754_vm9 = vweird.f32 %v746_v10 }
0x1933   :  { %2437 = vrcp.f32 %v916_v16 }
0x1935   :  { %v909_v15 = vpop.xlane.xlu2 %908 }
0x1936   :  { %v911_v27 = vsub.f32 0.0, %v909_v15 }
0x1938   :  { %v2436_v22 = vpop.eup %2435  ;;  %v914_v32 = vmul.f32 1.442695, %v911_v27 }
0x1939   :  { %v749_v23 = vmul.f32 %v2436_v22, %v746_v10  ;;  %2345 = vmatmul.msk.f32.gmra.mxu1 %vm247_vm14, %v3056_v59  ;;  %vm755_vm1 = vweird.f32 %v2436_v22  ;;  %v2438_v30 = vpop.eup %2437 }
0x193a   :  { %2439 = vpow2.f32 %v914_v32  ;;  %vm756_vm11 = vmor %vm754_vm9, %vm755_vm1  ;;  %v945_v46 = vsub.f32 1.0, %v2438_v30  ;;  %v949_v53 = vmul.f32 %v2438_v30, %v3144_v17 }
0x193b   :  { %v750_v31 = vmul.f32 %v2436_v22, %v749_v23 }
0x193c   :  { %v743_v11 = vpop.xlane.xlu0 %742 }
0x193d   :  { %v751_v34 = vmul.f32 0.5, %v750_v31  ;;  %v745_v35 = vmul.f32 %v743_v11, %v2976_v19  ;;  %v1130_v11 = vmul.f32 %v3056_v59, %v3225_v50 }
0x193f   :  { %v752_v38 = vsub.f32 1.5, %v751_v34  ;;  %v747_v20 = vadd.f32 1e-05, %v745_v35  ;;  %v1134_v35 = vsel %vm247_vm14, %v1130_v11, 0.0 }
0x1940   :  { %v2440_v43 = vpop.eup %2439 }
0x1941   :  { %v753_v25 = vmul.f32 %v2436_v22, %v752_v38  ;;  %2441 = vrsqrt.f32 %v747_v20  ;;  %v917_v49 = vadd.f32 1.0, %v2440_v43  ;;  %vm764_vm3 = vweird.f32 %v747_v20 }
0x1943   :  { %v757_v40 = vsel %vm756_vm11, %v2436_v22, %v753_v25  ;;  %2443 = vrcp.f32 %v917_v49 }
0x1944   :  { %v768_v41 = vmul.f32 %v757_v40, %v3292_v42 }
0x1946   :  { %v770_v33 = vmul.f32 %v3270_v51, %v768_v41 }
0x1947   :  { %v2442_v44 = vpop.eup %2441 }
0x1948   :  { %v759_v45 = vmul.f32 %v2442_v44, %v747_v20  ;;  %v772_v4 = vadd.f32 %v3275_v54, %v770_v33  ;;  %vm765_vm13 = vweird.f32 %v2442_v44 }
0x1949   :  { %vm766_vm4 = vmor %vm764_vm3, %vm765_vm13  ;;  %v2444_v2 = vpop.eup %2443 }
0x194a   :  { %v760_v60 = vmul.f32 %v2442_v44, %v759_v45  ;;  %v947_v52 = vmul.f32 %v945_v46, %v772_v4  ;;  %v946_v17 = vsub.f32 1.0, %v2444_v2  ;;  %v950_v28 = vmul.f32 %v2444_v2, %v3146_v18  ;;  %v2517_v18 = vld [vmem:[%s3536_s5] ss:$0 sm:$0xff] }
0x194c   :  { %v761_v55 = vmul.f32 0.5, %v760_v60  ;;  %v951_v6 = vadd.f32 %v949_v53, %v947_v52 }
0x194e   :  { %v762_v56 = vsub.f32 1.5, %v761_v55  ;;  %v953_v42 = vsel %vm154_vm0, %v951_v6, 0.0 }
0x194f   :  { %954 = vadd.xlane.f32.xlu0 %v953_v42 }
0x1950   :  { %v763_v39 = vmul.f32 %v2442_v44, %v762_v56 }
0x1952   :  { %v767_v57 = vsel %vm766_vm4, %v2442_v44, %v763_v39 }
0x1953   :  { %v769_v1 = vmul.f32 %v767_v57, %v3301_v48  ;;  %v3344_v48 = vpop.f32.mrf.mxu2 }
0x1955   :  { %v771_v9 = vmul.f32 %v3270_v51, %v769_v1 }
0x1957   :  { %v773_v24 = vadd.f32 %v3275_v54, %v771_v9 }
0x1959   :  { %v948_v63 = vmul.f32 %v946_v17, %v773_v24 }
0x195b   :  { %v952_v26 = vadd.f32 %v950_v28, %v948_v63  ;;  %v3346_v10 = vpop.f32.mrf.mxu2 }
0x195d   :  { %v956_v14 = vsel %vm154_vm0, %v952_v26, 0.0 }
0x195e   :  { %957 = vadd.xlane.f32.xlu1 %v956_v14 }
0x1963   :  { %v3348_v15 = vpop.f32.mrf.mxu2 }
0x1966   :  { %1132 = vadd.xlane.f32.xlu1 %v1131_v13 }
0x196b   :  { %v3350_v21 = vpop.f32.mrf.mxu2 }
0x19b3   :  { %v1954_v22 = vpop.f32.mrf.mxu2 }
0x19b4   :  { %v1955_v27 = vadd.f32 %v2517_v18, %v1954_v22 }
0x19b6   :  { %2338 = vmatmul.msk.f32.vlgmr.msrb.gmra.mxu0 %vm327_vm2, %v1955_v27 }
0x19b7   :  { %2340 = vmatpush.xpose.msk.msra.mxu0 %vm327_vm2, %v1955_v27 }
0x19be   :  { %2341 = vmatmul.msk.f32.vlgmr.msra.gmra.mxu0 %vm327_vm2, %v2982_v36 }
0x19c2   :  { %v955_v47 = vpop.xlane.xlu0 %954 }
0x19c3   :  { %v959_v23 = vmul.f32 %v955_v47, %v2976_v19 }
0x19c5   :  { %v961_v16 = vsub.f32 %v951_v6, %v959_v23 }
0x19c6   :  { %2342 = vmatmul.msk.f32.gmra.mxu0 %vm327_vm2, %v3042_v58 }
0x19c7   :  { %v963_v31 = vmul.f32 %v961_v16, %v961_v16 }
0x19c9   :  { %v965_v32 = vsel %vm154_vm0, %v963_v31, 0.0 }
0x19ca   :  { %966 = vadd.xlane.f32.xlu2 %v965_v32 }
0x19d1   :  { %v958_v34 = vpop.xlane.xlu1 %957 }
0x19d2   :  { %v960_v38 = vmul.f32 %v958_v34, %v2976_v19  ;;  %1135 = vadd.xlane.f32.xlu2 %v1134_v35 }
0x19d4   :  { %v962_v36 = vsub.f32 %v952_v26, %v960_v38 }
0x19d6   :  { %v964_v20 = vmul.f32 %v962_v36, %v962_v36 }
0x19d8   :  { %v968_v25 = vsel %vm154_vm0, %v964_v20, 0.0 }
0x19d9   :  { %969 = vadd.xlane.f32.xlu0 %v968_v25  ;;  %v1133_v40 = vpop.xlane.xlu1 %1132 }
0x19da   :  { %v1137_v58 = vsub.f32 0.0, %v1133_v40 }
0x19dc   :  { %v1139_v41 = vmul.f32 1.442695, %v1137_v58  ;;  %v1356_v58 = vmul.f32 %v2966_v12, %v3344_v48 }
0x19de   :  { %2445 = vpow2.f32 %v1139_v41  ;;  %v1358_v41 = vsel %vm247_vm14, %v1356_v58, 0.0 }
0x19e4   :  { %v2446_v44 = vpop.eup %2445 }
0x19e5   :  { %v1143_v49 = vadd.f32 1.0, %v2446_v44 }
0x1a3d   :  { %v967_v30 = vpop.xlane.xlu2 %966 }
0x1a3e   :  { %v971_v43 = vmul.f32 %v967_v30, %v2976_v19 }
0x1a40   :  { %v973_v33 = vadd.f32 1e-05, %v971_v43 }
0x1a42   :  { %2447 = vrsqrt.f32 %v973_v33  ;;  %vm981_vm5 = vweird.f32 %v973_v33 }
0x1a43   :  { %2449 = vrcp.f32 %v1143_v49 }
0x1a45   :  { %v1136_v50 = vpop.xlane.xlu2 %1135 }
0x1a46   :  { %v1138_v4 = vsub.f32 0.0, %v1136_v50 }
0x1a48   :  { %v2448_v45 = vpop.eup %2447  ;;  %v1141_v52 = vmul.f32 1.442695, %v1138_v4 }
0x1a49   :  { %v976_v46 = vmul.f32 %v2448_v45, %v973_v33  ;;  %vm982_vm2 = vweird.f32 %v2448_v45  ;;  %v2450_v2 = vpop.eup %2449 }
0x1a4a   :  { %2451 = vpow2.f32 %v1141_v52  ;;  %vm983_vm10 = vmor %vm981_vm5, %vm982_vm2  ;;  %v1172_v26 = vsub.f32 1.0, %v2450_v2  ;;  %v1176_v22 = vmul.f32 %v2450_v2, %v3185_v3 }
0x1a4b   :  { %v977_v60 = vmul.f32 %v2448_v45, %v976_v46 }
0x1a4c   :  { %v970_v53 = vpop.xlane.xlu0 %969 }
0x1a4d   :  { %v978_v55 = vmul.f32 0.5, %v977_v60  ;;  %v972_v6 = vmul.f32 %v970_v53, %v2976_v19  ;;  %v1977_v60 = vpop.f32.mrf.mxu0 }
0x1a4e   :  { %v1978_v52 = vadd.f32 %v1977_v60, %v2942_v37 }
0x1a4f   :  { %v979_v56 = vsub.f32 1.5, %v978_v55  ;;  %v974_v42 = vadd.f32 1e-05, %v972_v6 }
0x1a50   :  { %v2452_v9 = vpop.eup %2451  ;;  %v1980_v53 = vsel %vm357_vm6, %v1978_v52, -inf }
0x1a51   :  { %v980_v39 = vmul.f32 %v2448_v45, %v979_v56  ;;  %2453 = vrsqrt.f32 %v974_v42  ;;  %v1144_v14 = vadd.f32 1.0, %v2452_v9  ;;  %vm991_vm15 = vweird.f32 %v974_v42 }
0x1a53   :  { %v984_v57 = vsel %vm983_vm10, %v2448_v45, %v980_v39  ;;  %2455 = vrcp.f32 %v1144_v14 }
0x1a54   :  { %v995_v1 = vmul.f32 %v984_v57, %v961_v16 }
0x1a56   :  { %v997_v24 = vmul.f32 %v3270_v51, %v995_v1 }
0x1a57   :  { %v2454_v17 = vpop.eup %2453 }
0x1a58   :  { %v986_v63 = vmul.f32 %v2454_v17, %v974_v42  ;;  %v999_v28 = vadd.f32 %v3275_v54, %v997_v24  ;;  %vm992_vm12 = vweird.f32 %v2454_v17 }
0x1a59   :  { %vm993_vm1 = vmor %vm991_vm15, %vm992_vm12  ;;  %v2456_v11 = vpop.eup %2455 }
0x1a5a   :  { %v987_v0 = vmul.f32 %v2454_v17, %v986_v63  ;;  %v1174_v13 = vmul.f32 %v1172_v26, %v999_v28  ;;  %v1173_v38 = vsub.f32 1.0, %v2456_v11  ;;  %v1177_v20 = vmul.f32 %v2456_v11, %v3187_v5 }
0x1a5b   :  { %v1357_v5 = vmul.f32 %v3056_v59, %v3346_v10 }
0x1a5c   :  { %v988_v18 = vmul.f32 0.5, %v987_v0  ;;  %v1178_v27 = vadd.f32 %v1176_v22, %v1174_v13 }
0x1a5d   :  { %v1361_v45 = vsel %vm247_vm14, %v1357_v5, 0.0 }
0x1a5e   :  { %v989_v47 = vsub.f32 1.5, %v988_v18  ;;  %v1180_v23 = vsel %vm154_vm0, %v1178_v27, 0.0 }
0x1a5f   :  { %1181 = vadd.xlane.f32.xlu0 %v1180_v23 }
0x1a60   :  { %v990_v16 = vmul.f32 %v2454_v17, %v989_v47 }
0x1a62   :  { %v994_v31 = vsel %vm993_vm1, %v2454_v17, %v990_v16 }
0x1a63   :  { %v996_v32 = vmul.f32 %v994_v31, %v962_v36 }
0x1a65   :  { %v998_v34 = vmul.f32 %v3270_v51, %v996_v32 }
0x1a67   :  { %v1000_v35 = vadd.f32 %v3275_v54, %v998_v34 }
0x1a69   :  { %v1175_v3 = vmul.f32 %v1173_v38, %v1000_v35 }
0x1a6b   :  { %v1179_v25 = vadd.f32 %v1177_v20, %v1175_v3 }
0x1a6d   :  { %v1183_v40 = vsel %vm154_vm0, %v1179_v25, 0.0 }
0x1a6e   :  { %1184 = vadd.xlane.f32.xlu1 %v1183_v40 }
0x1a76   :  { %1359 = vadd.xlane.f32.xlu1 %v1358_v41 }
0x1ad2   :  { %v1182_v36 = vpop.xlane.xlu0 %1181 }
0x1ad3   :  { %v1186_v30 = vmul.f32 %v1182_v36, %v2976_v19 }
0x1ad5   :  { %v1188_v43 = vsub.f32 %v1178_v27, %v1186_v30 }
0x1ad7   :  { %v1190_v33 = vmul.f32 %v1188_v43, %v1188_v43 }
0x1ad9   :  { %v1192_v50 = vsel %vm154_vm0, %v1190_v33, 0.0 }
0x1ada   :  { %1193 = vadd.xlane.f32.xlu2 %v1192_v50 }
0x1ae1   :  { %v1185_v44 = vpop.xlane.xlu1 %1184 }
0x1ae2   :  { %v1187_v4 = vmul.f32 %v1185_v44, %v2976_v19  ;;  %1362 = vadd.xlane.f32.xlu2 %v1361_v45  ;;  %v1577_v44 = vpop.f32.mrf.mxu3 }
0x1ae4   :  { %v3387_v48 = vsub.f32 %v1179_v25, %v1187_v4 }
0x1ae6   :  { %v1191_v46 = vmul.f32 %v3387_v48, %v3387_v48 }
0x1ae8   :  { %v1195_v49 = vsel %vm154_vm0, %v1191_v46, 0.0  ;;  %v1583_v46 = vmul.f32 %v2966_v12, %v1577_v44 }
0x1ae9   :  { %1196 = vadd.xlane.f32.xlu0 %v1195_v49  ;;  %v1360_v10 = vpop.xlane.xlu1 %1359 }
0x1aea   :  { %v1364_v55 = vsub.f32 0.0, %v1360_v10 }
0x1aec   :  { %v1366_v6 = vmul.f32 1.442695, %v1364_v55 }
0x1aee   :  { %2457 = vpow2.f32 %v1366_v6 }
0x1af1   :  { %1981 = vmax.xlane.f32.xlu0 %v1980_v53  ;;  %v1585_v53 = vsel %vm247_vm14, %v1583_v46, 0.0 }
0x1af4   :  { %v2458_v1 = vpop.eup %2457 }
0x1af5   :  { %v1370_v17 = vadd.f32 1.0, %v2458_v1 }
0x1b4d   :  { %v1194_v56 = vpop.xlane.xlu2 %1193 }
0x1b4e   :  { %v1198_v42 = vmul.f32 %v1194_v56, %v2976_v19 }
0x1b50   :  { %v1200_v39 = vadd.f32 1e-05, %v1198_v42 }
0x1b52   :  { %2459 = vrsqrt.f32 %v1200_v39  ;;  %vm1208_vm11 = vweird.f32 %v1200_v39 }
0x1b53   :  { %2461 = vrcp.f32 %v1370_v17 }
0x1b55   :  { %v1363_v57 = vpop.xlane.xlu2 %1362 }
0x1b56   :  { %v1365_v9 = vsub.f32 0.0, %v1363_v57 }
0x1b58   :  { %v2460_v2 = vpop.eup %2459  ;;  %v1368_v37 = vmul.f32 1.442695, %v1365_v9  ;;  %v1580_v9 = vpop.f32.mrf.mxu3 }
0x1b59   :  { %v1203_v24 = vmul.f32 %v2460_v2, %v1200_v39  ;;  %vm1209_vm9 = vweird.f32 %v2460_v2  ;;  %v2462_v23 = vpop.eup %2461 }
0x1b5a   :  { %2463 = vpow2.f32 %v1368_v37  ;;  %vm1210_vm13 = vmor %vm1208_vm11, %vm1209_vm9  ;;  %v1399_v3 = vsub.f32 1.0, %v2462_v23  ;;  %v1403_v58 = vmul.f32 %v2462_v23, %v3227_v61 }
0x1b5b   :  { %v1204_v63 = vmul.f32 %v2460_v2, %v1203_v24 }
0x1b5c   :  { %v1197_v28 = vpop.xlane.xlu0 %1196 }
0x1b5d   :  { %v1205_v26 = vmul.f32 0.5, %v1204_v63  ;;  %v1199_v14 = vmul.f32 %v1197_v28, %v2976_v19  ;;  %v1584_v63 = vmul.f32 %v3056_v59, %v1580_v9 }
0x1b5f   :  { %v1206_v0 = vsub.f32 1.5, %v1205_v26  ;;  %v1201_v13 = vadd.f32 1e-05, %v1199_v14  ;;  %v1588_v37 = vsel %vm247_vm14, %v1584_v63, 0.0  ;;  %v1804_v63 = vpop.f32.mrf.mxu1 }
0x1b60   :  { %v2464_v31 = vpop.eup %2463 }
0x1b61   :  { %v1207_v22 = vmul.f32 %v2460_v2, %v1206_v0  ;;  %2465 = vrsqrt.f32 %v1201_v13  ;;  %v1371_v20 = vadd.f32 1.0, %v2464_v31  ;;  %vm1218_vm4 = vweird.f32 %v1201_v13 }
0x1b63   :  { %v1211_v18 = vsel %vm1210_vm13, %v2460_v2, %v1207_v22 }
0x1b64   :  { %v1222_v27 = vmul.f32 %v1211_v18, %v1188_v43  ;;  %v1982_v47 = vpop.xlane.xlu0 %1981 }
0x1b65   :  { %v1983_v16 = vsub.f32 %v1978_v52, %v1982_v47 }
0x1b66   :  { %v1224_v32 = vmul.f32 %v3270_v51, %v1222_v27 }
0x1b67   :  { %v2466_v11 = vpop.eup %2465  ;;  %v1984_v34 = vmul.f32 1.442695, %v1983_v16 }
0x1b68   :  { %v1213_v35 = vmul.f32 %v2466_v11, %v1201_v13  ;;  %v1226_v38 = vadd.f32 %v3275_v54, %v1224_v32  ;;  %vm1219_vm3 = vweird.f32 %v2466_v11 }
0x1b69   :  { %2467 = vpow2.f32 %v1984_v34  ;;  %vm1220_vm2 = vmor %vm1218_vm4, %vm1219_vm3 }
0x1b6a   :  { %v1214_v25 = vmul.f32 %v2466_v11, %v1213_v35  ;;  %v1401_v40 = vmul.f32 %v1399_v3, %v1226_v38  ;;  %2469 = vrcp.f32 %v1371_v20 }
0x1b6c   :  { %v1215_v41 = vmul.f32 0.5, %v1214_v25  ;;  %v1405_v36 = vadd.f32 %v1403_v58, %v1401_v40 }
0x1b6e   :  { %v1216_v30 = vsub.f32 1.5, %v1215_v41  ;;  %v1407_v43 = vsel %vm154_vm0, %v1405_v36, 0.0 }
0x1b6f   :  { %v2468_v33 = vpop.eup %2467  ;;  %1408 = vadd.xlane.f32.xlu1 %v1407_v43 }
0x1b70   :  { %v1217_v50 = vmul.f32 %v2466_v11, %v1216_v30  ;;  %v1986_v5 = vsel %vm357_vm6, %v2468_v33, 0.0  ;;  %v2470_v61 = vpop.eup %2469 }
0x1b71   :  { %1987 = vadd.xlane.f32.xlu0 %v1986_v5  ;;  %v1400_v52 = vsub.f32 1.0, %v2470_v61  ;;  %v1404_v55 = vmul.f32 %v2470_v61, %v3229_v62 }
0x1b72   :  { %v1221_v45 = vsel %vm1220_vm2, %v2466_v11, %v1217_v50 }
0x1b73   :  { %v1223_v4 = vmul.f32 %v1221_v45, %v3387_v48 }
0x1b75   :  { %v1225_v49 = vmul.f32 %v3270_v51, %v1223_v4 }
0x1b77   :  { %v1227_v60 = vadd.f32 %v3275_v54, %v1225_v49 }
0x1b79   :  { %1586 = vadd.xlane.f32.xlu0 %v1585_v53  ;;  %v1402_v10 = vmul.f32 %v1400_v52, %v1227_v60 }
0x1b7b   :  { %v1406_v6 = vadd.f32 %v1404_v55, %v1402_v10 }
0x1b7d   :  { %v1410_v56 = vsel %vm154_vm0, %v1406_v6, 0.0 }
0x1b7e   :  { %1411 = vadd.xlane.f32.xlu2 %v1410_v56 }
0x1be2   :  { %v1409_v42 = vpop.xlane.xlu1 %1408 }
0x1be3   :  { %v1413_v48 = vmul.f32 %v1409_v42, %v2976_v19 }
0x1be4   :  { %v1988_v39 = vpop.xlane.xlu0 %1987 }
0x1be5   :  { %v1415_v57 = vsub.f32 %v1405_v36, %v1413_v48  ;;  %2471 = vrcp.f32 %v1988_v39 }
0x1be7   :  { %v1417_v1 = vmul.f32 %v1415_v57, %v1415_v57 }
0x1be9   :  { %v1419_v2 = vsel %vm154_vm0, %v1417_v1, 0.0 }
0x1bea   :  { %1420 = vadd.xlane.f32.xlu1 %v1419_v2 }
0x1beb   :  { %v2472_v24 = vpop.eup %2471 }
0x1bec   :  { %v1990_v17 = vmul.f32 %v2472_v24, %v2468_v33  ;;  %v1587_v13 = vpop.xlane.xlu0 %1586 }
0x1bed   :  { %v1591_v22 = vsub.f32 0.0, %v1587_v13 }
0x1bee   :  { %2339 = vmatmul.msk.f32.vlgmr.msra.gmra.mxu2 %vm369_vm7, %v1990_v17 }
0x1bef   :  { %v1593_v18 = vmul.f32 1.442695, %v1591_v22  ;;  %v1807_v22 = vpop.f32.mrf.mxu1 }
0x1bf1   :  { %v1412_v62 = vpop.xlane.xlu2 %1411  ;;  %2473 = vpow2.f32 %v1593_v18 }
0x1bf2   :  { %v1414_v28 = vmul.f32 %v1412_v62, %v2976_v19  ;;  %1589 = vadd.xlane.f32.xlu1 %v1588_v37  ;;  %v1810_v62 = vmul.f32 %v2966_v12, %v1804_v63 }
0x1bf4   :  { %v1416_v26 = vsub.f32 %v1406_v6, %v1414_v28  ;;  %v1812_v37 = vsel %vm247_vm14, %v1810_v62, 0.0  ;;  %v2031_v62 = vpop.f32.mrf.mxu0 }
0x1bf6   :  { %v1418_v14 = vmul.f32 %v1416_v26, %v1416_v26 }
0x1bf7   :  { %v2474_v31 = vpop.eup %2473 }
0x1bf8   :  { %v1422_v0 = vsel %vm154_vm0, %v1418_v14, 0.0  ;;  %v1597_v35 = vadd.f32 1.0, %v2474_v31 }
0x1bf9   :  { %1423 = vadd.xlane.f32.xlu2 %v1422_v0 }
0x1c5d   :  { %v1421_v27 = vpop.xlane.xlu1 %1420 }
0x1c5e   :  { %v1425_v47 = vmul.f32 %v1421_v27, %v2976_v19 }
0x1c60   :  { %v1427_v23 = vadd.f32 1e-05, %v1425_v47 }
0x1c62   :  { %2475 = vrsqrt.f32 %v1427_v23  ;;  %vm1435_vm5 = vweird.f32 %v1427_v23 }
0x1c63   :  { %2477 = vrcp.f32 %v1597_v35 }
0x1c65   :  { %v1590_v16 = vpop.xlane.xlu1 %1589 }
0x1c66   :  { %v1592_v11 = vsub.f32 0.0, %v1590_v16 }
0x1c68   :  { %v2476_v32 = vpop.eup %2475  ;;  %v1595_v3 = vmul.f32 1.442695, %v1592_v11 }
0x1c69   :  { %v1430_v34 = vmul.f32 %v2476_v32, %v1427_v23  ;;  %vm1436_vm7 = vweird.f32 %v2476_v32  ;;  %v2478_v33 = vpop.eup %2477 }
0x1c6a   :  { %2479 = vpow2.f32 %v1595_v3  ;;  %vm1437_vm10 = vmor %vm1435_vm5, %vm1436_vm7  ;;  %v1626_v61 = vsub.f32 1.0, %v2478_v33  ;;  %v1630_v52 = vmul.f32 %v2478_v33, %v3348_v15 }
0x1c6b   :  { %v1431_v38 = vmul.f32 %v2476_v32, %v1430_v34 }
0x1c6c   :  { %v1424_v20 = vpop.xlane.xlu2 %1423 }
0x1c6d   :  { %v1432_v25 = vmul.f32 0.5, %v1431_v38  ;;  %v1426_v40 = vmul.f32 %v1424_v20, %v2976_v19 }
0x1c6f   :  { %v1433_v58 = vsub.f32 1.5, %v1432_v25  ;;  %v1428_v41 = vadd.f32 1e-05, %v1426_v40 }
0x1c70   :  { %v2480_v50 = vpop.eup %2479 }
0x1c71   :  { %v1434_v36 = vmul.f32 %v2476_v32, %v1433_v58  ;;  %2481 = vrsqrt.f32 %v1428_v41  ;;  %v1598_v46 = vadd.f32 1.0, %v2480_v50  ;;  %vm1445_vm15 = vweird.f32 %v1428_v41 }
0x1c73   :  { %v1438_v30 = vsel %vm1437_vm10, %v2476_v32, %v1434_v36  ;;  %2483 = vrcp.f32 %v1598_v46  ;;  %v2011_v32 = vpop.f32.mrf.mxu2 }
0x1c74   :  { %v1449_v43 = vmul.f32 %v1438_v30, %v1415_v57  ;;  %v2136_v11 = vadd.f32 %v2011_v32, %v3320_v7 }
0x1c76   :  { %v1451_v5 = vmul.f32 %v3270_v51, %v1449_v43  ;;  %v2137_v34 = vsel %vm541_vm8, %v2136_v11, 0.0 }
0x1c77   :  { %v2482_v44 = vpop.eup %2481 }
0x1c78   :  { %v1440_v45 = vmul.f32 %v2482_v44, %v1428_v41  ;;  %v1453_v4 = vadd.f32 %v3275_v54, %v1451_v5  ;;  %vm1446_vm12 = vweird.f32 %v2482_v44 }
0x1c79   :  { %vm1447_vm1 = vmor %vm1445_vm15, %vm1446_vm12  ;;  %v2484_v39 = vpop.eup %2483 }
0x1c7a   :  { %v1441_v49 = vmul.f32 %v2482_v44, %v1440_v45  ;;  %v1628_v60 = vmul.f32 %v1626_v61, %v1453_v4  ;;  %v1627_v2 = vsub.f32 1.0, %v2484_v39  ;;  %v1631_v9 = vmul.f32 %v2484_v39, %v3350_v21 }
0x1c7b   :  { %v1811_v21 = vmul.f32 %v3056_v59, %v1807_v22 }
0x1c7c   :  { %v1442_v53 = vmul.f32 0.5, %v1441_v49  ;;  %v1632_v10 = vadd.f32 %v1630_v52, %v1628_v60 }
0x1c7d   :  { %v1815_v27 = vsel %vm247_vm14, %v1811_v21, 0.0 }
0x1c7e   :  { %v1443_v55 = vsub.f32 1.5, %v1442_v53  ;;  %v1634_v6 = vsel %vm154_vm0, %v1632_v10, 0.0 }
0x1c7f   :  { %1635 = vadd.xlane.f32.xlu2 %v1634_v6 }
0x1c80   :  { %v1444_v56 = vmul.f32 %v2482_v44, %v1443_v55 }
0x1c82   :  { %v1448_v42 = vsel %vm1447_vm1, %v2482_v44, %v1444_v56 }
0x1c83   :  { %v1450_v48 = vmul.f32 %v1448_v42, %v1416_v26  ;;  %v1847_v42 = vpop.f32.mrf.mxu3 }
0x1c85   :  { %v1452_v57 = vmul.f32 %v3270_v51, %v1450_v48 }
0x1c87   :  { %v1454_v1 = vadd.f32 %v3275_v54, %v1452_v57 }
0x1c89   :  { %v1629_v15 = vmul.f32 %v1627_v2, %v1454_v1 }
0x1c8b   :  { %v1633_v24 = vadd.f32 %v1631_v9, %v1629_v15 }
0x1c8d   :  { %v1637_v17 = vsel %vm154_vm0, %v1633_v24, 0.0 }
0x1c8e   :  { %1638 = vadd.xlane.f32.xlu0 %v1637_v17 }
0x1c96   :  { %1813 = vadd.xlane.f32.xlu0 %v1812_v37 }
0x1cf2   :  { %v1636_v28 = vpop.xlane.xlu2 %1635 }
0x1cf3   :  { %v1640_v26 = vmul.f32 %v1636_v28, %v2976_v19 }
0x1cf5   :  { %v1642_v14 = vsub.f32 %v1632_v10, %v1640_v26 }
0x1cf7   :  { %v1644_v0 = vmul.f32 %v1642_v14, %v1642_v14 }
0x1cf9   :  { %v1646_v13 = vsel %vm154_vm0, %v1644_v0, 0.0  ;;  %v2037_v0 = vmul.f32 %v2966_v12, %v2031_v62 }
0x1cfa   :  { %1647 = vadd.xlane.f32.xlu1 %v1646_v13 }
0x1d01   :  { %v1639_v18 = vpop.xlane.xlu0 %1638 }
0x1d02   :  { %v1641_v47 = vmul.f32 %v1639_v18, %v2976_v19  ;;  %1816 = vadd.xlane.f32.xlu1 %v1815_v27  ;;  %v2039_v18 = vsel %vm247_vm14, %v2037_v0, 0.0 }
0x1d04   :  { %v3432_v23 = vsub.f32 %v1633_v24, %v1641_v47 }
0x1d06   :  { %v1645_v16 = vmul.f32 %v3432_v23, %v3432_v23 }
0x1d08   :  { %v1649_v31 = vsel %vm154_vm0, %v1645_v16, 0.0  ;;  %v1850_v16 = vpop.f32.mrf.mxu3 }
0x1d09   :  { %1650 = vadd.xlane.f32.xlu2 %v1649_v31  ;;  %v1814_v35 = vpop.xlane.xlu0 %1813 }
0x1d0a   :  { %v1818_v38 = vsub.f32 0.0, %v1814_v35 }
0x1d0c   :  { %v1820_v3 = vmul.f32 1.442695, %v1818_v38  ;;  %v2166_v38 = vld [vmem:[%s3545_s14 + $0x10] sm:$0xff] }
0x1d0e   :  { %2485 = vpow2.f32 %v1820_v3 }
0x1d11   :  { %2138 = vadd.xlane.f32.xlu2 %v2137_v34 }
0x1d14   :  { %v2486_v41 = vpop.eup %2485 }
0x1d15   :  { %v1824_v33 = vadd.f32 1.0, %v2486_v41 }
0x1d6d   :  { %v1648_v20 = vpop.xlane.xlu1 %1647 }
0x1d6e   :  { %v1652_v25 = vmul.f32 %v1648_v20, %v2976_v19 }
0x1d70   :  { %v1654_v40 = vadd.f32 1e-05, %v1652_v25 }
0x1d72   :  { %2487 = vrsqrt.f32 %v1654_v40  ;;  %vm1662_vm11 = vweird.f32 %v1654_v40 }
0x1d73   :  { %2489 = vrcp.f32 %v1824_v33  ;;  %v2034_v33 = vpop.f32.mrf.mxu0 }
0x1d75   :  { %v1817_v58 = vpop.xlane.xlu1 %1816 }
0x1d76   :  { %v1819_v30 = vsub.f32 0.0, %v1817_v58 }
0x1d78   :  { %v2488_v36 = vpop.eup %2487  ;;  %v1822_v7 = vmul.f32 1.442695, %v1819_v30 }
0x1d79   :  { %v1657_v43 = vmul.f32 %v2488_v36, %v1654_v40  ;;  %vm1663_vm9 = vweird.f32 %v2488_v36  ;;  %v2490_v53 = vpop.eup %2489 }
0x1d7a   :  { %2491 = vpow2.f32 %v1822_v7  ;;  %vm1664_vm13 = vmor %vm1662_vm11, %vm1663_vm9  ;;  %v1853_v1 = vsub.f32 1.0, %v2490_v53  ;;  %v1857_v15 = vmul.f32 %v2490_v53, %v1847_v42  ;;  %v2038_v7 = vmul.f32 %v3056_v59, %v2034_v33 }
0x1d7b   :  { %v1658_v50 = vmul.f32 %v2488_v36, %v1657_v43 }
0x1d7c   :  { %v1651_v5 = vpop.xlane.xlu2 %1650 }
0x1d7d   :  { %v1659_v44 = vmul.f32 0.5, %v1658_v50  ;;  %v1653_v45 = vmul.f32 %v1651_v5, %v2976_v19 }
0x1d7f   :  { %v1660_v4 = vsub.f32 1.5, %v1659_v44  ;;  %v1655_v61 = vadd.f32 1e-05, %v1653_v45 }
0x1d80   :  { %v2492_v55 = vpop.eup %2491 }
0x1d81   :  { %v1661_v46 = vmul.f32 %v2488_v36, %v1660_v4  ;;  %2493 = vrsqrt.f32 %v1655_v61  ;;  %v1825_v9 = vadd.f32 1.0, %v2492_v55  ;;  %vm1672_vm4 = vweird.f32 %v1655_v61 }
0x1d83   :  { %v1665_v49 = vsel %vm1664_vm13, %v2488_v36, %v1661_v46  ;;  %2495 = vrcp.f32 %v1825_v9 }
0x1d84   :  { %v1676_v60 = vmul.f32 %v1665_v49, %v1642_v14  ;;  %v2139_v52 = vpop.xlane.xlu2 %2138 }
0x1d85   :  { %v2140_v10 = vmul.f32 %v2139_v52, %v2976_v19 }
0x1d86   :  { %v1678_v6 = vmul.f32 %v3270_v51, %v1676_v60 }
0x1d87   :  { %v2494_v56 = vpop.eup %2493  ;;  %v3443_v48 = vsub.f32 %v2136_v11, %v2140_v10 }
0x1d88   :  { %v1667_v39 = vmul.f32 %v2494_v56, %v1655_v61  ;;  %v1680_v57 = vadd.f32 %v3275_v54, %v1678_v6  ;;  %vm1673_vm3 = vweird.f32 %v2494_v56  ;;  %v2042_v61 = vsel %vm247_vm14, %v2038_v7, 0.0 }
0x1d89   :  { %v2142_v2 = vmul.f32 %v3443_v48, %v3443_v48  ;;  %vm1674_vm2 = vmor %vm1672_vm4, %vm1673_vm3  ;;  %v2496_v27 = vpop.eup %2495 }
0x1d8a   :  { %v1668_v24 = vmul.f32 %v2494_v56, %v1667_v39  ;;  %v1855_v17 = vmul.f32 %v1853_v1, %v1680_v57  ;;  %v1854_v32 = vsub.f32 1.0, %v2496_v27  ;;  %v1858_v11 = vmul.f32 %v2496_v27, %v1850_v16  ;;  %v3489_v27 = vld [vmem:[%s3543_s12] ss:$0 sm:$0xff] }
0x1d8b   :  { %v2143_v63 = vsel %vm541_vm8, %v2142_v2, 0.0 }
0x1d8c   :  { %v1669_v37 = vmul.f32 0.5, %v1668_v24  ;;  %2144 = vadd.xlane.f32.xlu2 %v2143_v63  ;;  %v1859_v28 = vadd.f32 %v1857_v15, %v1855_v17 }
0x1d8e   :  { %v1670_v26 = vsub.f32 1.5, %v1669_v37  ;;  %v1861_v14 = vsel %vm154_vm0, %v1859_v28, 0.0 }
0x1d8f   :  { %1862 = vadd.xlane.f32.xlu0 %v1861_v14 }
0x1d90   :  { %v1671_v13 = vmul.f32 %v2494_v56, %v1670_v26 }
0x1d92   :  { %v1675_v22 = vsel %vm1674_vm2, %v2494_v56, %v1671_v13 }
0x1d93   :  { %v1677_v21 = vmul.f32 %v1675_v22, %v3432_v23  ;;  %v2167_v23 = vld [vmem:[%s3545_s14 + $0x18] sm:$0xff] }
0x1d94   :  { %2040 = vadd.xlane.f32.xlu2 %v2039_v18  ;;  %2187 = vmatpush.msra.mxu3 %v2167_v23 }
0x1d95   :  { %v1679_v47 = vmul.f32 %v3270_v51, %v1677_v21  ;;  %v2165_v51 = vld [vmem:[%s3545_s14 + $0x8] sm:$0xff] }
0x1d96   :  { %2188 = vmatpush.msra.mxu3 %v2166_v38 }
0x1d97   :  { %v1681_v31 = vadd.f32 %v3275_v54, %v1679_v47  ;;  %v2164_v54 = vld [vmem:[%s3545_s14] sm:$0xff] }
0x1d98   :  { %2189 = vmatpush.msra.mxu3 %v2165_v51 }
0x1d99   :  { %v1856_v34 = vmul.f32 %v1854_v32, %v1681_v31  ;;  %v2074_v31 = vpop.f32.mrf.mxu1 }
0x1d9a   :  { %2190 = vmatpush.msra.mxu3 %v2164_v54 }
0x1d9b   :  { %v1860_v12 = vadd.f32 %v1858_v11, %v1856_v34  ;;  %v3495_v11 = vld [vmem:[%s3544_s13] ss:$0 sm:$0xff] }
0x1d9d   :  { %v1864_v35 = vsel %vm154_vm0, %v1860_v12, 0.0 }
0x1d9e   :  { %1865 = vadd.xlane.f32.xlu1 %v1864_v35 }
0x1da1   :  { %v2077_v7 = vpop.f32.mrf.mxu1 }
0x1dff   :  { %v2145_v3 = vpop.xlane.xlu2 %2144 }
0x1e00   :  { %v2146_v20 = vmul.f32 %v2145_v3, %v2976_v19  ;;  %v2368_v3 = vld [vmem:[%s3546_s15] ss:$0 sm:$0xff] }
0x1e02   :  { %v2147_v25 = vadd.f32 1e-05, %v2146_v20  ;;  %v1863_v40 = vpop.xlane.xlu0 %1862 }
0x1e03   :  { %v1867_v58 = vmul.f32 %v1863_v40, %v2976_v19 }
0x1e04   :  { %2497 = vrsqrt.f32 %v2147_v25  ;;  %vm2154_vm5 = vweird.f32 %v2147_v25 }
0x1e05   :  { %v1869_v41 = vsub.f32 %v1859_v28, %v1867_v58 }
0x1e07   :  { %v1871_v36 = vmul.f32 %v1869_v41, %v1869_v41  ;;  %v2041_v56 = vpop.xlane.xlu2 %2040 }
0x1e08   :  { %v2045_v42 = vsub.f32 0.0, %v2041_v56 }
0x1e09   :  { %v1873_v30 = vsel %vm154_vm0, %v1871_v36, 0.0 }
0x1e0a   :  { %v2498_v43 = vpop.eup %2497  ;;  %1874 = vadd.xlane.f32.xlu0 %v1873_v30  ;;  %v2047_v39 = vmul.f32 1.442695, %v2045_v42 }
0x1e0b   :  { %v2149_v50 = vmul.f32 %v2498_v43, %v2147_v25  ;;  %vm2155_vm7 = vweird.f32 %v2498_v43 }
0x1e0c   :  { %vm2156_vm10 = vmor %vm2154_vm5, %vm2155_vm7  ;;  %2499 = vpow2.f32 %v2047_v39 }
0x1e0d   :  { %v2150_v5 = vmul.f32 %v2498_v43, %v2149_v50 }
0x1e0f   :  { %v2151_v44 = vmul.f32 0.5, %v2150_v5 }
0x1e11   :  { %v2152_v45 = vsub.f32 1.5, %v2151_v44  ;;  %v1866_v4 = vpop.xlane.xlu1 %1865 }
0x1e12   :  { %v1868_v46 = vmul.f32 %v1866_v4, %v2976_v19  ;;  %2043 = vadd.xlane.f32.xlu0 %v2042_v61 }
0x1e13   :  { %v2153_v49 = vmul.f32 %v2498_v43, %v2152_v45 }
0x1e14   :  { %v3474_v60 = vsub.f32 %v1860_v12, %v1868_v46 }
0x1e15   :  { %v2157_v52 = vsel %vm2156_vm10, %v2498_v43, %v2153_v49 }
0x1e16   :  { %v2158_v53 = vmul.f32 %v2157_v52, %v3443_v48  ;;  %v1872_v59 = vmul.f32 %v3474_v60, %v3474_v60 }
0x1e18   :  { %v2159_v10 = vmul.f32 %v3310_v29, %v2158_v53  ;;  %v1876_v55 = vsel %vm154_vm0, %v1872_v59, 0.0  ;;  %v2500_v29 = vpop.eup %2499 }
0x1e19   :  { %1877 = vadd.xlane.f32.xlu1 %v1876_v55  ;;  %v2051_v17 = vadd.f32 1.0, %v2500_v29 }
0x1e1a   :  { %v2160_v6 = vadd.f32 %v3317_v8, %v2159_v10 }
0x1e1c   :  { %2346 = vmatmul.msk.f32.vlgmr.msra.gmra.mxu3 %vm154_vm0, %v2160_v6  ;;  %2161 = vst.msk [vmem:[#allocation11] sm:$0xf] %vm541_vm8, %v2160_v6 }
0x1e1d   :  { %2206 = dma.vmem_to_hbm [thread:$0]  %s2202_s0, 64, %s2204_s6, [#allocation4]  }
0x1e7d   :  { %v1875_v57 = vpop.xlane.xlu0 %1874 }
0x1e7e   :  { %v1879_v48 = vmul.f32 %v1875_v57, %v2976_v19 }
0x1e80   :  { %v1881_v1 = vadd.f32 1e-05, %v1879_v48 }
0x1e82   :  { %2501 = vrsqrt.f32 %v1881_v1  ;;  %vm1889_vm14 = vweird.f32 %v1881_v1 }
0x1e83   :  { %2503 = vrcp.f32 %v2051_v17 }
0x1e85   :  { %v2044_v2 = vpop.xlane.xlu0 %2043 }
0x1e86   :  { %v2046_v9 = vsub.f32 0.0, %v2044_v2 }
0x1e88   :  { %v2502_v15 = vpop.eup %2501  ;;  %v2049_v63 = vmul.f32 1.442695, %v2046_v9 }
0x1e89   :  { %v1884_v24 = vmul.f32 %v2502_v15, %v1881_v1  ;;  %vm1890_vm8 = vweird.f32 %v2502_v15  ;;  %v2504_v21 = vpop.eup %2503 }
0x1e8a   :  { %2505 = vpow2.f32 %v2049_v63  ;;  %vm1891_vm12 = vmor %vm1889_vm14, %vm1890_vm8  ;;  %v2080_v12 = vsub.f32 1.0, %v2504_v21  ;;  %v2084_v35 = vmul.f32 %v2504_v21, %v2074_v31 }
0x1e8b   :  { %v1885_v8 = vmul.f32 %v2502_v15, %v1884_v24 }
0x1e8c   :  { %v1878_v62 = vpop.xlane.xlu1 %1877 }
0x1e8d   :  { %v1886_v37 = vmul.f32 0.5, %v1885_v8  ;;  %v1880_v28 = vmul.f32 %v1878_v62, %v2976_v19 }
0x1e8f   :  { %v1887_v26 = vsub.f32 1.5, %v1886_v37  ;;  %v1882_v14 = vadd.f32 1e-05, %v1880_v28 }
0x1e90   :  { %v2506_v18 = vpop.eup %2505 }
0x1e91   :  { %v1888_v0 = vmul.f32 %v2502_v15, %v1887_v26  ;;  %2507 = vrsqrt.f32 %v1882_v14  ;;  %v2052_v23 = vadd.f32 1.0, %v2506_v18  ;;  %vm1899_vm1 = vweird.f32 %v1882_v14 }
0x1e93   :  { %v1892_v13 = vsel %vm1891_vm12, %v2502_v15, %v1888_v0  ;;  %2509 = vrcp.f32 %v2052_v23 }
0x1e94   :  { %v1903_v22 = vmul.f32 %v1892_v13, %v1869_v41 }
0x1e96   :  { %v1905_v47 = vmul.f32 %v3489_v27, %v1903_v22 }
0x1e97   :  { %v2508_v16 = vpop.eup %2507 }
0x1e98   :  { %v1894_v32 = vmul.f32 %v2508_v16, %v1882_v14  ;;  %v1907_v34 = vadd.f32 %v3495_v11, %v1905_v47  ;;  %vm1900_vm15 = vweird.f32 %v2508_v16 }
0x1e99   :  { %vm1901_vm9 = vmor %vm1899_vm1, %vm1900_vm15  ;;  %v2510_v33 = vpop.eup %2509 }
0x1e9a   :  { %v1895_v38 = vmul.f32 %v2508_v16, %v1894_v32  ;;  %v2082_v51 = vmul.f32 %v2080_v12, %v1907_v34  ;;  %v2081_v44 = vsub.f32 1.0, %v2510_v33  ;;  %v2085_v45 = vmul.f32 %v2510_v33, %v2077_v7 }
0x1e9c   :  { %v1896_v54 = vmul.f32 0.5, %v1895_v38  ;;  %v2086_v20 = vadd.f32 %v2084_v35, %v2082_v51 }
0x1e9e   :  { %v1897_v25 = vsub.f32 1.5, %v1896_v54  ;;  %v2088_v40 = vsel %vm154_vm0, %v2086_v20, 0.0 }
0x1e9f   :  { %v2192_v58 = vpop.f32.mrf.mxu3  ;;  %2089 = vadd.xlane.f32.xlu1 %v2088_v40 }
0x1ea0   :  { %v1898_v41 = vmul.f32 %v2508_v16, %v1897_v25  ;;  %v2193_v36 = vadd.f32 %v2368_v3, %v2192_v58 }
0x1ea2   :  { %v1902_v30 = vsel %vm1901_vm9, %v2508_v16, %v1898_v41  ;;  %2195 = vst.msk [vmem:[#allocation14] sm:$0xf] %vm357_vm6, %v2193_v36 }
0x1ea3   :  { %v1904_v43 = vmul.f32 %v1902_v30, %v3474_v60 }
0x1ea5   :  { %v1906_v50 = vmul.f32 %v3489_v27, %v1904_v43 }
0x1ea7   :  { %v1908_v5 = vadd.f32 %v3495_v11, %v1906_v50 }
0x1ea9   :  { %v2083_v4 = vmul.f32 %v2081_v44, %v1908_v5 }
0x1eab   :  { %v2087_v61 = vadd.f32 %v2085_v45, %v2083_v4 }
0x1ead   :  { %v2091_v46 = vsel %vm154_vm0, %v2087_v61, 0.0 }
0x1eae   :  { %2092 = vadd.xlane.f32.xlu2 %v2091_v46 }
0x1f12   :  { %v2090_v49 = vpop.xlane.xlu1 %2089 }
0x1f13   :  { %v2094_v52 = vmul.f32 %v2090_v49, %v2976_v19 }
0x1f15   :  { %v2096_v53 = vsub.f32 %v2086_v20, %v2094_v52 }
0x1f17   :  { %v2098_v59 = vmul.f32 %v2096_v53, %v2096_v53 }
0x1f19   :  { %v2100_v60 = vsel %vm154_vm0, %v2098_v59, 0.0 }
0x1f1a   :  { %2101 = vadd.xlane.f32.xlu0 %v2100_v60 }
0x1f21   :  { %v2093_v10 = vpop.xlane.xlu2 %2092 }
0x1f22   :  { %v2095_v55 = vmul.f32 %v2093_v10, %v2976_v19 }
0x1f24   :  { %v2097_v6 = vsub.f32 %v2087_v61, %v2095_v55 }
0x1f26   :  { %v2099_v56 = vmul.f32 %v2097_v6, %v2097_v6 }
0x1f28   :  { %v2103_v42 = vsel %vm154_vm0, %v2099_v56, 0.0 }
0x1f29   :  { %2104 = vadd.xlane.f32.xlu1 %v2103_v42 }
0x1f8d   :  { %v2102_v39 = vpop.xlane.xlu0 %2101 }
0x1f8e   :  { %v2106_v57 = vmul.f32 %v2102_v39, %v2976_v19 }
0x1f90   :  { %v2108_v48 = vadd.f32 1e-05, %v2106_v57 }
0x1f92   :  { %2511 = vrsqrt.f32 %v2108_v48  ;;  %vm2116_vm11 = vweird.f32 %v2108_v48 }
0x1f98   :  { %v2512_v1 = vpop.eup %2511 }
0x1f99   :  { %v2111_v2 = vmul.f32 %v2512_v1, %v2108_v48  ;;  %vm2117_vm6 = vweird.f32 %v2512_v1 }
0x1f9a   :  { %vm2118_vm13 = vmor %vm2116_vm11, %vm2117_vm6 }
0x1f9b   :  { %v2112_v29 = vmul.f32 %v2512_v1, %v2111_v2 }
0x1f9c   :  { %v2105_v15 = vpop.xlane.xlu1 %2104 }
0x1f9d   :  { %v2113_v9 = vmul.f32 0.5, %v2112_v29  ;;  %v2107_v24 = vmul.f32 %v2105_v15, %v2976_v19 }
0x1f9f   :  { %v2114_v17 = vsub.f32 1.5, %v2113_v9  ;;  %v2109_v8 = vadd.f32 1e-05, %v2107_v24 }
0x1fa1   :  { %v2115_v63 = vmul.f32 %v2512_v1, %v2114_v17  ;;  %2513 = vrsqrt.f32 %v2109_v8  ;;  %vm2126_vm4 = vweird.f32 %v2109_v8 }
0x1fa3   :  { %v2119_v62 = vsel %vm2118_vm13, %v2512_v1, %v2115_v63 }
0x1fa4   :  { %v2130_v37 = vmul.f32 %v2119_v62, %v2096_v53 }
0x1fa6   :  { %v2132_v28 = vmul.f32 %v3489_v27, %v2130_v37 }
0x1fa7   :  { %v2514_v26 = vpop.eup %2513 }
0x1fa8   :  { %v2121_v14 = vmul.f32 %v2514_v26, %v2109_v8  ;;  %v2134_v0 = vadd.f32 %v3495_v11, %v2132_v28  ;;  %vm2127_vm3 = vweird.f32 %v2514_v26 }
0x1fa9   :  { %vm2128_vm2 = vmor %vm2126_vm4, %vm2127_vm3 }
0x1faa   :  { %v2122_v13 = vmul.f32 %v2514_v26, %v2121_v14  ;;  %2162 = vst.msk [vmem:[#allocation12] sm:$0xff] %vm154_vm0, %v2134_v0 }
0x1fac   :  { %v2123_v22 = vmul.f32 0.5, %v2122_v13 }
0x1fae   :  { %v2124_v19 = vsub.f32 1.5, %v2123_v22 }
0x1fb0   :  { %v2125_v21 = vmul.f32 %v2514_v26, %v2124_v19 }
0x1fb2   :  { %v2129_v18 = vsel %vm2128_vm2, %v2514_v26, %v2125_v21 }
0x1fb3   :  { %v2131_v47 = vmul.f32 %v2129_v18, %v2097_v6 }
0x1fb5   :  { %v2133_v16 = vmul.f32 %v3489_v27, %v2131_v47 }
0x1fb7   :  { %v2135_v31 = vadd.f32 %v3495_v11, %v2133_v16 }
0x1fb9   :  { %2163 = vst.msk [vmem:[#allocation12 + $0x8] sm:$0xff] %vm154_vm0, %v2135_v31 }
0x1fba   :  { %2219 = dma.vmem_to_hbm [thread:$0]  %s2212_s1, 256, %s2214_s19, [#allocation13], %s2723_s22, %s2723_s22, %s2724_s2  }
0x1fbb   :  { %2230 = dma.vmem_to_hbm [thread:$0]  %s2226_s10, 64, %s2228_s4, [#allocation13]  }
0x1fbc   :  { %2718 = dma.done.wait [#allocation4], 64  }
0x1fbd   :  { %2719 = vsyncadd [#allocation4], 4294967232 }
0x1fbe   :  { %2720 = dma.done.wait [#allocation13], 320  }
0x1fbf   :  { %2721 = vsyncadd [#allocation13], 4294966976 }
0x1fc0   :  { %2243 = vsyncpa [#allocation3], 1 }
0x1fc1   :  { %2244 = vsyncpa [#allocation6], 1 }
0x1fc2   :  { %2245 = vsyncpa [#allocation9], 1 }
0x1fc3   :  { %2246 = vsyncpa [#allocation4], 1 }
0x1fc4   :  { %2247 = vsyncpa [#allocation13], 1 }

</bundles_post_ra>
